<compile_context>
chip_gen: v5e
topology: v5e:2x2
jax: 0.10.0
libtpu: 0.0.40
codegen_flags: <defaults>
</compile_context>

<pallas_src>
import numpy as np

import jax
import jax.numpy as jnp
from jax.experimental import pallas as pl
from jax.experimental.pallas import tpu as pltpu


# ----------------------------------------------------------------------------
# Parameter packing: band weight matrices + scale/shift slab (wrapper side).
# ----------------------------------------------------------------------------
def _even_odd(wn):
    # Even-then-odd W-block order: makes the pool's W-step a contiguous
    # half-vs-half lane max, and the pooled result comes out in natural order.
    return list(range(0, wn, 2)) + list(range(1, wn, 2))


def _identity(wn):
    return list(range(wn))


def _build_slabs(params, w0):
    """Pack all 7 convs into one bf16 band-matrix slab + one f32 scale/shift slab.

    Band matrix for conv `wt` (3,3,cin,cout) at H-tap dy, with input/output
    W-block permutations p_in/p_out:
        M_dy[pi*cin+ci, po*cout+co] = wt[dy, dx, ci, co],  dx = p_in[pi]-p_out[po]+1
    (zero where dx is outside [0,3) -> SAME zero padding in W comes for free).
    """
    plan = [("c1a", w0,      _identity(w0),      _even_odd(w0)),
            ("c1b", w0,      _even_odd(w0),      _even_odd(w0)),
            ("c2a", w0 // 2, _identity(w0 // 2), _even_odd(w0 // 2)),
            ("c2b", w0 // 2, _even_odd(w0 // 2), _even_odd(w0 // 2)),
            ("c3a", w0 // 4, _identity(w0 // 4), _even_odd(w0 // 4)),
            ("c3b", w0 // 4, _even_odd(w0 // 4), _even_odd(w0 // 4)),
            ("c3c", w0 // 4, _even_odd(w0 // 4), _even_odd(w0 // 4))]

    col_w = max(wn * params[name]["w"].shape[3] for name, wn, _, _ in plan)

    blocks, ss_rows, convs = [], [], []
    off = 0
    for idx, (name, wn, p_in, p_out) in enumerate(plan):
        wt = params[name]["w"]                                  # (3, 3, cin, cout)
        cin, cout = wt.shape[2], wt.shape[3]
        sel = (np.asarray(p_in)[:, None, None]
               == np.asarray(p_out)[None, None, :] + np.arange(3)[None, :, None] - 1)
        sel = jnp.asarray(sel.astype(np.float32))               # (W, 3, W), static
        m = jnp.einsum("pdq,ydio->ypiqo", sel, wt)              # (3, W, cin, W, cout)
        m = m.reshape(3, wn * cin, wn * cout)
        if wn * cout < col_w:
            m = jnp.pad(m, ((0, 0), (0, 0), (0, col_w - wn * cout)))
        blocks.append(m.reshape(3 * wn * cin, col_w))
        convs.append(dict(off=off, k=wn * cin, wc_out=wn * cout, ss_row=2 * idx))
        off += 3 * wn * cin
        for key in ("scale", "shift"):                          # BN fold, tiled over W
            row = jnp.tile(params[name][key].reshape(-1), wn)
            ss_rows.append(jnp.pad(row, (0, col_w - row.shape[0])))

    wslab = jnp.concatenate(blocks, axis=0).astype(jnp.bfloat16)   # (~4224, 256) bf16
    ss = jnp.stack(ss_rows).astype(jnp.float32)                    # (14, 256) f32
    return wslab, ss, dict(convs=convs, col_w=col_w)


# ----------------------------------------------------------------------------
# Fused kernel (closure over static shape/offset metadata).
# ----------------------------------------------------------------------------
def _make_kernel(cfg):
    n, h0, _ = cfg["x_shape"]
    convs = cfg["convs"]

    def kernel(x_ref, w_ref, ss_ref, o1_ref, o2_ref, o3_ref):
        f32 = jnp.float32
        ss = ss_ref[...]                                   # (14, 256) f32, read once

        def conv(x3, c, *, act, residual=None):
            """x3: (n, h, W*Cin) f32 -> (n*h, W*Cout) f32.

            3 matmuls (one per H-tap) against the band weight slab; f32 epilogue.
            """
            nn_, hh, wcin = x3.shape
            zrow = jnp.zeros((nn_, 1, wcin), f32)
            # H halo (leading/sublane axis); cast to bf16 once for the MXU.
            xp = jnp.concatenate([zrow, x3, zrow], axis=1).astype(jnp.bfloat16)
            acc = None
            for dy in range(3):
                xd = xp[:, dy:dy + hh, :].reshape(nn_ * hh, wcin)
                wk = w_ref[pl.ds(c["off"] + dy * c["k"], c["k"]), :]
                if c["wc_out"] != wk.shape[1]:
                    wk = wk[:, :c["wc_out"]]
                d = jnp.dot(xd, wk, preferred_element_type=f32)
                acc = d if acc is None else acc + d
            scale = ss[c["ss_row"]:c["ss_row"] + 1, :c["wc_out"]]
            shift = ss[c["ss_row"] + 1:c["ss_row"] + 2, :c["wc_out"]]
            y = acc * scale + shift                        # folded BatchNorm (f32)
            if residual is not None:
                y = y + residual
            if act:
                y = jnp.maximum(y, 0.0)
            return y

        def pool(z, nn_, hh):
            """z: (nn_*hh, wc) with W-blocks in even-then-odd order -> 2x2 maxpool."""
            wc = z.shape[-1]
            zw = jnp.maximum(z[:, :wc // 2], z[:, wc // 2:])          # W-pool (lane halves)
            return jnp.max(zw.reshape(nn_ * hh // 2, 2, wc // 2), axis=1)  # H-pool (row pairs)

        c1a, c1b, c2a, c2b, c3a, c3b, c3c = convs
        x = x_ref[...]                                      # (n, h0, W*C0) f32
        hh = h0

        # ---- block 1: SimpleResBlock(2*in_ch -> C1) + MaxPool2x2 -------------
        y = conv(x, c1a, act=True)
        z = conv(y.reshape(n, hh, c1a["wc_out"]), c1b, act=True, residual=y)
        p = pool(z, n, hh)
        o1_ref[...] = p
        hh //= 2

        # ---- block 2: SimpleResBlock(C1 -> C2) + MaxPool2x2 -------------------
        y = conv(p.reshape(n, hh, c1b["wc_out"] // 2), c2a, act=True)
        z = conv(y.reshape(n, hh, c2a["wc_out"]), c2b, act=True, residual=y)
        p = pool(z, n, hh)
        o2_ref[...] = p
        hh //= 2

        # ---- block 3: ResBlock(C2 -> C3) + MaxPool2x2 --------------------------
        y = conv(p.reshape(n, hh, c2b["wc_out"] // 2), c3a, act=True)
        t = conv(y.reshape(n, hh, c3a["wc_out"]), c3b, act=True)
        z = conv(t.reshape(n, hh, c3b["wc_out"]), c3c, act=True, residual=y)
        p = pool(z, n, hh)
        o3_ref[...] = p

    return kernel


# ----------------------------------------------------------------------------
# Wrapper.
# ----------------------------------------------------------------------------
def pair_encoder_forward(params, x1, x2):
    """x1, x2: (N, H, W, in_ch) NHWC.  Returns list of 4 NHWC feature maps."""
    x = jnp.concatenate([x1, x2], axis=-1)          # == torch.cat([x1, x2], dim=1)
    n, h, w, c0 = x.shape
    c1 = params["c1b"]["w"].shape[-1]
    c2 = params["c2b"]["w"].shape[-1]
    c3 = params["c3c"]["w"].shape[-1]

    # Weight-only prep (band matrices, slabs) — depends only on params/shapes,
    # could be hoisted out of the per-call path in a real deployment.
    wslab, ss, cfg = _build_slabs(params, w)
    cfg["x_shape"] = (n, h, w * c0)

    vmem = pl.BlockSpec(memory_space=pltpu.MemorySpace.VMEM)
    o1, o2, o3 = pl.pallas_call(
        _make_kernel(cfg),
        out_shape=(
            jax.ShapeDtypeStruct((n * h // 2, (w // 2) * c1), jnp.float32),
            jax.ShapeDtypeStruct((n * h // 4, (w // 4) * c2), jnp.float32),
            jax.ShapeDtypeStruct((n * h // 8, (w // 8) * c3), jnp.float32),
        ),
        in_specs=[vmem, vmem, vmem],
        out_specs=(vmem, vmem, vmem),
        compiler_params=pltpu.CompilerParams(vmem_limit_bytes=32 * 1024 * 1024),
    )(x.reshape(n, h, w * c0), wslab, ss)

    # Pooled outputs are already in natural (n, h, w, c) row-major order ->
    # these reshapes are free.
    return [x,
            o1.reshape(n, h // 2, w // 2, c1),
            o2.reshape(n, h // 4, w // 4, c2),
            o3.reshape(n, h // 8, w // 8, c3)]


# ----------------------------------------------------------------------------
# Pure-JAX f32 reference (mirrors the PyTorch module, NHWC) for validation.
# ----------------------------------------------------------------------------
def pair_encoder_reference(params, x1, x2):
    def conv_bn(x, p, act):
        y = jax.lax.conv_general_dilated(
            x, p["w"], window_strides=(1, 1), padding="SAME",
            dimension_numbers=("NHWC", "HWIO", "NHWC"))
        y = y * p["scale"].reshape(1, 1, 1, -1) + p["shift"].reshape(1, 1, 1, -1)
        return jnp.maximum(y, 0.0) if act else y

    def pool(x):
        nn_, hh, ww, cc = x.shape
        return jnp.max(x.reshape(nn_, hh // 2, 2, ww // 2, 2, cc), axis=(2, 4))

    x = jnp.concatenate([x1, x2], axis=-1)
    feats = [x]
    y = conv_bn(x, params["c1a"], True)
    x = pool(jnp.maximum(y + conv_bn(y, params["c1b"], False), 0.0)); feats.append(x)
    y = conv_bn(x, params["c2a"], True)
    x = pool(jnp.maximum(y + conv_bn(y, params["c2b"], False), 0.0)); feats.append(x)
    y = conv_bn(x, params["c3a"], True)
    t = conv_bn(y, params["c3b"], True)
    x = pool(jnp.maximum(y + conv_bn(t, params["c3c"], False), 0.0)); feats.append(x)
    return feats


# ----------------------------------------------------------------------------
# Parameter initialization (deterministic, synthetic; BN folded to scale/shift).
# ----------------------------------------------------------------------------
def _conv_params(key, cin, cout):
    k1, k2, k3 = jax.random.split(key, 3)
    w = jax.random.normal(k1, (3, 3, cin, cout), jnp.float32) * (1.0 / (3.0 * cin ** 0.5))
    scale = 1.0 + 0.1 * jax.random.normal(k2, (1, cout), jnp.float32)
    shift = 0.1 * jax.random.normal(k3, (1, cout), jnp.float32)
    return {"w": w, "scale": scale, "shift": shift}


def init_pair_encoder_params(key, in_ch, enc_chs=(16, 32, 64)):
    ks = jax.random.split(key, 7)
    c0 = 2 * in_ch
    return {
        "c1a": _conv_params(ks[0], c0, enc_chs[0]),
        "c1b": _conv_params(ks[1], enc_chs[0], enc_chs[0]),
        "c2a": _conv_params(ks[2], enc_chs[0], enc_chs[1]),
        "c2b": _conv_params(ks[3], enc_chs[1], enc_chs[1]),
        "c3a": _conv_params(ks[4], enc_chs[1], enc_chs[2]),
        "c3b": _conv_params(ks[5], enc_chs[2], enc_chs[2]),
        "c3c": _conv_params(ks[6], enc_chs[2], enc_chs[2]),
    }


if __name__ == "__main__":
    key = jax.random.PRNGKey(0)
    k_params, k1, k2 = jax.random.split(key, 3)

    N, in_ch, H, W = 2, 4, 16, 16
    # PyTorch-convention NCHW inputs ...
    x1_nchw = jax.random.normal(k1, (N, in_ch, H, W), jnp.float32)
    x2_nchw = jax.random.normal(k2, (N, in_ch, H, W), jnp.float32)
    # ... transposed to the kernel layout (NHWC).
    x1 = jnp.transpose(x1_nchw, (0, 2, 3, 1))
    x2 = jnp.transpose(x2_nchw, (0, 2, 3, 1))

    params = init_pair_encoder_params(k_params, in_ch, enc_chs=(16, 32, 64))

    fwd = jax.jit(pair_encoder_forward)
    feats = jax.block_until_ready(fwd(params, x1, x2))

    expected = [(N, 16, 16, 2 * in_ch), (N, 8, 8, 16), (N, 4, 4, 32), (N, 2, 2, 64)]
    assert [tuple(f.shape) for f in feats] == expected, [f.shape for f in feats]
    assert all(bool(jnp.isfinite(f).all()) for f in feats)

    # bf16 MXU inputs -> small drift vs. the f32 reference; use a relative-L2
    # tolerance (per the review's correctness note).
    ref = jax.jit(pair_encoder_reference)(params, x1, x2)
    for got, want in zip(feats[1:], ref[1:]):
        err = float(jnp.linalg.norm(got - want) / (jnp.linalg.norm(want) + 1e-6))
        assert err < 5e-2, f"relative L2 error too large: {err}"

    print("KERNEL_OK")
</pallas_src>

<mosaic_0001>
module attributes {stable_mosaic.version = 11 : i64} {
  func.func @kernel(%arg0: memref<2x16x128xf32, #tpu.memory_space<vmem>>, %arg1: memref<4224x256xbf16, #tpu.memory_space<vmem>>, %arg2: memref<14x256xf32, #tpu.memory_space<vmem>>, %arg3: memref<16x128xf32, #tpu.memory_space<vmem>>, %arg4: memref<8x128xf32, #tpu.memory_space<vmem>>, %arg5: memref<4x128xf32, #tpu.memory_space<vmem>>) attributes {dimension_semantics = [], scalar_prefetch = 0 : i64, scratch_operands = 0 : i64, tpu.core_type = #tpu.core_type<tc>} {
    %c0 = arith.constant 0 : index
    %c0_0 = arith.constant 0 : index
    %0 = vector.load %arg2[%c0, %c0_0] : memref<14x256xf32, #tpu.memory_space<vmem>>, vector<14x256xf32>
    %c0_1 = arith.constant 0 : index
    %c0_2 = arith.constant 0 : index
    %c0_3 = arith.constant 0 : index
    %1 = vector.load %arg0[%c0_1, %c0_2, %c0_3] : memref<2x16x128xf32, #tpu.memory_space<vmem>>, vector<2x16x128xf32>
    %cst = arith.constant 0.000000e+00 : f32
    %2 = vector.broadcast %cst : f32 to vector<2x1x128xf32>
    %3 = tpu.concatenate %2, %1, %2 in 1 : vector<2x1x128xf32>, vector<2x16x128xf32>, vector<2x1x128xf32> -> vector<2x18x128xf32>
    %4 = arith.truncf %3 : vector<2x18x128xf32> to vector<2x18x128xbf16>
    %5 = vector.extract_strided_slice %4 {offsets = [0, 0, 0], sizes = [2, 16, 128], strides = [1, 1, 1]} : vector<2x18x128xbf16> to vector<2x16x128xbf16>
    %6 = vector.shape_cast %5 : vector<2x16x128xbf16> to vector<32x128xbf16>
    %c0_4 = arith.constant 0 : index
    %c0_5 = arith.constant 0 : index
    %7 = vector.load %arg1[%c0_4, %c0_5] : memref<4224x256xbf16, #tpu.memory_space<vmem>>, vector<128x256xbf16>
    %cst_6 = arith.constant dense<0.000000e+00> : vector<32x256xf32>
    %8 = tpu.matmul %6, %7, %cst_6 {dimension_numbers = #tpu.dot_dimension_numbers<[1], [0], [0], [1], [0, 0, 1, 1], [], []>} : vector<32x128xbf16>, vector<128x256xbf16>, vector<32x256xf32> -> vector<32x256xf32>
    %9 = vector.extract_strided_slice %4 {offsets = [0, 1, 0], sizes = [2, 16, 128], strides = [1, 1, 1]} : vector<2x18x128xbf16> to vector<2x16x128xbf16>
    %10 = vector.shape_cast %9 : vector<2x16x128xbf16> to vector<32x128xbf16>
    %c128 = arith.constant 128 : index
    %c0_7 = arith.constant 0 : index
    %11 = vector.load %arg1[%c128, %c0_7] : memref<4224x256xbf16, #tpu.memory_space<vmem>>, vector<128x256xbf16>
    %cst_8 = arith.constant dense<0.000000e+00> : vector<32x256xf32>
    %12 = tpu.matmul %10, %11, %cst_8 {dimension_numbers = #tpu.dot_dimension_numbers<[1], [0], [0], [1], [0, 0, 1, 1], [], []>} : vector<32x128xbf16>, vector<128x256xbf16>, vector<32x256xf32> -> vector<32x256xf32>
    %13 = arith.addf %8, %12 : vector<32x256xf32>
    %14 = vector.extract_strided_slice %4 {offsets = [0, 2, 0], sizes = [2, 16, 128], strides = [1, 1, 1]} : vector<2x18x128xbf16> to vector<2x16x128xbf16>
    %15 = vector.shape_cast %14 : vector<2x16x128xbf16> to vector<32x128xbf16>
    %c256 = arith.constant 256 : index
    %c0_9 = arith.constant 0 : index
    %16 = vector.load %arg1[%c256, %c0_9] : memref<4224x256xbf16, #tpu.memory_space<vmem>>, vector<128x256xbf16>
    %cst_10 = arith.constant dense<0.000000e+00> : vector<32x256xf32>
    %17 = tpu.matmul %15, %16, %cst_10 {dimension_numbers = #tpu.dot_dimension_numbers<[1], [0], [0], [1], [0, 0, 1, 1], [], []>} : vector<32x128xbf16>, vector<128x256xbf16>, vector<32x256xf32> -> vector<32x256xf32>
    %18 = arith.addf %13, %17 : vector<32x256xf32>
    %19 = vector.extract_strided_slice %0 {offsets = [0, 0], sizes = [1, 256], strides = [1, 1]} : vector<14x256xf32> to vector<1x256xf32>
    %20 = vector.extract_strided_slice %0 {offsets = [1, 0], sizes = [1, 256], strides = [1, 1]} : vector<14x256xf32> to vector<1x256xf32>
    %21 = vector.broadcast %19 : vector<1x256xf32> to vector<32x256xf32>
    %22 = arith.mulf %18, %21 : vector<32x256xf32>
    %23 = vector.broadcast %20 : vector<1x256xf32> to vector<32x256xf32>
    %24 = arith.addf %22, %23 : vector<32x256xf32>
    %cst_11 = arith.constant 0.000000e+00 : f32
    %25 = vector.broadcast %cst_11 : f32 to vector<32x256xf32>
    %26 = arith.maximumf %24, %25 : vector<32x256xf32>
    %27 = vector.shape_cast %26 : vector<32x256xf32> to vector<2x16x256xf32>
    %cst_12 = arith.constant 0.000000e+00 : f32
    %28 = vector.broadcast %cst_12 : f32 to vector<2x1x256xf32>
    %29 = tpu.concatenate %28, %27, %28 in 1 : vector<2x1x256xf32>, vector<2x16x256xf32>, vector<2x1x256xf32> -> vector<2x18x256xf32>
    %30 = arith.truncf %29 : vector<2x18x256xf32> to vector<2x18x256xbf16>
    %31 = vector.extract_strided_slice %30 {offsets = [0, 0, 0], sizes = [2, 16, 256], strides = [1, 1, 1]} : vector<2x18x256xbf16> to vector<2x16x256xbf16>
    %32 = vector.shape_cast %31 : vector<2x16x256xbf16> to vector<32x256xbf16>
    %c384 = arith.constant 384 : index
    %c0_13 = arith.constant 0 : index
    %33 = vector.load %arg1[%c384, %c0_13] : memref<4224x256xbf16, #tpu.memory_space<vmem>>, vector<256x256xbf16>
    %cst_14 = arith.constant dense<0.000000e+00> : vector<32x256xf32>
    %34 = tpu.matmul %32, %33, %cst_14 {dimension_numbers = #tpu.dot_dimension_numbers<[1], [0], [0], [1], [0, 0, 1, 1], [], []>} : vector<32x256xbf16>, vector<256x256xbf16>, vector<32x256xf32> -> vector<32x256xf32>
    %35 = vector.extract_strided_slice %30 {offsets = [0, 1, 0], sizes = [2, 16, 256], strides = [1, 1, 1]} : vector<2x18x256xbf16> to vector<2x16x256xbf16>
    %36 = vector.shape_cast %35 : vector<2x16x256xbf16> to vector<32x256xbf16>
    %c640 = arith.constant 640 : index
    %c0_15 = arith.constant 0 : index
    %37 = vector.load %arg1[%c640, %c0_15] : memref<4224x256xbf16, #tpu.memory_space<vmem>>, vector<256x256xbf16>
    %cst_16 = arith.constant dense<0.000000e+00> : vector<32x256xf32>
    %38 = tpu.matmul %36, %37, %cst_16 {dimension_numbers = #tpu.dot_dimension_numbers<[1], [0], [0], [1], [0, 0, 1, 1], [], []>} : vector<32x256xbf16>, vector<256x256xbf16>, vector<32x256xf32> -> vector<32x256xf32>
    %39 = arith.addf %34, %38 : vector<32x256xf32>
    %40 = vector.extract_strided_slice %30 {offsets = [0, 2, 0], sizes = [2, 16, 256], strides = [1, 1, 1]} : vector<2x18x256xbf16> to vector<2x16x256xbf16>
    %41 = vector.shape_cast %40 : vector<2x16x256xbf16> to vector<32x256xbf16>
    %c896 = arith.constant 896 : index
    %c0_17 = arith.constant 0 : index
    %42 = vector.load %arg1[%c896, %c0_17] : memref<4224x256xbf16, #tpu.memory_space<vmem>>, vector<256x256xbf16>
    %cst_18 = arith.constant dense<0.000000e+00> : vector<32x256xf32>
    %43 = tpu.matmul %41, %42, %cst_18 {dimension_numbers = #tpu.dot_dimension_numbers<[1], [0], [0], [1], [0, 0, 1, 1], [], []>} : vector<32x256xbf16>, vector<256x256xbf16>, vector<32x256xf32> -> vector<32x256xf32>
    %44 = arith.addf %39, %43 : vector<32x256xf32>
    %45 = vector.extract_strided_slice %0 {offsets = [2, 0], sizes = [1, 256], strides = [1, 1]} : vector<14x256xf32> to vector<1x256xf32>
    %46 = vector.extract_strided_slice %0 {offsets = [3, 0], sizes = [1, 256], strides = [1, 1]} : vector<14x256xf32> to vector<1x256xf32>
    %47 = vector.broadcast %45 : vector<1x256xf32> to vector<32x256xf32>
    %48 = arith.mulf %44, %47 : vector<32x256xf32>
    %49 = vector.broadcast %46 : vector<1x256xf32> to vector<32x256xf32>
    %50 = arith.addf %48, %49 : vector<32x256xf32>
    %51 = arith.addf %50, %26 : vector<32x256xf32>
    %cst_19 = arith.constant 0.000000e+00 : f32
    %52 = vector.broadcast %cst_19 : f32 to vector<32x256xf32>
    %53 = arith.maximumf %51, %52 : vector<32x256xf32>
    %54 = vector.extract_strided_slice %53 {offsets = [0, 0], sizes = [32, 128], strides = [1, 1]} : vector<32x256xf32> to vector<32x128xf32>
    %55 = vector.extract_strided_slice %53 {offsets = [0, 128], sizes = [32, 128], strides = [1, 1]} : vector<32x256xf32> to vector<32x128xf32>
    %56 = arith.maximumf %54, %55 : vector<32x128xf32>
    %57 = vector.shape_cast %56 : vector<32x128xf32> to vector<16x2x128xf32>
    %cst_20 = arith.constant dense<0xFF800000> : vector<16x128xf32>
    %58 = vector.multi_reduction <maximumf>, %57, %cst_20 [1] : vector<16x2x128xf32> to vector<16x128xf32>
    %c0_21 = arith.constant 0 : index
    %c0_22 = arith.constant 0 : index
    %59 = vector.load %arg3[%c0_21, %c0_22] : memref<16x128xf32, #tpu.memory_space<vmem>>, vector<16x128xf32>
    tpu.vector_store %arg3[%c0_21, %c0_22], %58 {strides = array<i32>} : memref<16x128xf32, #tpu.memory_space<vmem>>, vector<16x128xf32>,
    %60 = vector.shape_cast %58 : vector<16x128xf32> to vector<2x8x128xf32>
    %cst_23 = arith.constant 0.000000e+00 : f32
    %61 = vector.broadcast %cst_23 : f32 to vector<2x1x128xf32>
    %62 = tpu.concatenate %61, %60, %61 in 1 : vector<2x1x128xf32>, vector<2x8x128xf32>, vector<2x1x128xf32> -> vector<2x10x128xf32>
    %63 = arith.truncf %62 : vector<2x10x128xf32> to vector<2x10x128xbf16>
    %64 = vector.extract_strided_slice %63 {offsets = [0, 0, 0], sizes = [2, 8, 128], strides = [1, 1, 1]} : vector<2x10x128xbf16> to vector<2x8x128xbf16>
    %65 = vector.shape_cast %64 : vector<2x8x128xbf16> to vector<16x128xbf16>
    %c1152 = arith.constant 1152 : index
    %c0_24 = arith.constant 0 : index
    %66 = vector.load %arg1[%c1152, %c0_24] : memref<4224x256xbf16, #tpu.memory_space<vmem>>, vector<128x256xbf16>
    %cst_25 = arith.constant dense<0.000000e+00> : vector<16x256xf32>
    %67 = tpu.matmul %65, %66, %cst_25 {dimension_numbers = #tpu.dot_dimension_numbers<[1], [0], [0], [1], [0, 0, 1, 1], [], []>} : vector<16x128xbf16>, vector<128x256xbf16>, vector<16x256xf32> -> vector<16x256xf32>
    %68 = vector.extract_strided_slice %63 {offsets = [0, 1, 0], sizes = [2, 8, 128], strides = [1, 1, 1]} : vector<2x10x128xbf16> to vector<2x8x128xbf16>
    %69 = vector.shape_cast %68 : vector<2x8x128xbf16> to vector<16x128xbf16>
    %c1280 = arith.constant 1280 : index
    %c0_26 = arith.constant 0 : index
    %70 = vector.load %arg1[%c1280, %c0_26] : memref<4224x256xbf16, #tpu.memory_space<vmem>>, vector<128x256xbf16>
    %cst_27 = arith.constant dense<0.000000e+00> : vector<16x256xf32>
    %71 = tpu.matmul %69, %70, %cst_27 {dimension_numbers = #tpu.dot_dimension_numbers<[1], [0], [0], [1], [0, 0, 1, 1], [], []>} : vector<16x128xbf16>, vector<128x256xbf16>, vector<16x256xf32> -> vector<16x256xf32>
    %72 = arith.addf %67, %71 : vector<16x256xf32>
    %73 = vector.extract_strided_slice %63 {offsets = [0, 2, 0], sizes = [2, 8, 128], strides = [1, 1, 1]} : vector<2x10x128xbf16> to vector<2x8x128xbf16>
    %74 = vector.shape_cast %73 : vector<2x8x128xbf16> to vector<16x128xbf16>
    %c1408 = arith.constant 1408 : index
    %c0_28 = arith.constant 0 : index
    %75 = vector.load %arg1[%c1408, %c0_28] : memref<4224x256xbf16, #tpu.memory_space<vmem>>, vector<128x256xbf16>
    %cst_29 = arith.constant dense<0.000000e+00> : vector<16x256xf32>
    %76 = tpu.matmul %74, %75, %cst_29 {dimension_numbers = #tpu.dot_dimension_numbers<[1], [0], [0], [1], [0, 0, 1, 1], [], []>} : vector<16x128xbf16>, vector<128x256xbf16>, vector<16x256xf32> -> vector<16x256xf32>
    %77 = arith.addf %72, %76 : vector<16x256xf32>
    %78 = vector.extract_strided_slice %0 {offsets = [4, 0], sizes = [1, 256], strides = [1, 1]} : vector<14x256xf32> to vector<1x256xf32>
    %79 = vector.extract_strided_slice %0 {offsets = [5, 0], sizes = [1, 256], strides = [1, 1]} : vector<14x256xf32> to vector<1x256xf32>
    %80 = vector.broadcast %78 : vector<1x256xf32> to vector<16x256xf32>
    %81 = arith.mulf %77, %80 : vector<16x256xf32>
    %82 = vector.broadcast %79 : vector<1x256xf32> to vector<16x256xf32>
    %83 = arith.addf %81, %82 : vector<16x256xf32>
    %cst_30 = arith.constant 0.000000e+00 : f32
    %84 = vector.broadcast %cst_30 : f32 to vector<16x256xf32>
    %85 = arith.maximumf %83, %84 : vector<16x256xf32>
    %86 = vector.shape_cast %85 : vector<16x256xf32> to vector<2x8x256xf32>
    %cst_31 = arith.constant 0.000000e+00 : f32
    %87 = vector.broadcast %cst_31 : f32 to vector<2x1x256xf32>
    %88 = tpu.concatenate %87, %86, %87 in 1 : vector<2x1x256xf32>, vector<2x8x256xf32>, vector<2x1x256xf32> -> vector<2x10x256xf32>
    %89 = arith.truncf %88 : vector<2x10x256xf32> to vector<2x10x256xbf16>
    %90 = vector.extract_strided_slice %89 {offsets = [0, 0, 0], sizes = [2, 8, 256], strides = [1, 1, 1]} : vector<2x10x256xbf16> to vector<2x8x256xbf16>
    %91 = vector.shape_cast %90 : vector<2x8x256xbf16> to vector<16x256xbf16>
    %c1536 = arith.constant 1536 : index
    %c0_32 = arith.constant 0 : index
    %92 = vector.load %arg1[%c1536, %c0_32] : memref<4224x256xbf16, #tpu.memory_space<vmem>>, vector<256x256xbf16>
    %cst_33 = arith.constant dense<0.000000e+00> : vector<16x256xf32>
    %93 = tpu.matmul %91, %92, %cst_33 {dimension_numbers = #tpu.dot_dimension_numbers<[1], [0], [0], [1], [0, 0, 1, 1], [], []>} : vector<16x256xbf16>, vector<256x256xbf16>, vector<16x256xf32> -> vector<16x256xf32>
    %94 = vector.extract_strided_slice %89 {offsets = [0, 1, 0], sizes = [2, 8, 256], strides = [1, 1, 1]} : vector<2x10x256xbf16> to vector<2x8x256xbf16>
    %95 = vector.shape_cast %94 : vector<2x8x256xbf16> to vector<16x256xbf16>
    %c1792 = arith.constant 1792 : index
    %c0_34 = arith.constant 0 : index
    %96 = vector.load %arg1[%c1792, %c0_34] : memref<4224x256xbf16, #tpu.memory_space<vmem>>, vector<256x256xbf16>
    %cst_35 = arith.constant dense<0.000000e+00> : vector<16x256xf32>
    %97 = tpu.matmul %95, %96, %cst_35 {dimension_numbers = #tpu.dot_dimension_numbers<[1], [0], [0], [1], [0, 0, 1, 1], [], []>} : vector<16x256xbf16>, vector<256x256xbf16>, vector<16x256xf32> -> vector<16x256xf32>
    %98 = arith.addf %93, %97 : vector<16x256xf32>
    %99 = vector.extract_strided_slice %89 {offsets = [0, 2, 0], sizes = [2, 8, 256], strides = [1, 1, 1]} : vector<2x10x256xbf16> to vector<2x8x256xbf16>
    %100 = vector.shape_cast %99 : vector<2x8x256xbf16> to vector<16x256xbf16>
    %c2048 = arith.constant 2048 : index
    %c0_36 = arith.constant 0 : index
    %101 = vector.load %arg1[%c2048, %c0_36] : memref<4224x256xbf16, #tpu.memory_space<vmem>>, vector<256x256xbf16>
    %cst_37 = arith.constant dense<0.000000e+00> : vector<16x256xf32>
    %102 = tpu.matmul %100, %101, %cst_37 {dimension_numbers = #tpu.dot_dimension_numbers<[1], [0], [0], [1], [0, 0, 1, 1], [], []>} : vector<16x256xbf16>, vector<256x256xbf16>, vector<16x256xf32> -> vector<16x256xf32>
    %103 = arith.addf %98, %102 : vector<16x256xf32>
    %104 = vector.extract_strided_slice %0 {offsets = [6, 0], sizes = [1, 256], strides = [1, 1]} : vector<14x256xf32> to vector<1x256xf32>
    %105 = vector.extract_strided_slice %0 {offsets = [7, 0], sizes = [1, 256], strides = [1, 1]} : vector<14x256xf32> to vector<1x256xf32>
    %106 = vector.broadcast %104 : vector<1x256xf32> to vector<16x256xf32>
    %107 = arith.mulf %103, %106 : vector<16x256xf32>
    %108 = vector.broadcast %105 : vector<1x256xf32> to vector<16x256xf32>
    %109 = arith.addf %107, %108 : vector<16x256xf32>
    %110 = arith.addf %109, %85 : vector<16x256xf32>
    %cst_38 = arith.constant 0.000000e+00 : f32
    %111 = vector.broadcast %cst_38 : f32 to vector<16x256xf32>
    %112 = arith.maximumf %110, %111 : vector<16x256xf32>
    %113 = vector.extract_strided_slice %112 {offsets = [0, 0], sizes = [16, 128], strides = [1, 1]} : vector<16x256xf32> to vector<16x128xf32>
    %114 = vector.extract_strided_slice %112 {offsets = [0, 128], sizes = [16, 128], strides = [1, 1]} : vector<16x256xf32> to vector<16x128xf32>
    %115 = arith.maximumf %113, %114 : vector<16x128xf32>
    %116 = vector.shape_cast %115 : vector<16x128xf32> to vector<8x2x128xf32>
    %cst_39 = arith.constant dense<0xFF800000> : vector<8x128xf32>
    %117 = vector.multi_reduction <maximumf>, %116, %cst_39 [1] : vector<8x2x128xf32> to vector<8x128xf32>
    %c0_40 = arith.constant 0 : index
    %c0_41 = arith.constant 0 : index
    %118 = vector.load %arg4[%c0_40, %c0_41] : memref<8x128xf32, #tpu.memory_space<vmem>>, vector<8x128xf32>
    tpu.vector_store %arg4[%c0_40, %c0_41], %117 {strides = array<i32>} : memref<8x128xf32, #tpu.memory_space<vmem>>, vector<8x128xf32>,
    %119 = vector.shape_cast %117 : vector<8x128xf32> to vector<2x4x128xf32>
    %cst_42 = arith.constant 0.000000e+00 : f32
    %120 = vector.broadcast %cst_42 : f32 to vector<2x1x128xf32>
    %121 = tpu.concatenate %120, %119, %120 in 1 : vector<2x1x128xf32>, vector<2x4x128xf32>, vector<2x1x128xf32> -> vector<2x6x128xf32>
    %122 = arith.truncf %121 : vector<2x6x128xf32> to vector<2x6x128xbf16>
    %123 = vector.extract_strided_slice %122 {offsets = [0, 0, 0], sizes = [2, 4, 128], strides = [1, 1, 1]} : vector<2x6x128xbf16> to vector<2x4x128xbf16>
    %124 = vector.shape_cast %123 : vector<2x4x128xbf16> to vector<8x128xbf16>
    %c2304 = arith.constant 2304 : index
    %c0_43 = arith.constant 0 : index
    %125 = vector.load %arg1[%c2304, %c0_43] : memref<4224x256xbf16, #tpu.memory_space<vmem>>, vector<128x256xbf16>
    %cst_44 = arith.constant dense<0.000000e+00> : vector<8x256xf32>
    %126 = tpu.matmul %124, %125, %cst_44 {dimension_numbers = #tpu.dot_dimension_numbers<[1], [0], [0], [1], [0, 0, 1, 1], [], []>} : vector<8x128xbf16>, vector<128x256xbf16>, vector<8x256xf32> -> vector<8x256xf32>
    %127 = vector.extract_strided_slice %122 {offsets = [0, 1, 0], sizes = [2, 4, 128], strides = [1, 1, 1]} : vector<2x6x128xbf16> to vector<2x4x128xbf16>
    %128 = vector.shape_cast %127 : vector<2x4x128xbf16> to vector<8x128xbf16>
    %c2432 = arith.constant 2432 : index
    %c0_45 = arith.constant 0 : index
    %129 = vector.load %arg1[%c2432, %c0_45] : memref<4224x256xbf16, #tpu.memory_space<vmem>>, vector<128x256xbf16>
    %cst_46 = arith.constant dense<0.000000e+00> : vector<8x256xf32>
    %130 = tpu.matmul %128, %129, %cst_46 {dimension_numbers = #tpu.dot_dimension_numbers<[1], [0], [0], [1], [0, 0, 1, 1], [], []>} : vector<8x128xbf16>, vector<128x256xbf16>, vector<8x256xf32> -> vector<8x256xf32>
    %131 = arith.addf %126, %130 : vector<8x256xf32>
    %132 = vector.extract_strided_slice %122 {offsets = [0, 2, 0], sizes = [2, 4, 128], strides = [1, 1, 1]} : vector<2x6x128xbf16> to vector<2x4x128xbf16>
    %133 = vector.shape_cast %132 : vector<2x4x128xbf16> to vector<8x128xbf16>
    %c2560 = arith.constant 2560 : index
    %c0_47 = arith.constant 0 : index
    %134 = vector.load %arg1[%c2560, %c0_47] : memref<4224x256xbf16, #tpu.memory_space<vmem>>, vector<128x256xbf16>
    %cst_48 = arith.constant dense<0.000000e+00> : vector<8x256xf32>
    %135 = tpu.matmul %133, %134, %cst_48 {dimension_numbers = #tpu.dot_dimension_numbers<[1], [0], [0], [1], [0, 0, 1, 1], [], []>} : vector<8x128xbf16>, vector<128x256xbf16>, vector<8x256xf32> -> vector<8x256xf32>
    %136 = arith.addf %131, %135 : vector<8x256xf32>
    %137 = vector.extract_strided_slice %0 {offsets = [8, 0], sizes = [1, 256], strides = [1, 1]} : vector<14x256xf32> to vector<1x256xf32>
    %138 = vector.extract_strided_slice %0 {offsets = [9, 0], sizes = [1, 256], strides = [1, 1]} : vector<14x256xf32> to vector<1x256xf32>
    %139 = vector.broadcast %137 : vector<1x256xf32> to vector<8x256xf32>
    %140 = arith.mulf %136, %139 : vector<8x256xf32>
    %141 = vector.broadcast %138 : vector<1x256xf32> to vector<8x256xf32>
    %142 = arith.addf %140, %141 : vector<8x256xf32>
    %cst_49 = arith.constant 0.000000e+00 : f32
    %143 = vector.broadcast %cst_49 : f32 to vector<8x256xf32>
    %144 = arith.maximumf %142, %143 : vector<8x256xf32>
    %145 = vector.shape_cast %144 : vector<8x256xf32> to vector<2x4x256xf32>
    %cst_50 = arith.constant 0.000000e+00 : f32
    %146 = vector.broadcast %cst_50 : f32 to vector<2x1x256xf32>
    %147 = tpu.concatenate %146, %145, %146 in 1 : vector<2x1x256xf32>, vector<2x4x256xf32>, vector<2x1x256xf32> -> vector<2x6x256xf32>
    %148 = arith.truncf %147 : vector<2x6x256xf32> to vector<2x6x256xbf16>
    %149 = vector.extract_strided_slice %148 {offsets = [0, 0, 0], sizes = [2, 4, 256], strides = [1, 1, 1]} : vector<2x6x256xbf16> to vector<2x4x256xbf16>
    %150 = vector.shape_cast %149 : vector<2x4x256xbf16> to vector<8x256xbf16>
    %c2688 = arith.constant 2688 : index
    %c0_51 = arith.constant 0 : index
    %151 = vector.load %arg1[%c2688, %c0_51] : memref<4224x256xbf16, #tpu.memory_space<vmem>>, vector<256x256xbf16>
    %cst_52 = arith.constant dense<0.000000e+00> : vector<8x256xf32>
    %152 = tpu.matmul %150, %151, %cst_52 {dimension_numbers = #tpu.dot_dimension_numbers<[1], [0], [0], [1], [0, 0, 1, 1], [], []>} : vector<8x256xbf16>, vector<256x256xbf16>, vector<8x256xf32> -> vector<8x256xf32>
    %153 = vector.extract_strided_slice %148 {offsets = [0, 1, 0], sizes = [2, 4, 256], strides = [1, 1, 1]} : vector<2x6x256xbf16> to vector<2x4x256xbf16>
    %154 = vector.shape_cast %153 : vector<2x4x256xbf16> to vector<8x256xbf16>
    %c2944 = arith.constant 2944 : index
    %c0_53 = arith.constant 0 : index
    %155 = vector.load %arg1[%c2944, %c0_53] : memref<4224x256xbf16, #tpu.memory_space<vmem>>, vector<256x256xbf16>
    %cst_54 = arith.constant dense<0.000000e+00> : vector<8x256xf32>
    %156 = tpu.matmul %154, %155, %cst_54 {dimension_numbers = #tpu.dot_dimension_numbers<[1], [0], [0], [1], [0, 0, 1, 1], [], []>} : vector<8x256xbf16>, vector<256x256xbf16>, vector<8x256xf32> -> vector<8x256xf32>
    %157 = arith.addf %152, %156 : vector<8x256xf32>
    %158 = vector.extract_strided_slice %148 {offsets = [0, 2, 0], sizes = [2, 4, 256], strides = [1, 1, 1]} : vector<2x6x256xbf16> to vector<2x4x256xbf16>
    %159 = vector.shape_cast %158 : vector<2x4x256xbf16> to vector<8x256xbf16>
    %c3200 = arith.constant 3200 : index
    %c0_55 = arith.constant 0 : index
    %160 = vector.load %arg1[%c3200, %c0_55] : memref<4224x256xbf16, #tpu.memory_space<vmem>>, vector<256x256xbf16>
    %cst_56 = arith.constant dense<0.000000e+00> : vector<8x256xf32>
    %161 = tpu.matmul %159, %160, %cst_56 {dimension_numbers = #tpu.dot_dimension_numbers<[1], [0], [0], [1], [0, 0, 1, 1], [], []>} : vector<8x256xbf16>, vector<256x256xbf16>, vector<8x256xf32> -> vector<8x256xf32>
    %162 = arith.addf %157, %161 : vector<8x256xf32>
    %163 = vector.extract_strided_slice %0 {offsets = [10, 0], sizes = [1, 256], strides = [1, 1]} : vector<14x256xf32> to vector<1x256xf32>
    %164 = vector.extract_strided_slice %0 {offsets = [11, 0], sizes = [1, 256], strides = [1, 1]} : vector<14x256xf32> to vector<1x256xf32>
    %165 = vector.broadcast %163 : vector<1x256xf32> to vector<8x256xf32>
    %166 = arith.mulf %162, %165 : vector<8x256xf32>
    %167 = vector.broadcast %164 : vector<1x256xf32> to vector<8x256xf32>
    %168 = arith.addf %166, %167 : vector<8x256xf32>
    %cst_57 = arith.constant 0.000000e+00 : f32
    %169 = vector.broadcast %cst_57 : f32 to vector<8x256xf32>
    %170 = arith.maximumf %168, %169 : vector<8x256xf32>
    %171 = vector.shape_cast %170 : vector<8x256xf32> to vector<2x4x256xf32>
    %cst_58 = arith.constant 0.000000e+00 : f32
    %172 = vector.broadcast %cst_58 : f32 to vector<2x1x256xf32>
    %173 = tpu.concatenate %172, %171, %172 in 1 : vector<2x1x256xf32>, vector<2x4x256xf32>, vector<2x1x256xf32> -> vector<2x6x256xf32>
    %174 = arith.truncf %173 : vector<2x6x256xf32> to vector<2x6x256xbf16>
    %175 = vector.extract_strided_slice %174 {offsets = [0, 0, 0], sizes = [2, 4, 256], strides = [1, 1, 1]} : vector<2x6x256xbf16> to vector<2x4x256xbf16>
    %176 = vector.shape_cast %175 : vector<2x4x256xbf16> to vector<8x256xbf16>
    %c3456 = arith.constant 3456 : index
    %c0_59 = arith.constant 0 : index
    %177 = vector.load %arg1[%c3456, %c0_59] : memref<4224x256xbf16, #tpu.memory_space<vmem>>, vector<256x256xbf16>
    %cst_60 = arith.constant dense<0.000000e+00> : vector<8x256xf32>
    %178 = tpu.matmul %176, %177, %cst_60 {dimension_numbers = #tpu.dot_dimension_numbers<[1], [0], [0], [1], [0, 0, 1, 1], [], []>} : vector<8x256xbf16>, vector<256x256xbf16>, vector<8x256xf32> -> vector<8x256xf32>
    %179 = vector.extract_strided_slice %174 {offsets = [0, 1, 0], sizes = [2, 4, 256], strides = [1, 1, 1]} : vector<2x6x256xbf16> to vector<2x4x256xbf16>
    %180 = vector.shape_cast %179 : vector<2x4x256xbf16> to vector<8x256xbf16>
    %c3712 = arith.constant 3712 : index
    %c0_61 = arith.constant 0 : index
    %181 = vector.load %arg1[%c3712, %c0_61] : memref<4224x256xbf16, #tpu.memory_space<vmem>>, vector<256x256xbf16>
    %cst_62 = arith.constant dense<0.000000e+00> : vector<8x256xf32>
    %182 = tpu.matmul %180, %181, %cst_62 {dimension_numbers = #tpu.dot_dimension_numbers<[1], [0], [0], [1], [0, 0, 1, 1], [], []>} : vector<8x256xbf16>, vector<256x256xbf16>, vector<8x256xf32> -> vector<8x256xf32>
    %183 = arith.addf %178, %182 : vector<8x256xf32>
    %184 = vector.extract_strided_slice %174 {offsets = [0, 2, 0], sizes = [2, 4, 256], strides = [1, 1, 1]} : vector<2x6x256xbf16> to vector<2x4x256xbf16>
    %185 = vector.shape_cast %184 : vector<2x4x256xbf16> to vector<8x256xbf16>
    %c3968 = arith.constant 3968 : index
    %c0_63 = arith.constant 0 : index
    %186 = vector.load %arg1[%c3968, %c0_63] : memref<4224x256xbf16, #tpu.memory_space<vmem>>, vector<256x256xbf16>
    %cst_64 = arith.constant dense<0.000000e+00> : vector<8x256xf32>
    %187 = tpu.matmul %185, %186, %cst_64 {dimension_numbers = #tpu.dot_dimension_numbers<[1], [0], [0], [1], [0, 0, 1, 1], [], []>} : vector<8x256xbf16>, vector<256x256xbf16>, vector<8x256xf32> -> vector<8x256xf32>
    %188 = arith.addf %183, %187 : vector<8x256xf32>
    %189 = vector.extract_strided_slice %0 {offsets = [12, 0], sizes = [1, 256], strides = [1, 1]} : vector<14x256xf32> to vector<1x256xf32>
    %190 = vector.extract_strided_slice %0 {offsets = [13, 0], sizes = [1, 256], strides = [1, 1]} : vector<14x256xf32> to vector<1x256xf32>
    %191 = vector.broadcast %189 : vector<1x256xf32> to vector<8x256xf32>
    %192 = arith.mulf %188, %191 : vector<8x256xf32>
    %193 = vector.broadcast %190 : vector<1x256xf32> to vector<8x256xf32>
    %194 = arith.addf %192, %193 : vector<8x256xf32>
    %195 = arith.addf %194, %144 : vector<8x256xf32>
    %cst_65 = arith.constant 0.000000e+00 : f32
    %196 = vector.broadcast %cst_65 : f32 to vector<8x256xf32>
    %197 = arith.maximumf %195, %196 : vector<8x256xf32>
    %198 = vector.extract_strided_slice %197 {offsets = [0, 0], sizes = [8, 128], strides = [1, 1]} : vector<8x256xf32> to vector<8x128xf32>
    %199 = vector.extract_strided_slice %197 {offsets = [0, 128], sizes = [8, 128], strides = [1, 1]} : vector<8x256xf32> to vector<8x128xf32>
    %200 = arith.maximumf %198, %199 : vector<8x128xf32>
    %201 = vector.shape_cast %200 : vector<8x128xf32> to vector<4x2x128xf32>
    %cst_66 = arith.constant dense<0xFF800000> : vector<4x128xf32>
    %202 = vector.multi_reduction <maximumf>, %201, %cst_66 [1] : vector<4x2x128xf32> to vector<4x128xf32>
    %c0_67 = arith.constant 0 : index
    %c0_68 = arith.constant 0 : index
    %203 = vector.load %arg5[%c0_67, %c0_68] : memref<4x128xf32, #tpu.memory_space<vmem>>, vector<4x128xf32>
    tpu.vector_store %arg5[%c0_67, %c0_68], %202 {strides = array<i32>} : memref<4x128xf32, #tpu.memory_space<vmem>>, vector<4x128xf32>,
    return
  }
}

</mosaic_0001>

<bundles_post_ra>
// kernel: tile.58
= control target key start
LH: loop header
LB: loop body
LE: loop exit
PB: predicated region body
PF: predicated region fallthrough
CT: control target
= control target key end

     0   :  { %s28_s0 = inlined_call_operand.vmem [shape: f32[16], index: 0, kind: input, shape index: {}]   ;;  %s29_s1 = inlined_call_operand.vmem [shape: f32[16,16], index: 1, kind: output, shape index: {}]  }
   0x1   :  { %v4_v0 = vld [vmem:[%s28_s0] ss:$0 sm:$0xff] }
   0x2   :  { %5 = vst [vmem:[%s29_s1] sm:$0xff] %v4_v0 }
   0x3   :  { %8 = vst [vmem:[%s29_s1 + $0x8] sm:$0xff] %v4_v0 }

// kernel: tile.74
= control target key start
LH: loop header
LB: loop body
LE: loop exit
PB: predicated region body
PF: predicated region fallthrough
CT: control target
= control target key end

     0   :  { %s22_s0 = inlined_call_operand.vmem [shape: f32[32], index: 0, kind: input, shape index: {}]   ;;  %s23_s1 = inlined_call_operand.vmem [shape: f32[8,32], index: 1, kind: output, shape index: {}]  }
   0x1   :  { %v4_v0 = vld [vmem:[%s22_s0] ss:$0 sm:$0xff] }
   0x2   :  { %5 = vst [vmem:[%s23_s1] sm:$0xff] %v4_v0 }

// kernel: tile.90
= control target key start
LH: loop header
LB: loop body
LE: loop exit
PB: predicated region body
PF: predicated region fallthrough
CT: control target
= control target key end

     0   :  { %s22_s0 = inlined_call_operand.vmem [shape: f32[64], index: 0, kind: input, shape index: {}]   ;;  %s23_s1 = inlined_call_operand.vmem [shape: f32[4,64], index: 1, kind: output, shape index: {}]  }
   0x1   :  { %v4_v0 = vld [vmem:[%s22_s0] ss:$0 sm:$0xff] }
   0x2   :  { %5 = vst [vmem:[%s23_s1] sm:$0xf] %v4_v0 }

// kernel: pair_encoder_forward.1
= control target key start
LH: loop header
LB: loop body
LE: loop exit
PB: predicated region body
PF: predicated region fallthrough
CT: control target
= control target key end

     0   :  { %vm29_vm0 = vcmask 1040384   ;;  %vm68_vm1 = vsmask.f32 3328  ;;  %vm69_vm2 = vsmask.f32 7440  ;;  %vm393_vm4 = vcmask 1042432   ;;  %s12288_s1 = inlined_call_operand.vmem [shape: bf16[4224,256], index: 1, kind: input, shape index: {}]   ;;  %s12289_s0 = inlined_call_operand.vmem [shape: f32[2,16,128], index: 0, kind: input, shape index: {}]   ;;  %s12290_s2 = inlined_call_operand.vmem [shape: f32[14,256], index: 2, kind: input, shape index: {}]   ;;  %s12291_s3 = inlined_call_operand.vmem [shape: f32[16,128], index: 3, kind: output, shape index: {0}]   ;;  %s12292_s4 = inlined_call_operand.vmem [shape: f32[8,128], index: 4, kind: output, shape index: {1}]   ;;  %s12293_s5 = inlined_call_operand.vmem [shape: f32[4,128], index: 5, kind: output, shape index: {2}]  }
   0x1   :  { %v5498_v0 = vld [vmem:[%s12288_s1 + $0xf0] sm:$0xf]  ;;  %v7597_v1 = vld [vmem:[%s12288_s1 + $0xf4] sm:$0xf0]  ;;  %v7596_v2 = vld [vmem:[%s12288_s1 + $0xf4] sm:$0xf] }
   0x2   :  { %v5499_v3 = vor.u32 %v7597_v1, %v5498_v0  ;;  %v5500_v4 = vld [vmem:[%s12288_s1 + $0xf8] sm:$0xf0]  ;;  %v5562_v5 = vld [vmem:[%s12288_s1 + $0x70] sm:$0xf]  ;;  %v7581_v6 = vld [vmem:[%s12288_s1 + $0x74] sm:$0xf0] }
   0x3   :  { %v5503_v7 = vor.u32 %v7596_v2, %v5500_v4  ;;  %v5563_v8 = vor.u32 %v7581_v6, %v5562_v5  ;;  %v7580_v9 = vld [vmem:[%s12288_s1 + $0x74] sm:$0xf]  ;;  %v5564_v10 = vld [vmem:[%s12288_s1 + $0x78] sm:$0xf0]  ;;  %v5490_v11 = vld [vmem:[%s12288_s1 + $0xe0] sm:$0xf] }
   0x4   :  { %223 = vmatpush.bf16.msra.mxu0 %v5499_v3  ;;  %v5567_v12 = vor.u32 %v7580_v9, %v5564_v10  ;;  %v7595_v13 = vld [vmem:[%s12288_s1 + $0xe4] sm:$0xf0]  ;;  %v7594_v14 = vld [vmem:[%s12288_s1 + $0xe4] sm:$0xf]  ;;  %v5492_v15 = vld [vmem:[%s12288_s1 + $0xe8] sm:$0xf0] }
   0x5   :  { %242 = vmatpush.bf16.msra.mxu1 %v5503_v7  ;;  %353 = vmatpush.bf16.msra.mxu2 %v5563_v8  ;;  %v5491_v16 = vor.u32 %v7595_v13, %v5490_v11  ;;  %v5495_v17 = vor.u32 %v7594_v14, %v5492_v15  ;;  %v5554_v18 = vld [vmem:[%s12288_s1 + $0x60] sm:$0xf]  ;;  %v7579_v19 = vld [vmem:[%s12288_s1 + $0x64] sm:$0xf0]  ;;  %v7578_v20 = vld [vmem:[%s12288_s1 + $0x64] sm:$0xf] }
   0x6   :  { %372 = vmatpush.bf16.msra.mxu3 %v5567_v12  ;;  %v5555_v21 = vor.u32 %v7579_v19, %v5554_v18  ;;  %v5556_v22 = vld [vmem:[%s12288_s1 + $0x68] sm:$0xf0]  ;;  %v5482_v23 = vld [vmem:[%s12288_s1 + $0xd0] sm:$0xf]  ;;  %v7593_v24 = vld [vmem:[%s12288_s1 + $0xd4] sm:$0xf0] }
   0x7   :  { %v5559_v25 = vor.u32 %v7578_v20, %v5556_v22  ;;  %v7592_v26 = vld [vmem:[%s12288_s1 + $0xd4] sm:$0xf]  ;;  %v5484_v27 = vld [vmem:[%s12288_s1 + $0xd8] sm:$0xf0]  ;;  %v5546_v28 = vld [vmem:[%s12288_s1 + $0x50] sm:$0xf]  ;;  %v5483_v29 = vor.u32 %v7593_v24, %v5482_v23 }
   0x8   :  { %224 = vmatpush.bf16.msra.mxu0 %v5491_v16  ;;  %v7577_v30 = vld [vmem:[%s12288_s1 + $0x54] sm:$0xf0]  ;;  %v7576_v31 = vld [vmem:[%s12288_s1 + $0x54] sm:$0xf]  ;;  %v5548_v32 = vld [vmem:[%s12288_s1 + $0x58] sm:$0xf0]  ;;  %v5487_v33 = vor.u32 %v7592_v26, %v5484_v27 }
   0x9   :  { %243 = vmatpush.bf16.msra.mxu1 %v5495_v17  ;;  %354 = vmatpush.bf16.msra.mxu2 %v5555_v21  ;;  %v5547_v34 = vor.u32 %v7577_v30, %v5546_v28  ;;  %v5474_v35 = vld [vmem:[%s12288_s1 + $0xc0] sm:$0xf]  ;;  %v7591_v36 = vld [vmem:[%s12288_s1 + $0xc4] sm:$0xf0]  ;;  %v7590_v37 = vld [vmem:[%s12288_s1 + $0xc4] sm:$0xf]  ;;  %v5551_v38 = vor.u32 %v7576_v31, %v5548_v32 }
   0xa   :  { %373 = vmatpush.bf16.msra.mxu3 %v5559_v25  ;;  %v5476_v39 = vld [vmem:[%s12288_s1 + $0xc8] sm:$0xf0]  ;;  %v5538_v40 = vld [vmem:[%s12288_s1 + $0x40] sm:$0xf]  ;;  %v7575_v41 = vld [vmem:[%s12288_s1 + $0x44] sm:$0xf0]  ;;  %v5475_v44 = vor.u32 %v7591_v36, %v5474_v35 }
   0xb   :  { %v7574_v42 = vld [vmem:[%s12288_s1 + $0x44] sm:$0xf]  ;;  %v5540_v43 = vld [vmem:[%s12288_s1 + $0x48] sm:$0xf0]  ;;  %v5466_v45 = vld [vmem:[%s12288_s1 + $0xb0] sm:$0xf]  ;;  %v5479_v46 = vor.u32 %v7590_v37, %v5476_v39  ;;  %v5539_v47 = vor.u32 %v7575_v41, %v5538_v40 }
   0xc   :  { %225 = vmatpush.bf16.msra.mxu0 %v5483_v29  ;;  %v7589_v48 = vld [vmem:[%s12288_s1 + $0xb4] sm:$0xf0]  ;;  %v7588_v49 = vld [vmem:[%s12288_s1 + $0xb4] sm:$0xf]  ;;  %v5468_v50 = vld [vmem:[%s12288_s1 + $0xb8] sm:$0xf0]  ;;  %v5543_v51 = vor.u32 %v7574_v42, %v5540_v43 }
   0xd   :  { %244 = vmatpush.bf16.msra.mxu1 %v5487_v33  ;;  %355 = vmatpush.bf16.msra.mxu2 %v5547_v34  ;;  %v5530_v52 = vld [vmem:[%s12288_s1 + $0x30] sm:$0xf]  ;;  %v7573_v53 = vld [vmem:[%s12288_s1 + $0x34] sm:$0xf0]  ;;  %v7572_v54 = vld [vmem:[%s12288_s1 + $0x34] sm:$0xf]  ;;  %v5467_v58 = vor.u32 %v7589_v48, %v5466_v45  ;;  %v5471_v63 = vor.u32 %v7588_v49, %v5468_v50 }
   0xe   :  { %374 = vmatpush.bf16.msra.mxu3 %v5551_v38  ;;  %v5532_v55 = vld [vmem:[%s12288_s1 + $0x38] sm:$0xf0]  ;;  %v5458_v56 = vld [vmem:[%s12288_s1 + $0xa0] sm:$0xf]  ;;  %v7587_v57 = vld [vmem:[%s12288_s1 + $0xa4] sm:$0xf0]  ;;  %v5531_v0 = vor.u32 %v7573_v53, %v5530_v52 }
   0xf   :  { %v7586_v59 = vld [vmem:[%s12288_s1 + $0xa4] sm:$0xf]  ;;  %v5460_v60 = vld [vmem:[%s12288_s1 + $0xa8] sm:$0xf0]  ;;  %v5522_v61 = vld [vmem:[%s12288_s1 + $0x20] sm:$0xf]  ;;  %v5535_v5 = vor.u32 %v7572_v54, %v5532_v55  ;;  %v5459_v12 = vor.u32 %v7587_v57, %v5458_v56 }
  0x10   :  { %226 = vmatpush.bf16.msra.mxu0 %v5475_v44  ;;  %v7571_v62 = vld [vmem:[%s12288_s1 + $0x24] sm:$0xf0]  ;;  %v7570_v1 = vld [vmem:[%s12288_s1 + $0x24] sm:$0xf]  ;;  %v5524_v2 = vld [vmem:[%s12288_s1 + $0x28] sm:$0xf0]  ;;  %v5463_v16 = vor.u32 %v7586_v59, %v5460_v60 }
  0x11   :  { %245 = vmatpush.bf16.msra.mxu1 %v5479_v46  ;;  %356 = vmatpush.bf16.msra.mxu2 %v5539_v47  ;;  %v5450_v3 = vld [vmem:[%s12288_s1 + $0x90] sm:$0xf]  ;;  %v7585_v4 = vld [vmem:[%s12288_s1 + $0x94] sm:$0xf0]  ;;  %v7584_v6 = vld [vmem:[%s12288_s1 + $0x94] sm:$0xf]  ;;  %v5523_v17 = vor.u32 %v7571_v62, %v5522_v61  ;;  %v5527_v21 = vor.u32 %v7570_v1, %v5524_v2 }
  0x12   :  { %375 = vmatpush.bf16.msra.mxu3 %v5543_v51  ;;  %v5452_v7 = vld [vmem:[%s12288_s1 + $0x98] sm:$0xf0]  ;;  %v5514_v8 = vld [vmem:[%s12288_s1 + $0x10] sm:$0xf]  ;;  %v7569_v9 = vld [vmem:[%s12288_s1 + $0x14] sm:$0xf0]  ;;  %v5451_v22 = vor.u32 %v7585_v4, %v5450_v3 }
  0x13   :  { %v8295_v10 = vld [vmem:[%s12288_s1 + $0x14] sm:$0xf]  ;;  %v8300_v11 = vld [vmem:[%s12288_s1 + $0x18] sm:$0xf0]  ;;  %v8305_v13 = vld [vmem:[%s12288_s1 + $0x80] sm:$0xf]  ;;  %v5455_v26 = vor.u32 %v7584_v6, %v5452_v7  ;;  %v5515_v27 = vor.u32 %v7569_v9, %v5514_v8 }
  0x14   :  { %227 = vmatpush.bf16.msra.mxu0 %v5467_v58  ;;  %v8310_v14 = vld [vmem:[%s12288_s1 + $0x84] sm:$0xf0]  ;;  %v8315_v15 = vld [vmem:[%s12288_s1 + $0x84] sm:$0xf]  ;;  %v8320_v18 = vld [vmem:[%s12288_s1 + $0x88] sm:$0xf0]  ;;  %v5519_v33 = vor.u32 %v8295_v10, %v8300_v11 }
  0x15   :  { %246 = vmatpush.bf16.msra.mxu1 %v5471_v63  ;;  %357 = vmatpush.bf16.msra.mxu2 %v5531_v0  ;;  %v8325_v19 = vld [vmem:[%s12288_s1] sm:$0xf]  ;;  %v8330_v20 = vld [vmem:[%s12288_s1 + $0x4] sm:$0xf0]  ;;  %v8335_v23 = vld [vmem:[%s12288_s1 + $0x4] sm:$0xf]  ;;  %v5443_v34 = vor.u32 %v8310_v14, %v8305_v13  ;;  %v5447_v35 = vor.u32 %v8315_v15, %v8320_v18 }
  0x16   :  { %376 = vmatpush.bf16.msra.mxu3 %v5535_v5  ;;  %v21_v24 = vld [vmem:[%s12289_s0] sm:$0xff]  ;;  %v22_v25 = vld [vmem:[%s12289_s0 + $0x8] sm:$0xff]  ;;  %v23_v29 = vld [vmem:[%s12289_s0 + $0x10] sm:$0xff]  ;;  %v5507_v43 = vor.u32 %v8330_v20, %v8325_v19  ;;  %vm394_vm5 = vcmask 1046532   ;;  %vm1630_vm7 = vcmask 1041408   ;;  %vm1759_vm8 = vcmask 1041409  }
  0x17   :  { %v5508_v28 = vld [vmem:[%s12288_s1 + $0x8] sm:$0xf0]  ;;  %v30_v30 = vrot.slane %v21_v24, 7  ;;  %v31_v31 = vrot.slane %v22_v25, 7  ;;  %v24_v32 = vld [vmem:[%s12289_s0 + $0x18] sm:$0xff]  ;;  %v33_v38 = vrot.slane %v23_v29, 7  ;;  %vm8404_vm3 = vmor %vm68_vm1, %vm69_vm2 }
  0x18   :  { %228 = vmatpush.bf16.msra.mxu0 %v5459_v12  ;;  %v5628_v36 = vld [vmem:[%s12288_s1 + $0x170] sm:$0xf]  ;;  %v7613_v37 = vld [vmem:[%s12288_s1 + $0x174] sm:$0xf0]  ;;  %v34_v42 = vrot.slane %v24_v32, 7  ;;  %v5511_v47 = vor.u32 %v8335_v23, %v5508_v28  ;;  %vm8506_vm6 = vmor %vm393_vm4, %vm394_vm5  ;;  %vm1761_vm9 = vcmask 1042434  }
  0x19   :  { %247 = vmatpush.bf16.msra.mxu1 %v5463_v16  ;;  %358 = vmatpush.bf16.msra.mxu2 %v5523_v17  ;;  %v32_v39 = vsel %vm29_vm0, %v30_v30, %v31_v31  ;;  %v42_v40 = vsel %vm29_vm0, 0.0, %v30_v30  ;;  %v44_v41 = vsel %vm29_vm0, %v31_v31, 0.0  ;;  %v5629_v48 = vor.u32 %v7613_v37, %v5628_v36  ;;  %v7612_v49 = vld [vmem:[%s12288_s1 + $0x174] sm:$0xf]  ;;  %v5630_v54 = vld [vmem:[%s12288_s1 + $0x178] sm:$0xf0] }
  0x1a   :  { %377 = vmatpush.bf16.msra.mxu3 %v5527_v21  ;;  %v8369_v44 = vpack.c.bf16 %v42_v40, %v42_v40  ;;  %v8371_v45 = vpack.c.bf16 %v32_v39, %v32_v39  ;;  %v8373_v46 = vpack.c.bf16 %v44_v41, %v44_v41  ;;  %v5620_v58 = vld [vmem:[%s12288_s1 + $0x160] sm:$0xf]  ;;  %v35_v59 = vsel %vm29_vm0, %v33_v38, %v34_v42  ;;  %v7611_v0 = vld [vmem:[%s12288_s1 + $0x164] sm:$0xf0]  ;;  %v7610_v6 = vld [vmem:[%s12288_s1 + $0x164] sm:$0xf] }
  0x1b   :  { %v5633_v1 = vor.u32 %v7612_v49, %v5630_v54  ;;  %v5622_v7 = vld [vmem:[%s12288_s1 + $0x168] sm:$0xf0]  ;;  %v5621_v9 = vor.u32 %v7611_v0, %v5620_v58  ;;  %v43_v10 = vsel %vm29_vm0, 0.0, %v33_v38  ;;  %v45_v11 = vsel %vm29_vm0, %v34_v42, 0.0  ;;  %v5612_v18 = vld [vmem:[%s12288_s1 + $0x150] sm:$0xf] }
  0x1c   :  { %229 = vmatpush.bf16.msra.mxu0 %v5451_v22  ;;  %v72_v50 = vshrl.u32 %v8369_v44, 16  ;;  %v75_v51 = vshll.u32 %v8369_v44, 16  ;;  %v81_v52 = vshll.u32 %v8371_v45, 16  ;;  %v85_v53 = vshrl.u32 %v8371_v45, 16  ;;  %v7609_v19 = vld [vmem:[%s12288_s1 + $0x154] sm:$0xf0] }
  0x1d   :  { %248 = vmatpush.bf16.msra.mxu1 %v5455_v26  ;;  %359 = vmatpush.bf16.msra.mxu2 %v5515_v27  ;;  %v91_v55 = vshll.u32 %v8373_v46, 16  ;;  %v265_v56 = vunpack.c.l.b16 %v8369_v44  ;;  %v266_v57 = vunpack.c.l.b16 %v8371_v45  ;;  %v8410_v12 = vpack.c.bf16 %v35_v59, %v35_v59  ;;  %v7608_v24 = vld [vmem:[%s12288_s1 + $0x154] sm:$0xf]  ;;  %v5614_v25 = vld [vmem:[%s12288_s1 + $0x158] sm:$0xf0] }
  0x1e   :  { %378 = vmatpush.bf16.msra.mxu3 %v5519_v33  ;;  %v74_v60 = vrot.slane %v72_v50, 4  ;;  %v77_v61 = vrot.slane %v75_v51, 5  ;;  %v83_v62 = vrot.slane %v81_v52, 5  ;;  %v87_v63 = vrot.slane %v85_v53, 4  ;;  %v5604_v38 = vld [vmem:[%s12288_s1 + $0x140] sm:$0xf] }
  0x1f   :  { %v93_v4 = vrot.slane %v91_v55, 5  ;;  %v269_v5 = vpack.c.b16 %v266_v57, %v265_v56  ;;  %v8412_v15 = vpack.c.bf16 %v43_v10, %v43_v10  ;;  %v8414_v16 = vpack.c.bf16 %v45_v11, %v45_v11  ;;  %v7607_v39 = vld [vmem:[%s12288_s1 + $0x144] sm:$0xf0]  ;;  %v7606_v41 = vld [vmem:[%s12288_s1 + $0x144] sm:$0xf] }
  0x20   :  { %230 = vmatpush.bf16.msra.mxu0 %v5443_v34  ;;  %v78_v2 = vor.u32 %v77_v61, %v74_v60  ;;  %v88_v3 = vor.u32 %v87_v63, %v83_v62  ;;  %v5625_v17 = vor.u32 %v7610_v6, %v5622_v7  ;;  %v105_v20 = vshll.u32 %v8410_v12, 16  ;;  %v5606_v42 = vld [vmem:[%s12288_s1 + $0x148] sm:$0xf0]  ;;  %v5596_v52 = vld [vmem:[%s12288_s1 + $0x130] sm:$0xf] }
  0x21   :  { %249 = vmatpush.bf16.msra.mxu1 %v5447_v35  ;;  %360 = vmatpush.bf16.msra.mxu2 %v5507_v43  ;;  %v109_v21 = vshrl.u32 %v8410_v12, 16  ;;  %v96_v26 = vshrl.u32 %v8412_v15, 16  ;;  %v99_v27 = vshll.u32 %v8412_v15, 16  ;;  %v5613_v32 = vor.u32 %v7609_v19, %v5612_v18  ;;  %v7605_v53 = vld [vmem:[%s12288_s1 + $0x134] sm:$0xf0] }
  0x22   :  { %379 = vmatpush.bf16.msra.mxu3 %v5511_v47  ;;  %v79_v13 = vrot.slane %v78_v2, 4  ;;  %v89_v14 = vrot.slane %v88_v3, 4  ;;  %v107_v30 = vrot.slane %v105_v20, 5  ;;  %v115_v35 = vshll.u32 %v8414_v16, 16  ;;  %v7604_v56 = vld [vmem:[%s12288_s1 + $0x134] sm:$0xf] }
  0x23   :  { %v111_v31 = vrot.slane %v109_v21, 4  ;;  %v98_v33 = vrot.slane %v96_v26, 4  ;;  %v101_v34 = vrot.slane %v99_v27, 5  ;;  %v5617_v37 = vor.u32 %v7608_v24, %v5614_v25  ;;  %v5598_v57 = vld [vmem:[%s12288_s1 + $0x138] sm:$0xf0] }
  0x24   :  { %514 = vmatpush.bf16.msrb.mxu0 %v5629_v48  ;;  %v84_v22 = vsel %vm8404_vm3, %v79_v13, %v83_v62  ;;  %v94_v23 = vsel %vm8404_vm3, %v89_v14, %v93_v4  ;;  %361 = vmatmul.bf16.vlgmr.msra.gmra.mxu2 %v269_v5  ;;  %v5605_v47 = vor.u32 %v7607_v39, %v5604_v38  ;;  %v117_v50 = vrot.slane %v115_v35, 5  ;;  %v5588_v62 = vld [vmem:[%s12288_s1 + $0x120] sm:$0xf]  ;;  %v7603_v63 = vld [vmem:[%s12288_s1 + $0x124] sm:$0xf0] }
  0x25   :  { %533 = vmatpush.bf16.msrb.mxu1 %v5633_v1  ;;  %v135_v28 = vunpack.c.l.b16 %v84_v22  ;;  %v136_v29 = vunpack.c.l.b16 %v94_v23  ;;  %380 = vmatmul.bf16.vlgmr.msra.gmra.mxu3 %v269_v5  ;;  %v112_v40 = vor.u32 %v111_v31, %v107_v30  ;;  %v102_v43 = vor.u32 %v101_v34, %v98_v33  ;;  %v7602_v1 = vld [vmem:[%s12288_s1 + $0x124] sm:$0xf]  ;;  %v5590_v2 = vld [vmem:[%s12288_s1 + $0x128] sm:$0xf0]  ;;  %v5580_v7 = vld [vmem:[%s12288_s1 + $0x110] sm:$0xf] }
  0x26   :  { %v5609_v51 = vor.u32 %v7606_v41, %v5606_v42  ;;  %v267_v54 = vunpack.c.l.b16 %v8412_v15  ;;  %v268_v55 = vunpack.c.l.b16 %v8410_v12  ;;  %v5597_v60 = vor.u32 %v7605_v53, %v5596_v52  ;;  %v7600_v10 = vld [vmem:[%s12288_s1 + $0x114] sm:$0xf]  ;;  %v5582_v11 = vld [vmem:[%s12288_s1 + $0x118] sm:$0xf0]  ;;  %v5572_v19 = vld [vmem:[%s12288_s1 + $0x100] sm:$0xf] }
  0x27   :  { %v139_v36 = vpack.c.b16 %v136_v29, %v135_v28  ;;  %v103_v48 = vrot.slane %v102_v43, 4  ;;  %v113_v49 = vrot.slane %v112_v40, 4  ;;  %v5601_v61 = vor.u32 %v7604_v56, %v5598_v57  ;;  %v7599_v20 = vld [vmem:[%s12288_s1 + $0x104] sm:$0xf0]  ;;  %v7598_v21 = vld [vmem:[%s12288_s1 + $0x104] sm:$0xf] }
  0x28   :  { %515 = vmatpush.bf16.msrb.mxu0 %v5621_v9  ;;  %v270_v0 = vpack.c.b16 %v268_v55, %v267_v54  ;;  %v5589_v5 = vor.u32 %v7603_v63, %v5588_v62  ;;  %v5593_v6 = vor.u32 %v7602_v1, %v5590_v2  ;;  %v7601_v9 = vld [vmem:[%s12288_s1 + $0x114] sm:$0xf0]  ;;  %v5585_v18 = vor.u32 %v7600_v10, %v5582_v11  ;;  %v5574_v22 = vld [vmem:[%s12288_s1 + $0x108] sm:$0xf0]  ;;  %v5756_v42 = vld [vmem:[%s12288_s1 + $0x370] sm:$0xf] }
  0x29   :  { %534 = vmatpush.bf16.msrb.mxu1 %v5625_v17  ;;  %231 = vmatmul.bf16.vlgmr.msra.gmra.mxu0 %v139_v36  ;;  %v108_v58 = vsel %vm8404_vm3, %v103_v48, %v107_v30  ;;  %v118_v59 = vsel %vm8404_vm3, %v113_v49, %v117_v50  ;;  %v5581_v14 = vor.u32 %v7601_v9, %v5580_v7  ;;  %v398_v17 = vrot.slane %v8371_v45, 5  ;;  %v7677_v43 = vld [vmem:[%s12288_s1 + $0x374] sm:$0xf0]  ;;  %v5694_v49 = vld [vmem:[%s12288_s1 + $0x2f8] sm:$0xf0] }
  0x2a   :  { %250 = vmatmul.bf16.vlgmr.msra.gmra.mxu1 %v139_v36  ;;  %v137_v3 = vunpack.c.l.b16 %v108_v58  ;;  %v138_v4 = vunpack.c.l.b16 %v118_v59  ;;  %v5573_v45 = vor.u32 %v7599_v20, %v5572_v19  ;;  %v5568_v23 = vrot.slane %v8369_v44, 9  ;;  %v7676_v50 = vld [vmem:[%s12288_s1 + $0x374] sm:$0xf]  ;;  %v5758_v52 = vld [vmem:[%s12288_s1 + $0x378] sm:$0xf0] }
  0x2b   :  { %v400_v24 = vrot.slane %v398_v17, 4  ;;  %v401_v25 = vrot.slane %v8373_v46, 5  ;;  %v5577_v26 = vor.u32 %v7598_v21, %v5574_v22  ;;  %v5569_v46 = vrot.slane %v8412_v15, 9  ;;  %v5692_v15 = vld [vmem:[%s12288_s1 + $0x2f0] sm:$0xf] }
  0x2c   :  { %516 = vmatpush.bf16.msrb.mxu0 %v5613_v32  ;;  %v140_v13 = vpack.c.b16 %v138_v4, %v137_v3  ;;  %v399_v28 = vsel %vm8506_vm6, %v5568_v23, %v398_v17  ;;  %v405_v32 = vrot.slane %v8410_v12, 5  ;;  %v408_v34 = vrot.slane %v8414_v16, 5  ;;  %v7661_v16 = vld [vmem:[%s12288_s1 + $0x2f4] sm:$0xf0]  ;;  %v5684_v54 = vld [vmem:[%s12288_s1 + $0x2e0] sm:$0xf] }
  0x2d   :  { %535 = vmatpush.bf16.msrb.mxu1 %v5617_v37  ;;  %v402_v29 = vsel %vm8506_vm6, %v400_v24, %v401_v25  ;;  %v426_v30 = vunpack.c.l.b16 %v399_v28  ;;  %v5693_v41 = vor.u32 %v7661_v16, %v5692_v15  ;;  %v5757_v48 = vor.u32 %v7677_v43, %v5756_v42  ;;  %v7659_v55 = vld [vmem:[%s12288_s1 + $0x2e4] sm:$0xf0]  ;;  %v5748_v56 = vld [vmem:[%s12288_s1 + $0x360] sm:$0xf]  ;;  %v7658_v59 = vld [vmem:[%s12288_s1 + $0x2e4] sm:$0xf] }
  0x2e   :  { %v427_v31 = vunpack.c.l.b16 %v402_v29  ;;  %v407_v33 = vrot.slane %v405_v32, 4  ;;  %v406_v35 = vsel %vm8506_vm6, %v5569_v46, %v405_v32  ;;  %v5761_v53 = vor.u32 %v7676_v50, %v5758_v52  ;;  %v7675_v58 = vld [vmem:[%s12288_s1 + $0x364] sm:$0xf0]  ;;  %v7674_v63 = vld [vmem:[%s12288_s1 + $0x364] sm:$0xf] }
  0x2f   :  { %v428_v37 = vunpack.c.l.b16 %v406_v35  ;;  %922 = vmatpush.bf16.msrb.mxu2 %v5693_v41  ;;  %941 = vmatpush.bf16.msrb.mxu3 %v5757_v48  ;;  %v5685_v57 = vor.u32 %v7659_v55, %v5684_v54  ;;  %v5676_v4 = vld [vmem:[%s12288_s1 + $0x2d0] sm:$0xf]  ;;  %v7673_v9 = vld [vmem:[%s12288_s1 + $0x354] sm:$0xf0]  ;;  %v7656_v10 = vld [vmem:[%s12288_s1 + $0x2d4] sm:$0xf] }
  0x30   :  { %517 = vmatpush.bf16.msrb.mxu0 %v5605_v47  ;;  %v430_v44 = vpack.c.b16 %v427_v31, %v426_v30  ;;  %v409_v36 = vsel %vm8506_vm6, %v407_v33, %v408_v34  ;;  %v7660_v47 = vld [vmem:[%s12288_s1 + $0x2f4] sm:$0xf]  ;;  %v5678_v11 = vld [vmem:[%s12288_s1 + $0x2d8] sm:$0xf0]  ;;  %v5668_v20 = vld [vmem:[%s12288_s1 + $0x2c0] sm:$0xf] }
  0x31   :  { %536 = vmatpush.bf16.msrb.mxu1 %v5609_v51  ;;  %v429_v38 = vunpack.c.l.b16 %v409_v36  ;;  %v5697_v51 = vor.u32 %v7660_v47, %v5694_v49  ;;  %v7672_v17 = vld [vmem:[%s12288_s1 + $0x354] sm:$0xf]  ;;  %v7655_v21 = vld [vmem:[%s12288_s1 + $0x2c4] sm:$0xf0]  ;;  %v5732_v22 = vld [vmem:[%s12288_s1 + $0x340] sm:$0xf] }
  0x32   :  { %v7671_v23 = vld [vmem:[%s12288_s1 + $0x344] sm:$0xf0]  ;;  %v7654_v24 = vld [vmem:[%s12288_s1 + $0x2c4] sm:$0xf]  ;;  %v5670_v25 = vld [vmem:[%s12288_s1 + $0x2c8] sm:$0xf0] }
  0x33   :  { %v431_v39 = vpack.c.b16 %v429_v38, %v428_v37  ;;  %923 = vmatpush.bf16.msrb.mxu2 %v5685_v57  ;;  %v5673_v28 = vor.u32 %v7654_v24, %v5670_v25  ;;  %v7670_v29 = vld [vmem:[%s12288_s1 + $0x344] sm:$0xf]  ;;  %v5734_v30 = vld [vmem:[%s12288_s1 + $0x348] sm:$0xf0]  ;;  %v5660_v33 = vld [vmem:[%s12288_s1 + $0x2b0] sm:$0xf] }
  0x34   :  { %518 = vmatpush.bf16.msrb.mxu0 %v5597_v60  ;;  %366 = vmatmul.bf16.gmra.mxu2 %v270_v0  ;;  %v5686_v60 = vld [vmem:[%s12288_s1 + $0x2e8] sm:$0xf0]  ;;  %v5737_v32 = vor.u32 %v7670_v29, %v5734_v30  ;;  %v7653_v34 = vld [vmem:[%s12288_s1 + $0x2b4] sm:$0xf0]  ;;  %v5724_v35 = vld [vmem:[%s12288_s1 + $0x330] sm:$0xf] }
  0x35   :  { %537 = vmatpush.bf16.msrb.mxu1 %v5601_v61  ;;  %385 = vmatmul.bf16.gmra.mxu3 %v270_v0  ;;  %v5749_v61 = vor.u32 %v7675_v58, %v5748_v56  ;;  %v5689_v62 = vor.u32 %v7658_v59, %v5686_v60  ;;  %v5750_v0 = vld [vmem:[%s12288_s1 + $0x368] sm:$0xf0]  ;;  %v5661_v37 = vor.u32 %v7653_v34, %v5660_v33  ;;  %v7669_v38 = vld [vmem:[%s12288_s1 + $0x334] sm:$0xf0]  ;;  %v5662_v15 = vld [vmem:[%s12288_s1 + $0x2b8] sm:$0xf0] }
  0x36   :  { %v5753_v3 = vor.u32 %v7674_v63, %v5750_v0  ;;  %v5725_v16 = vor.u32 %v7669_v38, %v5724_v35  ;;  %v7668_v42 = vld [vmem:[%s12288_s1 + $0x334] sm:$0xf]  ;;  %v5726_v43 = vld [vmem:[%s12288_s1 + $0x338] sm:$0xf0]  ;;  %v5652_v48 = vld [vmem:[%s12288_s1 + $0x2a0] sm:$0xf] }
  0x37   :  { %942 = vmatpush.bf16.msrb.mxu3 %v5749_v61  ;;  %v5729_v47 = vor.u32 %v7668_v42, %v5726_v43  ;;  %v7651_v49 = vld [vmem:[%s12288_s1 + $0x2a4] sm:$0xf0]  ;;  %v5716_v50 = vld [vmem:[%s12288_s1 + $0x320] sm:$0xf]  ;;  %v5654_v54 = vld [vmem:[%s12288_s1 + $0x2a8] sm:$0xf0] }
  0x38   :  { %519 = vmatpush.bf16.msrb.mxu0 %v5589_v5  ;;  %v7657_v5 = vld [vmem:[%s12288_s1 + $0x2d4] sm:$0xf0]  ;;  %v7667_v52 = vld [vmem:[%s12288_s1 + $0x324] sm:$0xf0]  ;;  %v7666_v59 = vld [vmem:[%s12288_s1 + $0x324] sm:$0xf] }
  0x39   :  { %538 = vmatpush.bf16.msrb.mxu1 %v5593_v6  ;;  %236 = vmatmul.bf16.gmra.mxu0 %v140_v13  ;;  %v5740_v6 = vld [vmem:[%s12288_s1 + $0x350] sm:$0xf]  ;;  %v5677_v7 = vor.u32 %v7657_v5, %v5676_v4  ;;  %v5717_v57 = vor.u32 %v7667_v52, %v5716_v50  ;;  %v5718_v60 = vld [vmem:[%s12288_s1 + $0x328] sm:$0xf0]  ;;  %v17_v61 = vld [vmem:[%s12290_s2] sm:$0xff]  ;;  %vm1763_vm10 = vcmask 1043459  }
  0x3a   :  { %255 = vmatmul.bf16.gmra.mxu1 %v140_v13  ;;  %v5741_v13 = vor.u32 %v7673_v9, %v5740_v6  ;;  %v5721_v63 = vor.u32 %v7666_v59, %v5718_v60  ;;  %v5644_v0 = vld [vmem:[%s12288_s1 + $0x290] sm:$0xf]  ;;  %v7648_v9 = vld [vmem:[%s12288_s1 + $0x294] sm:$0xf]  ;;  %v7646_v29 = vld [vmem:[%s12288_s1 + $0x284] sm:$0xf] }
  0x3b   :  { %924 = vmatpush.bf16.msrb.mxu2 %v5677_v7  ;;  %v5708_v4 = vld [vmem:[%s12288_s1 + $0x310] sm:$0xf]  ;;  %v7665_v7 = vld [vmem:[%s12288_s1 + $0x314] sm:$0xf0]  ;;  %v5638_v30 = vld [vmem:[%s12288_s1 + $0x288] sm:$0xf0] }
  0x3c   :  { %520 = vmatpush.bf16.msrb.mxu0 %v5581_v14  ;;  %v5681_v14 = vor.u32 %v7656_v10, %v5678_v11  ;;  %943 = vmatpush.bf16.msrb.mxu3 %v5741_v13  ;;  %v5646_v10 = vld [vmem:[%s12288_s1 + $0x298] sm:$0xf0]  ;;  %v5709_v11 = vor.u32 %v7665_v7, %v5708_v4  ;;  %v8738_v33 = vperm.slane %v17_v61, 1  ;;  %v7662_v34 = vld [vmem:[%s12288_s1 + $0x304] sm:$0xf]  ;;  %vm1765_vm11 = vcmask 1044484  }
  0x3d   :  { %539 = vmatpush.bf16.msrb.mxu1 %v5585_v18  ;;  %v5742_v18 = vld [vmem:[%s12288_s1 + $0x358] sm:$0xf0]  ;;  %v5649_v13 = vor.u32 %v7648_v9, %v5646_v10  ;;  %v5702_v35 = vld [vmem:[%s12288_s1 + $0x308] sm:$0xf0]  ;;  %v7629_v42 = vld [vmem:[%s12288_s1 + $0x1f4] sm:$0xf0] }
  0x3e   :  { %v5745_v19 = vor.u32 %v7672_v17, %v5742_v18  ;;  %v5710_v17 = vld [vmem:[%s12288_s1 + $0x318] sm:$0xf0]  ;;  %v5884_v43 = vld [vmem:[%s12288_s1 + $0x270] sm:$0xf]  ;;  %v5812_v60 = vld [vmem:[%s12288_s1 + $0x1e0] sm:$0xf] }
  0x3f   :  { %v5822_v50 = vld [vmem:[%s12288_s1 + $0x1f8] sm:$0xf0]  ;;  %v7643_v4 = vld [vmem:[%s12288_s1 + $0x264] sm:$0xf0]  ;;  %v7626_v9 = vld [vmem:[%s12288_s1 + $0x1e4] sm:$0xf] }
  0x40   :  { %521 = vmatpush.bf16.msrb.mxu0 %v5573_v45  ;;  %v5669_v45 = vor.u32 %v7655_v21, %v5668_v20  ;;  %v5886_v59 = vld [vmem:[%s12288_s1 + $0x278] sm:$0xf0]  ;;  %v5814_v10 = vld [vmem:[%s12288_s1 + $0x1e8] sm:$0xf0]  ;;  %vm1767_vm12 = vcmask 1045509   ;;  %vm1769_vm13 = vcmask 1046534  }
  0x41   :  { %540 = vmatpush.bf16.msrb.mxu1 %v5577_v26  ;;  %v5733_v26 = vor.u32 %v7671_v23, %v5732_v22  ;;  %v5636_v22 = vld [vmem:[%s12288_s1 + $0x280] sm:$0xf]  ;;  %vm1771_vm14 = vcmask 1047559   ;;  %v6532_v8 = vld [vmem:[%s12288_s1 + $0x878] sm:$0xf0]  ;;  %vm3207_vm15 = vcmask 1044480  }
  0x42   :  { %925 = vmatpush.bf16.msrb.mxu2 %v5669_v45  ;;  %v7647_v45 = vld [vmem:[%s12288_s1 + $0x284] sm:$0xf0]  ;;  %v5700_v23 = vld [vmem:[%s12288_s1 + $0x300] sm:$0xf]  ;;  %vm3245_vm1 = vsmask.f32 1280 }
  0x43   :  { %944 = vmatpush.bf16.msrb.mxu3 %v5733_v26  ;;  %v5637_v26 = vor.u32 %v7647_v45, %v5636_v22  ;;  %vm3246_vm2 = vsmask.f32 3336  ;;  %vm3248_vm4 = vsmask.f32 5392  ;;  %vm3250_vm5 = vsmask.f32 7448 }
  0x44   :  { %960 = vmatpush.bf16.msra.mxu0 %v5697_v51  ;;  %v5653_v51 = vor.u32 %v7651_v49, %v5652_v48  ;;  %v7645_v48 = vld [vmem:[%s12288_s1 + $0x274] sm:$0xf0]  ;;  %v7628_v49 = vld [vmem:[%s12288_s1 + $0x1f4] sm:$0xf] }
  0x45   :  { %979 = vmatpush.bf16.msra.mxu1 %v5761_v53  ;;  %v7650_v53 = vld [vmem:[%s12288_s1 + $0x2a4] sm:$0xf] }
  0x46   :  { %926 = vmatpush.bf16.msrb.mxu2 %v5661_v37  ;;  %v5657_v58 = vor.u32 %v7650_v53, %v5654_v54  ;;  %v5885_v54 = vor.u32 %v7645_v48, %v5884_v43  ;;  %v7623_v43 = vld [vmem:[%s12288_s1 + $0x1c4] sm:$0xf0] }
  0x47   :  { %945 = vmatpush.bf16.msrb.mxu3 %v5725_v16 }
  0x48   :  { %961 = vmatpush.bf16.msra.mxu0 %v5689_v62  ;;  %v18_v62 = vld [vmem:[%s12290_s2 + $0x8] sm:$0xff] }
  0x49   :  { %522 = vmatmul.bf16.vlgmr.msrb.gmra.mxu0 %v430_v44  ;;  %980 = vmatpush.bf16.msra.mxu1 %v5753_v3  ;;  %v7649_v3 = vld [vmem:[%s12288_s1 + $0x294] sm:$0xf0]  ;;  %v8715_v20 = vperm.slane %v18_v62, 0  ;;  %v8746_v38 = vperm.slane %v18_v62, 1 }
  0x4a   :  { %541 = vmatmul.bf16.vlgmr.msrb.gmra.mxu1 %v430_v44  ;;  %927 = vmatpush.bf16.msrb.mxu2 %v5653_v51  ;;  %v5645_v6 = vor.u32 %v7649_v3, %v5644_v0  ;;  %v7627_v0 = vld [vmem:[%s12288_s1 + $0x1e4] sm:$0xf0]  ;;  %v5876_v3 = vld [vmem:[%s12288_s1 + $0x260] sm:$0xf] }
  0x4b   :  { %946 = vmatpush.bf16.msrb.mxu3 %v5717_v57  ;;  %v5825_v57 = vor.u32 %v7628_v49, %v5822_v50 }
  0x4c   :  { %962 = vmatpush.bf16.msra.mxu0 %v5681_v14  ;;  %v7664_v14 = vld [vmem:[%s12288_s1 + $0x314] sm:$0xf] }
  0x4d   :  { %981 = vmatpush.bf16.msra.mxu1 %v5745_v19  ;;  %v8713_v19 = vperm.slane %v17_v61, 0  ;;  %v5713_v21 = vor.u32 %v7664_v14, %v5710_v17  ;;  %v5817_v14 = vor.u32 %v7626_v9, %v5814_v10  ;;  %v7642_v17 = vld [vmem:[%s12288_s1 + $0x264] sm:$0xf] }
  0x4e   :  { %928 = vmatpush.bf16.msrb.mxu2 %v5645_v6 }
  0x4f   :  { %947 = vmatpush.bf16.msrb.mxu3 %v5709_v11 }
  0x50   :  { %963 = vmatpush.bf16.msra.mxu0 %v5673_v28  ;;  %v7663_v28 = vld [vmem:[%s12288_s1 + $0x304] sm:$0xf0] }
  0x51   :  { %982 = vmatpush.bf16.msra.mxu1 %v5737_v32 }
  0x52   :  { %929 = vmatpush.bf16.msrb.mxu2 %v5637_v26  ;;  %v5868_v26 = vld [vmem:[%s12288_s1 + $0x250] sm:$0xf] }
  0x55   :  { %983 = vmatpush.bf16.msra.mxu1 %v5729_v47 }
  0x59   :  { %527 = vmatmul.bf16.gmra.mxu0 %v431_v39  ;;  %984 = vmatpush.bf16.msra.mxu1 %v5721_v63 }
  0x5a   :  { %546 = vmatmul.bf16.gmra.mxu1 %v431_v39  ;;  %v7652_v39 = vld [vmem:[%s12288_s1 + $0x2b4] sm:$0xf] }
  0x5b   :  { %v5665_v41 = vor.u32 %v7652_v39, %v5662_v15  ;;  %v5705_v39 = vor.u32 %v7662_v34, %v5702_v35 }
  0x5d   :  { %964 = vmatpush.bf16.msra.mxu0 %v5665_v41  ;;  %985 = vmatpush.bf16.msra.mxu1 %v5713_v21  ;;  %v5820_v41 = vld [vmem:[%s12288_s1 + $0x1f0] sm:$0xf] }
  0x5e   :  { %v5821_v47 = vor.u32 %v7629_v42, %v5820_v41  ;;  %v5804_v21 = vld [vmem:[%s12288_s1 + $0x1d0] sm:$0xf]  ;;  %v5796_v42 = vld [vmem:[%s12288_s1 + $0x1c0] sm:$0xf] }
  0x60   :  { %1178 = vmatpush.bf16.msra.mxu2 %v5821_v47  ;;  %v5860_v47 = vld [vmem:[%s12288_s1 + $0x240] sm:$0xf] }
  0x61   :  { %965 = vmatpush.bf16.msra.mxu0 %v5657_v58  ;;  %986 = vmatpush.bf16.msra.mxu1 %v5705_v39  ;;  %v7644_v58 = vld [vmem:[%s12288_s1 + $0x274] sm:$0xf] }
  0x62   :  { %v5889_v63 = vor.u32 %v7644_v58, %v5886_v59  ;;  %v5798_v58 = vld [vmem:[%s12288_s1 + $0x1c8] sm:$0xf0] }
  0x65   :  { %966 = vmatpush.bf16.msra.mxu0 %v5649_v13  ;;  %1235 = vmatpush.bf16.msrb.mxu1 %v5889_v63 }
  0xa6   :  { %v8521_v40 = vpop.f32.mrf.mxu0 }
  0xa7   :  { %v8523_v12 = vpop.f32.mrf.mxu1  ;;  %v8629_v46 = vpop.f32.mrf.mxu2 }
  0xa8   :  { %v381_v36 = vpop.f32.mrf.mxu3  ;;  %v363_v24 = vadd.f32 %v8629_v46, %v8521_v40  ;;  %v5701_v46 = vor.u32 %v7663_v28, %v5700_v23 }
  0xa9   :  { %v382_v25 = vadd.f32 %v381_v36, %v8523_v12  ;;  %v5641_v12 = vor.u32 %v7646_v29, %v5638_v30  ;;  %v7641_v30 = vld [vmem:[%s12288_s1 + $0x254] sm:$0xf0] }
  0xaa   :  { %948 = vmatpush.bf16.msrb.mxu3 %v5701_v46 }
  0xab   :  { %967 = vmatpush.bf16.msra.mxu0 %v5641_v12 }
  0xae   :  { %v8573_v1 = vpop.f32.mrf.mxu0  ;;  %1197 = vmatpush.bf16.msra.mxu3 %v5885_v54  ;;  %v7639_v54 = vld [vmem:[%s12288_s1 + $0x244] sm:$0xf0] }
  0xaf   :  { %v8575_v2 = vpop.f32.mrf.mxu1  ;;  %v364_v5 = vpop.f32.mrf.mxu2  ;;  %1216 = vmatpush.bf16.msrb.mxu0 %v5825_v57  ;;  %v7622_v57 = vld [vmem:[%s12288_s1 + $0x1c4] sm:$0xf] }
  0xb0   :  { %v383_v18 = vpop.f32.mrf.mxu3  ;;  %v365_v61 = vadd.f32 %v364_v5, %v8573_v1  ;;  %v5877_v5 = vor.u32 %v7643_v4, %v5876_v3  ;;  %v5801_v4 = vor.u32 %v7622_v57, %v5798_v58 }
  0xb1   :  { %v384_v62 = vadd.f32 %v383_v18, %v8575_v2  ;;  %v5813_v2 = vor.u32 %v7627_v0, %v5812_v60  ;;  %v5878_v18 = vld [vmem:[%s12288_s1 + $0x268] sm:$0xf0]  ;;  %v5797_v60 = vor.u32 %v7623_v43, %v5796_v42 }
  0xb2   :  { %v5881_v28 = vor.u32 %v7642_v17, %v5878_v18  ;;  %1198 = vmatpush.bf16.msra.mxu3 %v5877_v5 }
  0xb3   :  { %1179 = vmatpush.bf16.msra.mxu2 %v5813_v2  ;;  %1217 = vmatpush.bf16.msrb.mxu0 %v5817_v14 }
  0xb4   :  { %1236 = vmatpush.bf16.msrb.mxu1 %v5881_v28 }
  0xb6   :  { %v8625_v31 = vpop.f32.mrf.mxu0 }
  0xb7   :  { %v8627_v44 = vpop.f32.mrf.mxu1  ;;  %v367_v51 = vpop.f32.mrf.mxu2 }
  0xb8   :  { %v386_v6 = vpop.f32.mrf.mxu3  ;;  %v368_v48 = vadd.f32 %v367_v51, %v8625_v31 }
  0xb9   :  { %v387_v31 = vadd.f32 %v386_v6, %v8627_v44  ;;  %v5861_v44 = vor.u32 %v7639_v54, %v5860_v47  ;;  %v5854_v47 = vld [vmem:[%s12288_s1 + $0x238] sm:$0xf0] }
  0xbe   :  { %v8673_v55 = vpop.f32.mrf.mxu0 }
  0xbf   :  { %v8675_v56 = vpop.f32.mrf.mxu1  ;;  %v369_v63 = vpop.f32.mrf.mxu2 }
  0xc0   :  { %v370_v18 = vadd.f32 %v369_v63, %v8673_v55  ;;  %v7621_v55 = vld [vmem:[%s12288_s1 + $0x1b4] sm:$0xf0] }
  0xc6   :  { %v523_v32 = vpop.f32.mrf.mxu0 }
  0xc7   :  { %v542_v40 = vpop.f32.mrf.mxu1  ;;  %v552_v36 = vadd.f32 %v523_v32, %v363_v24  ;;  %v7624_v32 = vld [vmem:[%s12288_s1 + $0x1d4] sm:$0xf] }
  0xc8   :  { %v553_v37 = vadd.f32 %v542_v40, %v382_v25  ;;  %v7625_v25 = vld [vmem:[%s12288_s1 + $0x1d4] sm:$0xf0]  ;;  %v5806_v40 = vld [vmem:[%s12288_s1 + $0x1d8] sm:$0xf0] }
  0xc9   :  { %v562_v15 = vmul.f32 %v8713_v19, %v552_v36  ;;  %v5805_v29 = vor.u32 %v7625_v25, %v5804_v21  ;;  %v7640_v36 = vld [vmem:[%s12288_s1 + $0x254] sm:$0xf]  ;;  %v388_v21 = vpop.f32.mrf.mxu3 }
  0xca   :  { %v563_v16 = vmul.f32 %v8715_v20, %v553_v37  ;;  %v5870_v37 = vld [vmem:[%s12288_s1 + $0x258] sm:$0xf0] }
  0xcb   :  { %v8769_v52 = vadd.f32 %v8738_v33, %v562_v15  ;;  %v5869_v15 = vor.u32 %v7641_v30, %v5868_v26  ;;  %v5873_v41 = vor.u32 %v7640_v36, %v5870_v37  ;;  %1180 = vmatpush.bf16.msra.mxu2 %v5805_v29  ;;  %v5788_v29 = vld [vmem:[%s12288_s1 + $0x1b0] sm:$0xf]  ;;  %v5790_v37 = vld [vmem:[%s12288_s1 + $0x1b8] sm:$0xf0] }
  0xcc   :  { %v8772_v53 = vadd.f32 %v8746_v38, %v563_v16  ;;  %v5809_v16 = vor.u32 %v7624_v32, %v5806_v40  ;;  %v5852_v40 = vld [vmem:[%s12288_s1 + $0x230] sm:$0xf] }
  0xcd   :  { %v580_v7 = vmax.f32 %v8769_v52, 0.0  ;;  %1199 = vmatpush.bf16.msra.mxu3 %v5869_v15  ;;  %1237 = vmatpush.bf16.msrb.mxu1 %v5873_v41  ;;  %v7636_v15 = vld [vmem:[%s12288_s1 + $0x234] sm:$0xf] }
  0xce   :  { %v581_v1 = vmax.f32 %v8772_v53, 0.0  ;;  %v525_v11 = vpop.f32.mrf.mxu0  ;;  %1218 = vmatpush.bf16.msrb.mxu0 %v5809_v16 }
  0xcf   :  { %v544_v13 = vpop.f32.mrf.mxu1  ;;  %v8813_v22 = vrot.slane %v580_v7, 7  ;;  %v554_v23 = vadd.f32 %v525_v11, %v365_v61  ;;  %v7638_v61 = vld [vmem:[%s12288_s1 + $0x244] sm:$0xf]  ;;  %1181 = vmatpush.bf16.msra.mxu2 %v5797_v60 }
  0xd0   :  { %v8817_v45 = vrot.slane %v581_v1, 7  ;;  %v555_v24 = vadd.f32 %v544_v13, %v384_v62  ;;  %v5862_v62 = vld [vmem:[%s12288_s1 + $0x248] sm:$0xf0] }
  0xd1   :  { %v620_v46 = vsel %vm29_vm0, 0.0, %v8813_v22  ;;  %v564_v34 = vmul.f32 %v8713_v19, %v554_v23  ;;  %v5865_v10 = vor.u32 %v7638_v61, %v5862_v62  ;;  %1200 = vmatpush.bf16.msra.mxu3 %v5861_v44 }
  0xd2   :  { %v621_v12 = vsel %vm29_vm0, 0.0, %v8817_v45  ;;  %v565_v35 = vmul.f32 %v8715_v20, %v555_v24  ;;  %1219 = vmatpush.bf16.msrb.mxu0 %v5801_v4 }
  0xd3   :  { %v8846_v39 = vpack.c.bf16 %v621_v12, %v620_v46  ;;  %v8859_v49 = vadd.f32 %v8738_v33, %v564_v34  ;;  %1238 = vmatpush.bf16.msrb.mxu1 %v5865_v10  ;;  %v7637_v46 = vld [vmem:[%s12288_s1 + $0x234] sm:$0xf0]  ;;  %v7620_v12 = vld [vmem:[%s12288_s1 + $0x1b4] sm:$0xf]  ;;  %v389_v34 = vadd.f32 %v388_v21, %v8675_v56 }
  0xd4   :  { %v8862_v50 = vadd.f32 %v8746_v38, %v565_v35  ;;  %v5789_v35 = vor.u32 %v7621_v55, %v5788_v29  ;;  %v5853_v36 = vor.u32 %v7637_v46, %v5852_v40  ;;  %v5793_v58 = vor.u32 %v7620_v12, %v5790_v37  ;;  %v5772_v55 = vld [vmem:[%s12288_s1 + $0x190] sm:$0xf]  ;;  %v7633_v12 = vld [vmem:[%s12288_s1 + $0x214] sm:$0xf0] }
  0xd5   :  { %v667_v51 = vshrl.u32 %v8846_v39, 16  ;;  %v670_v59 = vshll.u32 %v8846_v39, 16  ;;  %v582_v0 = vmax.f32 %v8859_v49, 0.0  ;;  %v5890_v16 = vrot.slane %v8846_v39, 9 }
  0xd6   :  { %v583_v3 = vmax.f32 %v8862_v50, 0.0  ;;  %v528_v6 = vpop.f32.mrf.mxu0  ;;  %1182 = vmatpush.bf16.msra.mxu2 %v5789_v35  ;;  %1201 = vmatpush.bf16.msra.mxu3 %v5853_v36 }
  0xd7   :  { %v547_v2 = vpop.f32.mrf.mxu1  ;;  %v669_v5 = vrot.slane %v667_v51, 4  ;;  %v672_v9 = vrot.slane %v670_v59, 5  ;;  %v598_v11 = vrot.slane %v582_v0, 7  ;;  %v556_v14 = vadd.f32 %v528_v6, %v368_v48  ;;  %v5780_v48 = vld [vmem:[%s12288_s1 + $0x1a0] sm:$0xf]  ;;  %1220 = vmatpush.bf16.msrb.mxu0 %v5793_v58 }
  0xd8   :  { %v600_v13 = vrot.slane %v583_v3, 7  ;;  %v557_v17 = vadd.f32 %v547_v2, %v387_v31  ;;  %v5857_v31 = vor.u32 %v7636_v15, %v5854_v47  ;;  %v7619_v51 = vld [vmem:[%s12288_s1 + $0x1a4] sm:$0xf0]  ;;  %v5844_v59 = vld [vmem:[%s12288_s1 + $0x220] sm:$0xf] }
  0xd9   :  { %v673_v23 = vor.u32 %v672_v9, %v669_v5  ;;  %v599_v24 = vsel %vm29_vm0, %v8813_v22, %v598_v11  ;;  %v624_v25 = vsel %vm29_vm0, %v598_v11, 0.0  ;;  %v566_v32 = vmul.f32 %v8713_v19, %v556_v14  ;;  %v7635_v6 = vld [vmem:[%s12288_s1 + $0x224] sm:$0xf0]  ;;  %v7618_v11 = vld [vmem:[%s12288_s1 + $0x1a4] sm:$0xf] }
  0xda   :  { %v601_v26 = vsel %vm29_vm0, %v8817_v45, %v600_v13  ;;  %v625_v28 = vsel %vm29_vm0, %v600_v13, 0.0  ;;  %v567_v45 = vmul.f32 %v8715_v20, %v557_v17  ;;  %v5781_v4 = vor.u32 %v7619_v51, %v5780_v48  ;;  %1239 = vmatpush.bf16.msrb.mxu1 %v5857_v31  ;;  %v5782_v13 = vld [vmem:[%s12288_s1 + $0x1a8] sm:$0xf0]  ;;  %v7615_v58 = vld [vmem:[%s12288_s1 + $0x184] sm:$0xf0] }
  0xdb   :  { %v8901_v30 = vpack.c.bf16 %v601_v26, %v599_v24  ;;  %v8903_v22 = vpack.c.bf16 %v625_v28, %v624_v25  ;;  %v8925_v41 = vadd.f32 %v8738_v33, %v566_v32  ;;  %v674_v43 = vrot.slane %v673_v23, 4  ;;  %v7634_v23 = vld [vmem:[%s12288_s1 + $0x224] sm:$0xf]  ;;  %v5846_v24 = vld [vmem:[%s12288_s1 + $0x228] sm:$0xf0] }
  0xdc   :  { %v8928_v42 = vadd.f32 %v8746_v38, %v567_v45  ;;  %v5845_v21 = vor.u32 %v7635_v6, %v5844_v59  ;;  %1183 = vmatpush.bf16.msra.mxu2 %v5781_v4  ;;  %v7617_v32 = vld [vmem:[%s12288_s1 + $0x194] sm:$0xf0]  ;;  %v5836_v45 = vld [vmem:[%s12288_s1 + $0x210] sm:$0xf]  ;;  %v5785_v46 = vor.u32 %v7618_v11, %v5782_v13  ;;  %v5849_v47 = vor.u32 %v7634_v23, %v5846_v24 }
  0xdd   :  { %v676_v56 = vshll.u32 %v8901_v30, 16  ;;  %v680_v54 = vshrl.u32 %v8901_v30, 16  ;;  %v686_v57 = vshll.u32 %v8903_v22, 16  ;;  %v584_v60 = vmax.f32 %v8925_v41, 0.0 }
  0xde   :  { %v585_v61 = vmax.f32 %v8928_v42, 0.0  ;;  %v530_v62 = vpop.f32.mrf.mxu0  ;;  %1202 = vmatpush.bf16.msra.mxu3 %v5845_v21  ;;  %1221 = vmatpush.bf16.msrb.mxu0 %v5785_v46  ;;  %v5773_v48 = vor.u32 %v7617_v32, %v5772_v55  ;;  %v5766_v21 = vld [vmem:[%s12288_s1 + $0x188] sm:$0xf0] }
  0xdf   :  { %v549_v63 = vpop.f32.mrf.mxu1  ;;  %v678_v44 = vrot.slane %v676_v56, 5  ;;  %v558_v2 = vadd.f32 %v530_v62, %v370_v18  ;;  %v682_v9 = vrot.slane %v680_v54, 4  ;;  %v688_v10 = vrot.slane %v686_v57, 5  ;;  %v7632_v56 = vld [vmem:[%s12288_s1 + $0x214] sm:$0xf]  ;;  %1240 = vmatpush.bf16.msrb.mxu1 %v5849_v47 }
  0xe0   :  { %v559_v5 = vadd.f32 %v549_v63, %v389_v34  ;;  %v602_v14 = vrot.slane %v584_v60, 7  ;;  %v8960_v17 = vrot.slane %v585_v61, 7  ;;  %v7616_v34 = vld [vmem:[%s12288_s1 + $0x194] sm:$0xf]  ;;  %v5837_v54 = vor.u32 %v7633_v12, %v5836_v45  ;;  %v5828_v63 = vld [vmem:[%s12288_s1 + $0x200] sm:$0xf]  ;;  %1184 = vmatpush.bf16.msra.mxu2 %v5773_v48 }
  0xe1   :  { %v679_v18 = vsel %vm8404_vm3, %v674_v43, %v678_v44  ;;  %v568_v25 = vmul.f32 %v8713_v19, %v558_v2  ;;  %v683_v28 = vor.u32 %v682_v9, %v678_v44  ;;  %v5774_v43 = vld [vmem:[%s12288_s1 + $0x198] sm:$0xf0]  ;;  %v7614_v9 = vld [vmem:[%s12288_s1 + $0x184] sm:$0xf]  ;;  %v5830_v55 = vld [vmem:[%s12288_s1 + $0x208] sm:$0xf0] }
  0xe2   :  { %v569_v26 = vmul.f32 %v8715_v20, %v559_v5  ;;  %v746_v29 = vunpack.c.l.b16 %v679_v18  ;;  %v622_v40 = vsel %vm29_vm0, 0.0, %v602_v14  ;;  %v623_v19 = vsel %vm29_vm0, 0.0, %v8960_v17  ;;  %v7631_v5 = vld [vmem:[%s12288_s1 + $0x204] sm:$0xf0]  ;;  %1203 = vmatpush.bf16.msra.mxu3 %v5837_v54 }
  0xe3   :  { %v747_v20 = vunpack.c.h.b16 %v679_v18  ;;  %v8990_v35 = vpack.c.bf16 %v623_v19, %v622_v40  ;;  %v8993_v36 = vadd.f32 %v8738_v33, %v568_v25  ;;  %v684_v15 = vrot.slane %v683_v28, 4  ;;  %v5838_v33 = vld [vmem:[%s12288_s1 + $0x218] sm:$0xf0]  ;;  %v7630_v28 = vld [vmem:[%s12288_s1 + $0x204] sm:$0xf] }
  0xe4   :  { %v8996_v37 = vadd.f32 %v8746_v38, %v569_v26  ;;  %v5777_v57 = vor.u32 %v7616_v34, %v5774_v43  ;;  %v5764_v38 = vld [vmem:[%s12288_s1 + $0x180] sm:$0xf]  ;;  %v5841_v2 = vor.u32 %v7632_v56, %v5838_v33  ;;  %v5829_v26 = vor.u32 %v7631_v5, %v5828_v63  ;;  %v6014_v43 = vld [vmem:[%s12288_s1 + $0x470] sm:$0xf] }
  0xe5   :  { %v586_v31 = vmax.f32 %v8993_v36, 0.0  ;;  %v689_v59 = vsel %vm8404_vm3, %v684_v15, %v688_v10  ;;  %v691_v62 = vshrl.u32 %v8990_v35, 16  ;;  %v694_v6 = vshll.u32 %v8990_v35, 16  ;;  %v5950_v15 = vld [vmem:[%s12288_s1 + $0x3f0] sm:$0xf] }
  0xe6   :  { %v587_v51 = vmax.f32 %v8996_v37, 0.0  ;;  %v748_v44 = vunpack.c.l.b16 %v689_v59  ;;  %v749_v4 = vunpack.c.h.b16 %v689_v59  ;;  %v5765_v18 = vor.u32 %v7615_v58, %v5764_v38  ;;  %1222 = vmatpush.bf16.msrb.mxu0 %v5777_v57  ;;  %1241 = vmatpush.bf16.msrb.mxu1 %v5841_v2  ;;  %v7709_v57 = vld [vmem:[%s12288_s1 + $0x474] sm:$0xf0]  ;;  %v7692_v38 = vld [vmem:[%s12288_s1 + $0x3f4] sm:$0xf] }
  0xe7   :  { %v604_v10 = vrot.slane %v586_v31, 7  ;;  %v693_v13 = vrot.slane %v691_v62, 4  ;;  %v696_v25 = vrot.slane %v694_v6, 5  ;;  %v1261_v19 = vrot.slane %v8903_v22, 5  ;;  %1204 = vmatpush.bf16.msra.mxu3 %v5829_v26  ;;  %v5952_v58 = vld [vmem:[%s12288_s1 + $0x3f8] sm:$0xf0] }
  0xe8   :  { %v606_v11 = vrot.slane %v587_v51, 7  ;;  %v754_v23 = vpack.c.b16 %v748_v44, %v746_v29  ;;  %v755_v24 = vpack.c.b16 %v749_v4, %v747_v20  ;;  %v5769_v34 = vor.u32 %v7614_v9, %v5766_v21  ;;  %1185 = vmatpush.bf16.msra.mxu2 %v5765_v18  ;;  %v7708_v59 = vld [vmem:[%s12288_s1 + $0x474] sm:$0xf]  ;;  %v6016_v6 = vld [vmem:[%s12288_s1 + $0x478] sm:$0xf0] }
  0xe9   :  { %v605_v32 = vsel %vm29_vm0, %v602_v14, %v604_v10  ;;  %v626_v45 = vsel %vm29_vm0, %v604_v10, 0.0  ;;  %v697_v12 = vor.u32 %v696_v25, %v693_v13  ;;  %v5833_v14 = vor.u32 %v7630_v28, %v5830_v55  ;;  %v5942_v9 = vld [vmem:[%s12288_s1 + $0x3e0] sm:$0xf]  ;;  %v7691_v10 = vld [vmem:[%s12288_s1 + $0x3e4] sm:$0xf0] }
  0xea   :  { %v607_v40 = vsel %vm29_vm0, %v8960_v17, %v606_v11  ;;  %v627_v29 = vsel %vm29_vm0, %v606_v11, 0.0  ;;  %930 = vmatmul.bf16.vlgmr.msrb.gmra.mxu2 %v754_v23  ;;  %949 = vmatmul.bf16.vlgmr.msrb.gmra.mxu3 %v755_v24  ;;  %v7693_v17 = vld [vmem:[%s12288_s1 + $0x3f4] sm:$0xf0]  ;;  %v6015_v4 = vor.u32 %v7709_v57, %v6014_v43  ;;  %v5955_v2 = vor.u32 %v7692_v38, %v5952_v58  ;;  %v6006_v11 = vld [vmem:[%s12288_s1 + $0x460] sm:$0xf] }
  0xeb   :  { %v9047_v20 = vpack.c.bf16 %v607_v40, %v605_v32  ;;  %v9049_v46 = vpack.c.bf16 %v627_v29, %v626_v45  ;;  %968 = vmatmul.bf16.vlgmr.msra.gmra.mxu0 %v754_v23  ;;  %987 = vmatmul.bf16.vlgmr.msra.gmra.mxu1 %v755_v24  ;;  %v698_v56 = vrot.slane %v697_v12, 4  ;;  %v5951_v33 = vor.u32 %v7693_v17, %v5950_v15  ;;  %v7707_v23 = vld [vmem:[%s12288_s1 + $0x464] sm:$0xf0]  ;;  %v7690_v24 = vld [vmem:[%s12288_s1 + $0x3e4] sm:$0xf] }
  0xec   :  { %1223 = vmatpush.bf16.msrb.mxu0 %v5769_v34  ;;  %v6019_v5 = vor.u32 %v7708_v59, %v6016_v6  ;;  %1242 = vmatpush.bf16.msrb.mxu1 %v5833_v14  ;;  %v5943_v21 = vor.u32 %v7691_v10, %v5942_v9  ;;  %v5944_v25 = vld [vmem:[%s12288_s1 + $0x3e8] sm:$0xf0]  ;;  %v6007_v26 = vor.u32 %v7707_v23, %v6006_v11  ;;  %v7706_v55 = vld [vmem:[%s12288_s1 + $0x464] sm:$0xf]  ;;  %v5934_v45 = vld [vmem:[%s12288_s1 + $0x3d0] sm:$0xf] }
  0xed   :  { %v700_v47 = vshll.u32 %v9047_v20, 16  ;;  %v704_v48 = vshrl.u32 %v9047_v20, 16  ;;  %v710_v54 = vshll.u32 %v9049_v46, 16  ;;  %1478 = vmatpush.bf16.msrb.mxu2 %v5951_v33  ;;  %1497 = vmatpush.bf16.msrb.mxu3 %v6015_v4  ;;  %v5947_v28 = vor.u32 %v7690_v24, %v5944_v25  ;;  %v6008_v32 = vld [vmem:[%s12288_s1 + $0x468] sm:$0xf0] }
  0xee   :  { %v6011_v29 = vor.u32 %v7706_v55, %v6008_v32  ;;  %v7689_v12 = vld [vmem:[%s12288_s1 + $0x3d4] sm:$0xf0]  ;;  %v5998_v34 = vld [vmem:[%s12288_s1 + $0x450] sm:$0xf]  ;;  %v1258_v14 = vrot.slane %v8901_v30, 5  ;;  %v1265_v55 = vrot.slane %v9047_v20, 5 }
  0xef   :  { %v702_v62 = vrot.slane %v700_v47, 5  ;;  %v706_v63 = vrot.slane %v704_v48, 4  ;;  %v712_v44 = vrot.slane %v710_v54, 5  ;;  %v5935_v17 = vor.u32 %v7689_v12, %v5934_v45  ;;  %v7705_v43 = vld [vmem:[%s12288_s1 + $0x454] sm:$0xf0] }
  0xf0   :  { %1516 = vmatpush.bf16.msra.mxu0 %v5955_v2  ;;  %1535 = vmatpush.bf16.msra.mxu1 %v6019_v5  ;;  %v5936_v47 = vld [vmem:[%s12288_s1 + $0x3d8] sm:$0xf0]  ;;  %v5999_v57 = vor.u32 %v7705_v43, %v5998_v34  ;;  %v7704_v33 = vld [vmem:[%s12288_s1 + $0x454] sm:$0xf]  ;;  %v5926_v58 = vld [vmem:[%s12288_s1 + $0x3c0] sm:$0xf]  ;;  %v1259_v59 = vsel %vm8506_vm6, %v5890_v16, %v1258_v14 }
  0xf1   :  { %v703_v13 = vsel %vm8404_vm3, %v698_v56, %v702_v62  ;;  %v707_v18 = vor.u32 %v706_v63, %v702_v62  ;;  %1479 = vmatpush.bf16.msrb.mxu2 %v5943_v21  ;;  %v7688_v56 = vld [vmem:[%s12288_s1 + $0x3d4] sm:$0xf]  ;;  %1498 = vmatpush.bf16.msrb.mxu3 %v6007_v26  ;;  %v6000_v38 = vld [vmem:[%s12288_s1 + $0x458] sm:$0xf0]  ;;  %v7687_v6 = vld [vmem:[%s12288_s1 + $0x3c4] sm:$0xf0]  ;;  %v1302_v11 = vunpack.c.l.b16 %v1259_v59  ;;  %v1303_v26 = vunpack.c.h.b16 %v1259_v59 }
  0xf2   :  { %v750_v15 = vunpack.c.l.b16 %v703_v13  ;;  %v751_v54 = vunpack.c.h.b16 %v703_v13  ;;  %v6003_v4 = vor.u32 %v7704_v33, %v6000_v38  ;;  %v5990_v2 = vld [vmem:[%s12288_s1 + $0x440] sm:$0xf]  ;;  %v7703_v5 = vld [vmem:[%s12288_s1 + $0x444] sm:$0xf0]  ;;  %v7686_v16 = vld [vmem:[%s12288_s1 + $0x3c4] sm:$0xf]  ;;  %v5927_v21 = vor.u32 %v7687_v6, %v5926_v58 }
  0xf3   :  { %v708_v40 = vrot.slane %v707_v18, 4  ;;  %v5928_v9 = vld [vmem:[%s12288_s1 + $0x3c8] sm:$0xf0]  ;;  %v7702_v10 = vld [vmem:[%s12288_s1 + $0x444] sm:$0xf]  ;;  %v1260_v24 = vrot.slane %v1258_v14, 4  ;;  %v5991_v25 = vor.u32 %v7703_v5, %v5990_v2 }
  0xf4   :  { %1517 = vmatpush.bf16.msra.mxu0 %v5947_v28  ;;  %1536 = vmatpush.bf16.msra.mxu1 %v6011_v29  ;;  %v5992_v23 = vld [vmem:[%s12288_s1 + $0x448] sm:$0xf0]  ;;  %v5891_v28 = vrot.slane %v8990_v35, 9  ;;  %v5931_v32 = vor.u32 %v7686_v16, %v5928_v9  ;;  %v1268_v29 = vrot.slane %v9049_v46, 5  ;;  %v7685_v22 = vld [vmem:[%s12288_s1 + $0x3b4] sm:$0xf0] }
  0xf5   :  { %v713_v48 = vsel %vm8404_vm3, %v708_v40, %v712_v44  ;;  %v5939_v44 = vor.u32 %v7688_v56, %v5936_v47  ;;  %1480 = vmatpush.bf16.msrb.mxu2 %v5935_v17  ;;  %1499 = vmatpush.bf16.msrb.mxu3 %v5999_v57  ;;  %v5995_v45 = vor.u32 %v7702_v10, %v5992_v23  ;;  %v5918_v17 = vld [vmem:[%s12288_s1 + $0x3b0] sm:$0xf]  ;;  %v7701_v43 = vld [vmem:[%s12288_s1 + $0x434] sm:$0xf0]  ;;  %v7684_v56 = vld [vmem:[%s12288_s1 + $0x3b4] sm:$0xf] }
  0xf6   :  { %v752_v62 = vunpack.c.l.b16 %v713_v48  ;;  %v753_v63 = vunpack.c.h.b16 %v713_v48  ;;  %v1262_v40 = vsel %vm8506_vm6, %v1260_v24, %v1261_v19  ;;  %v1266_v14 = vsel %vm8506_vm6, %v5891_v28, %v1265_v55  ;;  %v5982_v19 = vld [vmem:[%s12288_s1 + $0x430] sm:$0xf]  ;;  %v5920_v47 = vld [vmem:[%s12288_s1 + $0x3b8] sm:$0xf0]  ;;  %v7700_v38 = vld [vmem:[%s12288_s1 + $0x434] sm:$0xf] }
  0xf7   :  { %v1304_v12 = vunpack.c.l.b16 %v1262_v40  ;;  %v1305_v34 = vunpack.c.h.b16 %v1262_v40  ;;  %v5919_v46 = vor.u32 %v7685_v22, %v5918_v17  ;;  %v5983_v57 = vor.u32 %v7701_v43, %v5982_v19  ;;  %v5984_v58 = vld [vmem:[%s12288_s1 + $0x438] sm:$0xf0]  ;;  %v5910_v59 = vld [vmem:[%s12288_s1 + $0x3a0] sm:$0xf]  ;;  %v7699_v2 = vld [vmem:[%s12288_s1 + $0x424] sm:$0xf0] }
  0xf8   :  { %v756_v13 = vpack.c.b16 %v752_v62, %v750_v15  ;;  %v757_v18 = vpack.c.b16 %v753_v63, %v751_v54  ;;  %1518 = vmatpush.bf16.msra.mxu0 %v5939_v44  ;;  %1537 = vmatpush.bf16.msra.mxu1 %v6003_v4  ;;  %v1267_v15 = vrot.slane %v1265_v55, 4  ;;  %v5923_v33 = vor.u32 %v7684_v56, %v5920_v47  ;;  %v7683_v4 = vld [vmem:[%s12288_s1 + $0x3a4] sm:$0xf0]  ;;  %v5974_v6 = vld [vmem:[%s12288_s1 + $0x420] sm:$0xf] }
  0xf9   :  { %1481 = vmatpush.bf16.msrb.mxu2 %v5927_v21  ;;  %1500 = vmatpush.bf16.msrb.mxu3 %v5991_v25  ;;  %v9186_v48 = vpack.c.b16 %v1304_v12, %v1302_v11  ;;  %v9188_v54 = vpack.c.b16 %v1305_v34, %v1303_v26  ;;  %v1306_v63 = vunpack.c.l.b16 %v1266_v14  ;;  %v5987_v44 = vor.u32 %v7700_v38, %v5984_v58  ;;  %v7682_v11 = vld [vmem:[%s12288_s1 + $0x3a4] sm:$0xf]  ;;  %v5976_v23 = vld [vmem:[%s12288_s1 + $0x428] sm:$0xf0]  ;;  %v5902_v24 = vld [vmem:[%s12288_s1 + $0x390] sm:$0xf] }
  0xfa   :  { %935 = vmatmul.bf16.gmra.mxu2 %v756_v13  ;;  %954 = vmatmul.bf16.gmra.mxu3 %v757_v18  ;;  %v1269_v62 = vsel %vm8506_vm6, %v1267_v15, %v1268_v29  ;;  %v1307_v16 = vunpack.c.h.b16 %v1266_v14  ;;  %v5911_v10 = vor.u32 %v7683_v4, %v5910_v59  ;;  %v5975_v21 = vor.u32 %v7699_v2, %v5974_v6  ;;  %v7681_v25 = vld [vmem:[%s12288_s1 + $0x394] sm:$0xf0]  ;;  %v7680_v29 = vld [vmem:[%s12288_s1 + $0x394] sm:$0xf]  ;;  %v5904_v12 = vld [vmem:[%s12288_s1 + $0x398] sm:$0xf0] }
  0xfb   :  { %973 = vmatmul.bf16.gmra.mxu0 %v756_v13  ;;  %992 = vmatmul.bf16.gmra.mxu1 %v757_v18  ;;  %v1308_v5 = vunpack.c.l.b16 %v1269_v62  ;;  %v1309_v9 = vunpack.c.h.b16 %v1269_v62  ;;  %v5912_v13 = vld [vmem:[%s12288_s1 + $0x3a8] sm:$0xf0]  ;;  %v7698_v18 = vld [vmem:[%s12288_s1 + $0x424] sm:$0xf]  ;;  %v7697_v40 = vld [vmem:[%s12288_s1 + $0x414] sm:$0xf0]  ;;  %v1004_v15 = vunpack.c.l.b16 %v8901_v30  ;;  %v1005_v17 = vunpack.c.h.b16 %v8901_v30 }
  0xfc   :  { %1519 = vmatpush.bf16.msra.mxu0 %v5931_v32  ;;  %1538 = vmatpush.bf16.msra.mxu1 %v5995_v45  ;;  %v5915_v55 = vor.u32 %v7682_v11, %v5912_v13  ;;  %v5979_v32 = vor.u32 %v7698_v18, %v5976_v23  ;;  %v5966_v45 = vld [vmem:[%s12288_s1 + $0x410] sm:$0xf]  ;;  %v7696_v34 = vld [vmem:[%s12288_s1 + $0x414] sm:$0xf]  ;;  %v5968_v14 = vld [vmem:[%s12288_s1 + $0x418] sm:$0xf0]  ;;  %v5903_v22 = vor.u32 %v7681_v25, %v5902_v24  ;;  %v1002_v56 = vunpack.c.l.b16 %v8846_v39 }
  0xfd   :  { %1482 = vmatpush.bf16.msrb.mxu2 %v5919_v46  ;;  %1501 = vmatpush.bf16.msrb.mxu3 %v5983_v57  ;;  %v9228_v26 = vpack.c.b16 %v1308_v5, %v1306_v63  ;;  %v9230_v28 = vpack.c.b16 %v1309_v9, %v1307_v16  ;;  %v5967_v19 = vor.u32 %v7697_v40, %v5966_v45  ;;  %v5894_v46 = vld [vmem:[%s12288_s1 + $0x380] sm:$0xf]  ;;  %v7679_v43 = vld [vmem:[%s12288_s1 + $0x384] sm:$0xf0]  ;;  %v7678_v38 = vld [vmem:[%s12288_s1 + $0x384] sm:$0xf]  ;;  %v1003_v58 = vunpack.c.h.b16 %v8846_v39 }
  0xfe   :  { %v5907_v47 = vor.u32 %v7680_v29, %v5904_v12  ;;  %v5971_v57 = vor.u32 %v7696_v34, %v5968_v14  ;;  %v5958_v30 = vld [vmem:[%s12288_s1 + $0x400] sm:$0xf]  ;;  %v5896_v59 = vld [vmem:[%s12288_s1 + $0x388] sm:$0xf0]  ;;  %v7694_v62 = vld [vmem:[%s12288_s1 + $0x404] sm:$0xf]  ;;  %v5895_v6 = vor.u32 %v7679_v43, %v5894_v46  ;;  %v1008_v16 = vunpack.c.l.b16 %v9047_v20 }
  0xff   :  { %v5960_v63 = vld [vmem:[%s12288_s1 + $0x408] sm:$0xf0]  ;;  %v1011_v4 = vpack.c.b16 %v1005_v17, %v1003_v58  ;;  %v5899_v39 = vor.u32 %v7678_v38, %v5896_v59  ;;  %v1009_v9 = vunpack.c.h.b16 %v9047_v20  ;;  %v1007_v11 = vunpack.c.h.b16 %v8990_v35  ;;  %v7724_v37 = vld [vmem:[%s12288_s1 + $0x4f4] sm:$0xf] }
 0x100   :  { %1520 = vmatpush.bf16.msra.mxu0 %v5923_v33  ;;  %1539 = vmatpush.bf16.msra.mxu1 %v5987_v44  ;;  %v7695_v33 = vld [vmem:[%s12288_s1 + $0x404] sm:$0xf0]  ;;  %v1010_v44 = vpack.c.b16 %v1004_v15, %v1002_v56  ;;  %v5963_v5 = vor.u32 %v7694_v62, %v5960_v63  ;;  %v6056_v36 = vld [vmem:[%s12288_s1 + $0x548] sm:$0xf0] }
 0x101   :  { %1483 = vmatpush.bf16.msrb.mxu2 %v5911_v10  ;;  %1502 = vmatpush.bf16.msrb.mxu3 %v5975_v21  ;;  %v5959_v2 = vor.u32 %v7695_v33, %v5958_v30  ;;  %v1006_v10 = vunpack.c.l.b16 %v8990_v35  ;;  %v1013_v18 = vpack.c.b16 %v1009_v9, %v1007_v11  ;;  %v8094_v9 = vld [vmem:[%s12290_s2 + $0x8] sm:$0xff] }
 0x103   :  { %v1012_v13 = vpack.c.b16 %v1008_v16, %v1006_v10  ;;  %v9297_v10 = vperm.slane %v8094_v9, 2 }
 0x104   :  { %1521 = vmatpush.bf16.msra.mxu0 %v5915_v55  ;;  %1540 = vmatpush.bf16.msra.mxu1 %v5979_v32 }
 0x105   :  { %1484 = vmatpush.bf16.msrb.mxu2 %v5903_v22  ;;  %1503 = vmatpush.bf16.msrb.mxu3 %v5967_v19 }
 0x108   :  { %1522 = vmatpush.bf16.msra.mxu0 %v5907_v47  ;;  %1541 = vmatpush.bf16.msra.mxu1 %v5971_v57 }
 0x109   :  { %1485 = vmatpush.bf16.msrb.mxu2 %v5895_v6  ;;  %1504 = vmatpush.bf16.msrb.mxu3 %v5959_v2 }
 0x10a   :  { %1186 = vmatmul.bf16.vlgmr.msra.gmra.mxu2 %v1010_v44  ;;  %1205 = vmatmul.bf16.vlgmr.msra.gmra.mxu3 %v1011_v4 }
 0x10b   :  { %1224 = vmatmul.bf16.vlgmr.msrb.gmra.mxu0 %v1010_v44  ;;  %1243 = vmatmul.bf16.vlgmr.msrb.gmra.mxu1 %v1011_v4 }
 0x10c   :  { %1523 = vmatpush.bf16.msra.mxu0 %v5899_v39  ;;  %1542 = vmatpush.bf16.msra.mxu1 %v5963_v5 }
 0x11a   :  { %1191 = vmatmul.bf16.gmra.mxu2 %v1012_v13  ;;  %1210 = vmatmul.bf16.gmra.mxu3 %v1013_v18 }
 0x11b   :  { %1229 = vmatmul.bf16.gmra.mxu0 %v1012_v13  ;;  %1248 = vmatmul.bf16.gmra.mxu1 %v1013_v18 }
 0x12a   :  { %1486 = vmatmul.bf16.vlgmr.msrb.gmra.mxu2 %v9186_v48  ;;  %1505 = vmatmul.bf16.vlgmr.msrb.gmra.mxu3 %v9188_v54 }
 0x12b   :  { %1524 = vmatmul.bf16.vlgmr.msra.gmra.mxu0 %v9186_v48  ;;  %1543 = vmatmul.bf16.vlgmr.msra.gmra.mxu1 %v9188_v54 }
 0x13a   :  { %1491 = vmatmul.bf16.gmra.mxu2 %v9228_v26  ;;  %1510 = vmatmul.bf16.gmra.mxu3 %v9230_v28 }
 0x13b   :  { %1529 = vmatmul.bf16.gmra.mxu0 %v9228_v26  ;;  %1548 = vmatmul.bf16.gmra.mxu1 %v9230_v28 }
 0x168   :  { %v969_v35 = vpop.f32.mrf.mxu0  ;;  %v988_v20 = vpop.f32.mrf.mxu1 }
 0x169   :  { %v989_v21 = vadd.f32 %v988_v20, %v969_v35  ;;  %v9299_v35 = vperm.slane %v8094_v9, 3 }
 0x16d   :  { %v931_v23 = vpop.f32.mrf.mxu2  ;;  %v950_v24 = vpop.f32.mrf.mxu3 }
 0x16e   :  { %v951_v25 = vadd.f32 %v950_v24, %v931_v23 }
 0x170   :  { %v971_v55 = vpop.f32.mrf.mxu0  ;;  %v990_v32 = vpop.f32.mrf.mxu1 }
 0x171   :  { %v991_v13 = vadd.f32 %v990_v32, %v971_v55 }
 0x175   :  { %v933_v45 = vpop.f32.mrf.mxu2  ;;  %v952_v48 = vpop.f32.mrf.mxu3 }
 0x178   :  { %v974_v40 = vpop.f32.mrf.mxu0  ;;  %v993_v54 = vpop.f32.mrf.mxu1 }
 0x179   :  { %v994_v29 = vadd.f32 %v993_v54, %v974_v40 }
 0x17d   :  { %v936_v12 = vpop.f32.mrf.mxu2  ;;  %v955_v34 = vpop.f32.mrf.mxu3 }
 0x17e   :  { %v956_v14 = vadd.f32 %v955_v34, %v936_v12  ;;  %v8095_v12 = vld [vmem:[%s12290_s2] sm:$0xff] }
 0x17f   :  { %v9305_v34 = vperm.slane %v8095_v12, 2  ;;  %v9308_v32 = vperm.slane %v8095_v12, 3 }
 0x180   :  { %v976_v15 = vpop.f32.mrf.mxu0  ;;  %v995_v26 = vpop.f32.mrf.mxu1 }
 0x185   :  { %v938_v17 = vpop.f32.mrf.mxu2  ;;  %v957_v28 = vpop.f32.mrf.mxu3 }
 0x188   :  { %v1225_v22 = vpop.f32.mrf.mxu0  ;;  %v1244_v19 = vpop.f32.mrf.mxu1 }
 0x189   :  { %v1226_v44 = vadd.f32 %v1225_v22, %v989_v21  ;;  %v953_v22 = vadd.f32 %v952_v48, %v933_v45 }
 0x18b   :  { %v1245_v5 = vadd.f32 %v1244_v19, %v1226_v44 }
 0x18d   :  { %v1187_v46 = vpop.f32.mrf.mxu2  ;;  %v1206_v43 = vpop.f32.mrf.mxu3 }
 0x18e   :  { %v1188_v11 = vadd.f32 %v1187_v46, %v951_v25 }
 0x190   :  { %v1227_v56 = vpop.f32.mrf.mxu0  ;;  %v1246_v47 = vpop.f32.mrf.mxu1  ;;  %v1207_v40 = vadd.f32 %v1206_v43, %v1188_v11 }
 0x191   :  { %v1228_v20 = vadd.f32 %v1227_v56, %v991_v13 }
 0x193   :  { %v1247_v56 = vadd.f32 %v1246_v47, %v1228_v20  ;;  %v996_v20 = vadd.f32 %v995_v26, %v976_v15 }
 0x195   :  { %v1189_v57 = vpop.f32.mrf.mxu2  ;;  %v1208_v30 = vpop.f32.mrf.mxu3 }
 0x198   :  { %v1230_v33 = vpop.f32.mrf.mxu0  ;;  %v1249_v38 = vpop.f32.mrf.mxu1 }
 0x199   :  { %v1231_v9 = vadd.f32 %v1230_v33, %v994_v29 }
 0x19d   :  { %v1192_v58 = vpop.f32.mrf.mxu2  ;;  %v1211_v59 = vpop.f32.mrf.mxu3 }
 0x1a0   :  { %v1232_v62 = vpop.f32.mrf.mxu0  ;;  %v9290_v63 = vpop.f32.mrf.mxu1 }
 0x1a1   :  { %v1233_v52 = vadd.f32 %v1232_v62, %v996_v20 }
 0x1a5   :  { %v1194_v4 = vpop.f32.mrf.mxu2  ;;  %v9292_v6 = vpop.f32.mrf.mxu3 }
 0x1a8   :  { %v1525_v2 = vpop.f32.mrf.mxu0  ;;  %v1544_v39 = vpop.f32.mrf.mxu1 }
 0x1a9   :  { %v1545_v16 = vadd.f32 %v1544_v39, %v1525_v2  ;;  %v1190_v2 = vadd.f32 %v1189_v57, %v953_v22  ;;  %v1193_v57 = vadd.f32 %v1192_v58, %v956_v14 }
 0x1ab   :  { %v1555_v18 = vadd.f32 %v1545_v16, %v1245_v5  ;;  %v1209_v13 = vadd.f32 %v1208_v30, %v1190_v2  ;;  %v1212_v22 = vadd.f32 %v1211_v59, %v1193_v57 }
 0x1ad   :  { %v1565_v21 = vmul.f32 %v9297_v10, %v1555_v18  ;;  %v1487_v23 = vpop.f32.mrf.mxu2  ;;  %v1506_v24 = vpop.f32.mrf.mxu3 }
 0x1ae   :  { %v1507_v54 = vadd.f32 %v1506_v24, %v1487_v23 }
 0x1af   :  { %v1575_v25 = vadd.f32 %v9299_v35, %v1565_v21  ;;  %v958_v21 = vadd.f32 %v957_v28, %v938_v17 }
 0x1b0   :  { %v1554_v55 = vadd.f32 %v1507_v54, %v1207_v40  ;;  %v1527_v19 = vpop.f32.mrf.mxu0  ;;  %v1546_v46 = vpop.f32.mrf.mxu1  ;;  %v1250_v54 = vadd.f32 %v1249_v38, %v1231_v9 }
 0x1b1   :  { %v1547_v44 = vadd.f32 %v1546_v46, %v1527_v19  ;;  %v1583_v5 = vadd.f32 %v1575_v25, %v581_v1 }
 0x1b2   :  { %v1564_v43 = vmul.f32 %v9305_v34, %v1554_v55 }
 0x1b3   :  { %v1557_v39 = vadd.f32 %v1547_v44, %v1247_v56  ;;  %v1591_v23 = vmax.f32 %v1583_v5, 0.0  ;;  %v6078_v44 = vld [vmem:[%s12288_s1 + $0x570] sm:$0xf] }
 0x1b4   :  { %v1574_v16 = vadd.f32 %v9308_v32, %v1564_v43 }
 0x1b5   :  { %v1567_v45 = vmul.f32 %v9297_v10, %v1557_v39  ;;  %v1489_v48 = vpop.f32.mrf.mxu2  ;;  %v1508_v11 = vpop.f32.mrf.mxu3  ;;  %v7741_v39 = vld [vmem:[%s12288_s1 + $0x574] sm:$0xf0] }
 0x1b6   :  { %v1582_v18 = vadd.f32 %v1574_v16, %v580_v7  ;;  %v1509_v47 = vadd.f32 %v1508_v11, %v1489_v48  ;;  %v1195_v7 = vadd.f32 %v1194_v4, %v958_v21  ;;  %v6079_v11 = vor.u32 %v7741_v39, %v6078_v44  ;;  %v6080_v39 = vld [vmem:[%s12288_s1 + $0x578] sm:$0xf0] }
 0x1b7   :  { %v1577_v29 = vadd.f32 %v9299_v35, %v1567_v45 }
 0x1b8   :  { %v1590_v24 = vmax.f32 %v1582_v18, 0.0  ;;  %v1556_v40 = vadd.f32 %v1509_v47, %v1209_v13  ;;  %v1530_v53 = vpop.f32.mrf.mxu0  ;;  %v1549_v1 = vpop.f32.mrf.mxu1  ;;  %1952 = vmatpush.bf16.msra.mxu2 %v6079_v11 }
 0x1b9   :  { %v1550_v33 = vadd.f32 %v1549_v1, %v1530_v53  ;;  %v1585_v38 = vadd.f32 %v1577_v29, %v583_v3  ;;  %v1252_v1 = vadd.f32 %v9290_v63, %v1233_v52 }
 0x1ba   :  { %v1598_v12 = vmax.f32 %v1590_v24, %v1591_v23  ;;  %v1566_v30 = vmul.f32 %v9305_v34, %v1556_v40 }
 0x1bb   :  { %v1559_v25 = vadd.f32 %v1550_v33, %v1250_v54  ;;  %v1593_v57 = vmax.f32 %v1585_v38, 0.0  ;;  %v1214_v54 = vadd.f32 %v9292_v6, %v1195_v7 }
 0x1bc   :  { %v1606_v15 = vrot.slane %v1598_v12, 2  ;;  %v1607_v14 = vrot.slane %v1598_v12, 4  ;;  %v1608_v26 = vrot.slane %v1598_v12, 6  ;;  %v1631_v17 = vsel %vm1630_vm7, %v1598_v12, -inf }
 0x1bd   :  { %v1632_v28 = vrot.slane %v1631_v17, 4  ;;  %v1576_v58 = vadd.f32 %v9308_v32, %v1566_v30  ;;  %v1569_v55 = vmul.f32 %v9297_v10, %v1559_v25  ;;  %v1492_v19 = vpop.f32.mrf.mxu2  ;;  %v1511_v46 = vpop.f32.mrf.mxu3 }
 0x1be   :  { %v1638_v59 = vsel %vm1630_vm7, %v1606_v15, -inf  ;;  %v1645_v62 = vsel %vm1630_vm7, %v1607_v14, -inf  ;;  %v1652_v4 = vsel %vm1630_vm7, %v1608_v26, -inf  ;;  %v1512_v56 = vadd.f32 %v1511_v46, %v1492_v19 }
 0x1bf   :  { %v1633_v2 = vmax.f32 %v1631_v17, %v1632_v28  ;;  %v1639_v50 = vrot.slane %v1638_v59, 4  ;;  %v1646_v3 = vrot.slane %v1645_v62, 4  ;;  %v1653_v43 = vrot.slane %v1652_v4, 4 }
 0x1c0   :  { %v1584_v5 = vadd.f32 %v1576_v58, %v582_v0  ;;  %v1579_v16 = vadd.f32 %v9299_v35, %v1569_v55  ;;  %v1558_v9 = vadd.f32 %v1512_v56, %v1212_v22  ;;  %v1532_v45 = vpop.f32.mrf.mxu0  ;;  %v1551_v48 = vpop.f32.mrf.mxu1 }
 0x1c1   :  { %v1634_v13 = vrot.slane %v1633_v2, 2  ;;  %v1640_v18 = vmax.f32 %v1638_v59, %v1639_v50  ;;  %v1647_v47 = vmax.f32 %v1645_v62, %v1646_v3  ;;  %v1654_v20 = vmax.f32 %v1652_v4, %v1653_v43  ;;  %v7740_v43 = vld [vmem:[%s12288_s1 + $0x574] sm:$0xf] }
 0x1c2   :  { %v1592_v21 = vmax.f32 %v1584_v5, 0.0  ;;  %v1568_v23 = vmul.f32 %v9305_v34, %v1558_v9  ;;  %v1552_v24 = vadd.f32 %v1551_v48, %v1532_v45  ;;  %v1587_v33 = vadd.f32 %v1579_v16, %v585_v61  ;;  %v6070_v9 = vld [vmem:[%s12288_s1 + $0x560] sm:$0xf] }
 0x1c3   :  { %v1635_v40 = vmax.f32 %v1633_v2, %v1634_v13  ;;  %v1641_v53 = vrot.slane %v1640_v18, 2  ;;  %v1648_v49 = vrot.slane %v1647_v47, 2  ;;  %v1655_v0 = vrot.slane %v1654_v20, 2 }
 0x1c4   :  { %v1599_v29 = vmax.f32 %v1592_v21, %v1593_v57  ;;  %v1578_v25 = vadd.f32 %v9308_v32, %v1568_v23  ;;  %v1561_v63 = vadd.f32 %v1552_v24, %v1252_v1  ;;  %v1595_v50 = vmax.f32 %v1587_v33, 0.0  ;;  %v7725_v33 = vld [vmem:[%s12288_s1 + $0x4f4] sm:$0xf0] }
 0x1c5   :  { %v1642_v12 = vmax.f32 %v1640_v18, %v1641_v53  ;;  %v1649_v30 = vmax.f32 %v1647_v47, %v1648_v49  ;;  %v1656_v22 = vmax.f32 %v1654_v20, %v1655_v0  ;;  %v1636_v15 = vrot.slane %v1635_v40, 1  ;;  %v1494_v4 = vpop.f32.mrf.mxu2  ;;  %v1513_v56 = vpop.f32.mrf.mxu3  ;;  %v6072_v53 = vld [vmem:[%s12288_s1 + $0x568] sm:$0xf0] }
 0x1c6   :  { %v1609_v14 = vrot.slane %v1599_v29, 2  ;;  %v1610_v26 = vrot.slane %v1599_v29, 4  ;;  %v1659_v17 = vsel %vm1630_vm7, %v1599_v29, -inf  ;;  %v1611_v58 = vrot.slane %v1599_v29, 6 }
 0x1c7   :  { %v1643_v28 = vrot.slane %v1642_v12, 1  ;;  %v1650_v38 = vrot.slane %v1649_v30, 1  ;;  %v1657_v52 = vrot.slane %v1656_v22, 1  ;;  %v1660_v6 = vrot.slane %v1659_v17, 4 }
 0x1c8   :  { %v1666_v7 = vsel %vm1630_vm7, %v1609_v14, -inf  ;;  %v1673_v42 = vsel %vm1630_vm7, %v1610_v26, -inf  ;;  %v1637_v19 = vmax.f32 %v1635_v40, %v1636_v15  ;;  %v1586_v62 = vadd.f32 %v1578_v25, %v584_v60  ;;  %v6062_v15 = vld [vmem:[%s12288_s1 + $0x550] sm:$0xf]  ;;  %v7737_v14 = vld [vmem:[%s12288_s1 + $0x554] sm:$0xf0] }
 0x1c9   :  { %v1644_v61 = vmax.f32 %v1642_v12, %v1643_v28  ;;  %v1667_v55 = vrot.slane %v1666_v7, 4  ;;  %v1661_v46 = vmax.f32 %v1659_v17, %v1660_v6  ;;  %v1674_v59 = vrot.slane %v1673_v42, 4 }
 0x1ca   :  { %v9347_v44 = vmax.f32 %v1649_v30, %v1650_v38  ;;  %v9350_v2 = vsel %vm1630_vm7, %v1611_v58, -inf  ;;  %v1571_v3 = vmul.f32 %v9297_v10, %v1561_v63  ;;  %v9359_v41 = vmax.f32 %v1656_v22, %v1657_v52  ;;  %v7739_v10 = vld [vmem:[%s12288_s1 + $0x564] sm:$0xf0]  ;;  %v7736_v38 = vld [vmem:[%s12288_s1 + $0x554] sm:$0xf] }
 0x1cb   :  { %v1760_v60 = vsel %vm1759_vm8, %v1644_v61, %v1637_v19  ;;  %v1662_v5 = vrot.slane %v1661_v46, 2  ;;  %v1594_v16 = vmax.f32 %v1586_v62, 0.0  ;;  %v9368_v45 = vmax.f32 %v1666_v7, %v1667_v55  ;;  %v6064_v58 = vld [vmem:[%s12288_s1 + $0x558] sm:$0xf0]  ;;  %v7722_v62 = vld [vmem:[%s12288_s1 + $0x4e4] sm:$0xf] }
 0x1cc   :  { %v9370_v48 = vmax.f32 %v1673_v42, %v1674_v59  ;;  %v1581_v11 = vadd.f32 %v9299_v35, %v1571_v3  ;;  %v1514_v13 = vadd.f32 %v1513_v56, %v1494_v4  ;;  %v1681_v47 = vrot.slane %v9350_v2, 4  ;;  %v7738_v35 = vld [vmem:[%s12288_s1 + $0x564] sm:$0xf]  ;;  %v6134_v42 = vld [vmem:[%s12288_s1 + $0x4e0] sm:$0xf] }
 0x1cd   :  { %v9373_v18 = vmax.f32 %v1661_v46, %v1662_v5  ;;  %v1600_v20 = vmax.f32 %v1594_v16, %v1595_v50  ;;  %v6083_v57 = vor.u32 %v7740_v43, %v6080_v39  ;;  %v9378_v21 = vsel %vm1761_vm9, %v9347_v44, %v1760_v60  ;;  %v6054_v43 = vld [vmem:[%s12288_s1 + $0x540] sm:$0xf]  ;;  %v7735_v39 = vld [vmem:[%s12288_s1 + $0x544] sm:$0xf0]  ;;  %v7734_v60 = vld [vmem:[%s12288_s1 + $0x544] sm:$0xf] }
 0x1ce   :  { %v9381_v23 = vsel %vm1761_vm9, %v1644_v61, %v1637_v19  ;;  %v1560_v24 = vadd.f32 %v1514_v13, %v1214_v54  ;;  %v6071_v40 = vor.u32 %v7739_v10, %v6070_v9  ;;  %v1589_v29 = vadd.f32 %v1581_v11, %v587_v51  ;;  %v6142_v54 = vld [vmem:[%s12288_s1 + $0x4f0] sm:$0xf]  ;;  %v6144_v51 = vld [vmem:[%s12288_s1 + $0x4f8] sm:$0xf0]  ;;  %v7723_v61 = vld [vmem:[%s12288_s1 + $0x4e4] sm:$0xf0] }
 0x1cf   :  { %v1612_v49 = vrot.slane %v1600_v20, 2  ;;  %v1613_v0 = vrot.slane %v1600_v20, 4  ;;  %v1614_v1 = vrot.slane %v1600_v20, 6  ;;  %1966 = vmatpush.bf16.msra.mxu3 %v6083_v57  ;;  %v1669_v12 = vrot.slane %v9368_v45, 2 }
 0x1d0   :  { %v1676_v30 = vrot.slane %v9370_v48, 2  ;;  %v1687_v22 = vsel %vm1630_vm7, %v1600_v20, -inf  ;;  %v1570_v25 = vmul.f32 %v9305_v34, %v1560_v24  ;;  %1953 = vmatpush.bf16.msra.mxu2 %v6071_v40  ;;  %v1664_v26 = vrot.slane %v9373_v18, 1  ;;  %v7721_v24 = vld [vmem:[%s12288_s1 + $0x4d4] sm:$0xf0] }
 0x1d1   :  { %v1688_v34 = vrot.slane %v1687_v22, 4  ;;  %v1694_v17 = vsel %vm1630_vm7, %v1612_v49, -inf  ;;  %v1701_v28 = vsel %vm1630_vm7, %v1613_v0, -inf  ;;  %v1708_v6 = vsel %vm1630_vm7, %v1614_v1, -inf }
 0x1d2   :  { %v1695_v63 = vrot.slane %v1694_v17, 4  ;;  %v1702_v52 = vrot.slane %v1701_v28, 4  ;;  %v1580_v7 = vadd.f32 %v9308_v32, %v1570_v25  ;;  %v1709_v19 = vrot.slane %v1708_v6, 4  ;;  %v6136_v32 = vld [vmem:[%s12288_s1 + $0x4e8] sm:$0xf0] }
 0x1d3   :  { %v1689_v55 = vmax.f32 %v1687_v22, %v1688_v34  ;;  %v1597_v46 = vmax.f32 %v1589_v29, 0.0  ;;  %v6075_v59 = vor.u32 %v7738_v35, %v6072_v53  ;;  %v6143_v3 = vor.u32 %v7725_v33, %v6142_v54 }
 0x1d4   :  { %v1696_v4 = vmax.f32 %v1694_v17, %v1695_v63  ;;  %v1703_v56 = vmax.f32 %v1701_v28, %v1702_v52  ;;  %v1588_v50 = vadd.f32 %v1580_v7, %v586_v31  ;;  %v1710_v16 = vmax.f32 %v1708_v6, %v1709_v19  ;;  %v6126_v31 = vld [vmem:[%s12288_s1 + $0x4d0] sm:$0xf]  ;;  %v7720_v17 = vld [vmem:[%s12288_s1 + $0x4d4] sm:$0xf]  ;;  %v6128_v28 = vld [vmem:[%s12288_s1 + $0x4d8] sm:$0xf0] }
 0x1d5   :  { %v1690_v5 = vrot.slane %v1689_v55, 2  ;;  %1967 = vmatpush.bf16.msra.mxu3 %v6075_v59  ;;  %v6147_v9 = vor.u32 %v7724_v37, %v6144_v51  ;;  %v6063_v10 = vor.u32 %v7737_v14, %v6062_v15  ;;  %2066 = vmatpush.bf16.msrb.mxu0 %v6143_v3  ;;  %v6067_v57 = vor.u32 %v7736_v38, %v6064_v58  ;;  %v6046_v6 = vld [vmem:[%s12288_s1 + $0x530] sm:$0xf]  ;;  %v7733_v7 = vld [vmem:[%s12288_s1 + $0x534] sm:$0xf0] }
 0x1d6   :  { %v1697_v11 = vrot.slane %v1696_v4, 2  ;;  %v1704_v13 = vrot.slane %v1703_v56, 2  ;;  %v1596_v20 = vmax.f32 %v1588_v50, 0.0  ;;  %v1711_v35 = vrot.slane %v1710_v16, 2  ;;  %v6048_v19 = vld [vmem:[%s12288_s1 + $0x538] sm:$0xf0] }
 0x1d7   :  { %v1691_v40 = vmax.f32 %v1689_v55, %v1690_v5  ;;  %2080 = vmatpush.bf16.msrb.mxu1 %v6147_v9  ;;  %1954 = vmatpush.bf16.msra.mxu2 %v6063_v10  ;;  %v6135_v53 = vor.u32 %v7723_v61, %v6134_v42  ;;  %v6139_v49 = vor.u32 %v7722_v62, %v6136_v32  ;;  %v7732_v55 = vld [vmem:[%s12288_s1 + $0x534] sm:$0xf]  ;;  %v7719_v59 = vld [vmem:[%s12288_s1 + $0x4c4] sm:$0xf0]  ;;  %v9498_v62 = vld [vmem:[%s12288_s1 + $0x4c4] sm:$0xf] }
 0x1d8   :  { %v1698_v0 = vmax.f32 %v1696_v4, %v1697_v11  ;;  %v1705_v1 = vmax.f32 %v1703_v56, %v1704_v13  ;;  %v1601_v29 = vmax.f32 %v1596_v20, %v1597_v46  ;;  %v6055_v54 = vor.u32 %v7735_v39, %v6054_v43  ;;  %v6118_v46 = vld [vmem:[%s12288_s1 + $0x4c0] sm:$0xf]  ;;  %v9503_v32 = vld [vmem:[%s12288_s1 + $0x4c8] sm:$0xf0]  ;;  %v9522_v39 = vld [vmem:[%s12288_s1 + $0x524] sm:$0xf0] }
 0x1d9   :  { %v1692_v33 = vrot.slane %v1691_v40, 1  ;;  %v9456_v22 = vmax.f32 %v1710_v16, %v1711_v35  ;;  %1968 = vmatpush.bf16.msra.mxu3 %v6067_v57  ;;  %v6059_v25 = vor.u32 %v7734_v60, %v6056_v36  ;;  %v6127_v37 = vor.u32 %v7721_v24, %v6126_v31  ;;  %2067 = vmatpush.bf16.msrb.mxu0 %v6135_v53  ;;  %v9517_v43 = vld [vmem:[%s12288_s1 + $0x520] sm:$0xf]  ;;  %v9531_v5 = vld [vmem:[%s12288_s1 + $0x524] sm:$0xf] }
 0x1da   :  { %v1699_v51 = vrot.slane %v1698_v0, 1  ;;  %v1706_v15 = vrot.slane %v1705_v1, 1  ;;  %v1615_v14 = vrot.slane %v1601_v29, 2  ;;  %v1616_v34 = vrot.slane %v1601_v29, 4  ;;  %v9536_v16 = vld [vmem:[%s12288_s1 + $0x528] sm:$0xf0] }
 0x1db   :  { %v9467_v38 = vmax.f32 %v9368_v45, %v1669_v12  ;;  %v9469_v58 = vmax.f32 %v1691_v40, %v1692_v33  ;;  %v1617_v63 = vrot.slane %v1601_v29, 6  ;;  %v1715_v52 = vsel %vm1630_vm7, %v1601_v29, -inf  ;;  %2081 = vmatpush.bf16.msrb.mxu1 %v6139_v49  ;;  %1955 = vmatpush.bf16.msra.mxu2 %v6055_v54  ;;  %v6110_v11 = vld [vmem:[%s12288_s1 + $0x4b0] sm:$0xf]  ;;  %v7717_v13 = vld [vmem:[%s12288_s1 + $0x4b4] sm:$0xf0] }
 0x1dc   :  { %v9478_v42 = vmax.f32 %v1698_v0, %v1699_v51  ;;  %v9480_v61 = vmax.f32 %v1705_v1, %v1706_v15  ;;  %v1716_v45 = vrot.slane %v1715_v52, 4  ;;  %v1722_v12 = vsel %vm1630_vm7, %v1615_v14, -inf  ;;  %v9555_v35 = vld [vmem:[%s12288_s1 + $0x4b4] sm:$0xf]  ;;  %v9560_v53 = vld [vmem:[%s12288_s1 + $0x4b8] sm:$0xf0] }
 0x1dd   :  { %v1764_v4 = vsel %vm1763_vm10, %v9359_v41, %v9378_v21  ;;  %v9511_v56 = vmax.f32 %v9373_v18, %v1664_v26  ;;  %v1723_v50 = vrot.slane %v1722_v12, 4  ;;  %v1729_v3 = vsel %vm1630_vm7, %v1616_v34, -inf  ;;  %1969 = vmatpush.bf16.msra.mxu3 %v6059_v25  ;;  %2068 = vmatpush.bf16.msrb.mxu0 %v6127_v37  ;;  %v9565_v49 = vld [vmem:[%s12288_s1 + $0x510] sm:$0xf]  ;;  %v9570_v0 = vld [vmem:[%s12288_s1 + $0x514] sm:$0xf0] }
 0x1de   :  { %v1713_v21 = vrot.slane %v9456_v22, 1  ;;  %v1773_v18 = vsel %vm1759_vm8, %v9478_v42, %v9469_v58  ;;  %v1717_v26 = vmax.f32 %v1715_v52, %v1716_v45  ;;  %v1730_v60 = vrot.slane %v1729_v3, 4  ;;  %v9575_v1 = vld [vmem:[%s12288_s1 + $0x514] sm:$0xf]  ;;  %v9580_v29 = vld [vmem:[%s12288_s1 + $0x518] sm:$0xf0] }
 0x1df   :  { %v1671_v9 = vrot.slane %v9467_v38, 1  ;;  %v1724_v10 = vmax.f32 %v1722_v12, %v1723_v50  ;;  %v9540_v36 = vsel %vm1630_vm7, %v1617_v63, -inf  ;;  %v6131_v31 = vor.u32 %v7720_v17, %v6128_v28  ;;  %v9587_v51 = vld [vmem:[%s12288_s1 + $0x4a0] sm:$0xf]  ;;  %v9592_v15 = vld [vmem:[%s12288_s1 + $0x4a4] sm:$0xf0] }
 0x1e0   :  { %v1774_v20 = vsel %vm1761_vm9, %v9480_v61, %v1773_v18  ;;  %v1718_v57 = vrot.slane %v1717_v26, 2  ;;  %v9550_v24 = vmax.f32 %v1729_v3, %v1730_v60  ;;  %v6047_v40 = vor.u32 %v7733_v7, %v6046_v6  ;;  %v9597_v14 = vld [vmem:[%s12288_s1 + $0x4a4] sm:$0xf]  ;;  %v9602_v34 = vld [vmem:[%s12288_s1 + $0x4a8] sm:$0xf0] }
 0x1e1   :  { %v1725_v54 = vrot.slane %v1724_v10, 2  ;;  %2082 = vmatpush.bf16.msrb.mxu1 %v6131_v31  ;;  %v6051_v33 = vor.u32 %v7732_v55, %v6048_v19  ;;  %v6119_v25 = vor.u32 %v7719_v59, %v6118_v46  ;;  %v6123_v37 = vor.u32 %v9498_v62, %v9503_v32  ;;  %v9607_v17 = vld [vmem:[%s12288_s1 + $0x500] sm:$0xf]  ;;  %v9612_v28 = vld [vmem:[%s12288_s1 + $0x504] sm:$0xf0] }
 0x1e2   :  { %v9617_v63 = vld [vmem:[%s12288_s1 + $0x504] sm:$0xf]  ;;  %v9622_v52 = vld [vmem:[%s12288_s1 + $0x508] sm:$0xf0]  ;;  %v9626_v6 = vsel %vm1765_vm11, %v9511_v56, %v1764_v4  ;;  %v9629_v7 = vmax.f32 %v9456_v22, %v1713_v21  ;;  %v1719_v45 = vmax.f32 %v1717_v26, %v1718_v57  ;;  %1956 = vmatpush.bf16.msra.mxu2 %v6047_v40  ;;  %v6039_v12 = vor.u32 %v9522_v39, %v9517_v43  ;;  %v9636_v55 = vld [vmem:[%s12288_s1 + $0x490] sm:$0xf] }
 0x1e3   :  { %v9641_v19 = vld [vmem:[%s12288_s1 + $0x494] sm:$0xf0]  ;;  %v9646_v22 = vld [vmem:[%s12288_s1 + $0x494] sm:$0xf]  ;;  %v1726_v46 = vmax.f32 %v1724_v10, %v1725_v54  ;;  %1970 = vmatpush.bf16.msra.mxu3 %v6051_v33  ;;  %2069 = vmatpush.bf16.msrb.mxu0 %v6119_v25  ;;  %v6043_v59 = vor.u32 %v9531_v5, %v9536_v16  ;;  %v6111_v62 = vor.u32 %v7717_v13, %v6110_v11  ;;  %v9653_v32 = vld [vmem:[%s12288_s1 + $0x498] sm:$0xf0] }
 0x1e4   :  { %v9658_v4 = vld [vmem:[%s12288_s1 + $0x5f0] sm:$0xf]  ;;  %v9663_v50 = vld [vmem:[%s12288_s1 + $0x5f4] sm:$0xf0]  ;;  %v1775_v3 = vsel %vm1763_vm10, %v9629_v7, %v1774_v20  ;;  %v1790_v43 = vsel %vm1761_vm9, %v9478_v42, %v9469_v58  ;;  %v1720_v39 = vrot.slane %v1719_v45, 1  ;;  %v1732_v21 = vrot.slane %v9550_v24, 2 }
 0x1e5   :  { %v9674_v18 = vld [vmem:[%s12288_s1 + $0x5f4] sm:$0xf]  ;;  %v9679_v26 = vld [vmem:[%s12288_s1 + $0x5f8] sm:$0xf0]  ;;  %v1727_v60 = vrot.slane %v1726_v46, 1  ;;  %2083 = vmatpush.bf16.msrb.mxu1 %v6123_v37  ;;  %v6115_v5 = vor.u32 %v9555_v35, %v9560_v53  ;;  %v6031_v58 = vor.u32 %v9570_v0, %v9565_v49  ;;  %v6035_v42 = vor.u32 %v9575_v1, %v9580_v29 }
 0x1e6   :  { %v9690_v16 = vld [vmem:[%s12288_s1 + $0x480] sm:$0xf]  ;;  %v9695_v10 = vld [vmem:[%s12288_s1 + $0x484] sm:$0xf0]  ;;  %1957 = vmatpush.bf16.msra.mxu2 %v6039_v12  ;;  %v6103_v31 = vor.u32 %v9592_v15, %v9587_v51  ;;  %v6107_v11 = vor.u32 %v9597_v14, %v9602_v34  ;;  %v6023_v13 = vor.u32 %v9612_v28, %v9607_v17  ;;  %v6027_v20 = vor.u32 %v9617_v63, %v9622_v52  ;;  %v9713_v49 = vld [vmem:[%s12288_s1 + $0x484] sm:$0xf] }
 0x1e7   :  { %v1721_v57 = vmax.f32 %v1719_v45, %v1720_v39  ;;  %v1737_v40 = vrot.slane %v9540_v36, 4  ;;  %1971 = vmatpush.bf16.msra.mxu3 %v6043_v59  ;;  %2070 = vmatpush.bf16.msrb.mxu0 %v6111_v62  ;;  %v6095_v35 = vor.u32 %v9641_v19, %v9636_v55  ;;  %v6099_v53 = vor.u32 %v9646_v22, %v9653_v32  ;;  %v9718_v0 = vld [vmem:[%s12288_s1 + $0x488] sm:$0xf0]  ;;  %v6200_v14 = vld [vmem:[%s12288_s1 + $0x5e0] sm:$0xf] }
 0x1e8   :  { %v6209_v1 = vor.u32 %v9663_v50, %v9658_v4  ;;  %v6213_v29 = vor.u32 %v9674_v18, %v9679_v26  ;;  %v6087_v54 = vor.u32 %v9695_v10, %v9690_v16  ;;  %v1672_v33 = vmax.f32 %v9467_v38, %v1671_v9  ;;  %v7755_v34 = vld [vmem:[%s12288_s1 + $0x5e4] sm:$0xf0]  ;;  %v7754_v38 = vld [vmem:[%s12288_s1 + $0x5e4] sm:$0xf]  ;;  %v6202_v9 = vld [vmem:[%s12288_s1 + $0x5e8] sm:$0xf0] }
 0x1e9   :  { %2084 = vmatpush.bf16.msrb.mxu1 %v6115_v5  ;;  %v1677_v25 = vmax.f32 %v9370_v48, %v1676_v30  ;;  %v1728_v37 = vmax.f32 %v1726_v46, %v1727_v60  ;;  %v1733_v51 = vmax.f32 %v9550_v24, %v1732_v21  ;;  %v6091_v15 = vor.u32 %v9713_v49, %v9718_v0  ;;  %v7752_v22 = vld [vmem:[%s12288_s1 + $0x5d4] sm:$0xf]  ;;  %v6194_v46 = vld [vmem:[%s12288_s1 + $0x5d8] sm:$0xf0]  ;;  %v6184_v26 = vld [vmem:[%s12288_s1 + $0x5c0] sm:$0xf] }
 0x1ea   :  { %1958 = vmatpush.bf16.msra.mxu2 %v6031_v58  ;;  %v1785_v48 = vsel %vm1763_vm10, %v9347_v44, %v9381_v23  ;;  %v1791_v30 = vsel %vm1763_vm10, %v9480_v61, %v1790_v43  ;;  %v1776_v23 = vsel %vm1765_vm11, %v1721_v57, %v1775_v3  ;;  %v6205_v19 = vor.u32 %v7754_v38, %v6202_v9  ;;  %v7751_v10 = vld [vmem:[%s12288_s1 + $0x5c4] sm:$0xf0] }
 0x1eb   :  { %1972 = vmatpush.bf16.msra.mxu3 %v6035_v42  ;;  %2071 = vmatpush.bf16.msrb.mxu0 %v6103_v31  ;;  %v1678_v24 = vrot.slane %v1677_v25, 1  ;;  %v1734_v17 = vrot.slane %v1733_v51, 1  ;;  %v1786_v28 = vsel %vm1765_vm11, %v9359_v41, %v1785_v48  ;;  %v1792_v44 = vsel %vm1765_vm11, %v9629_v7, %v1791_v30  ;;  %v6192_v41 = vld [vmem:[%s12288_s1 + $0x5d0] sm:$0xf]  ;;  %v7750_v31 = vld [vmem:[%s12288_s1 + $0x5c4] sm:$0xf] }
 0x1ec   :  { %v1787_v61 = vsel %vm1767_vm12, %v9511_v56, %v1786_v28  ;;  %v1793_v63 = vsel %vm1767_vm12, %v1721_v57, %v1792_v44  ;;  %v6201_v7 = vor.u32 %v7755_v34, %v6200_v14  ;;  %v7753_v56 = vld [vmem:[%s12288_s1 + $0x5d4] sm:$0xf0]  ;;  %v1682_v59 = vmax.f32 %v9350_v2, %v1681_v47  ;;  %v6176_v28 = vld [vmem:[%s12288_s1 + $0x5b0] sm:$0xf] }
 0x1ed   :  { %2085 = vmatpush.bf16.msrb.mxu1 %v6107_v11  ;;  %v1679_v52 = vmax.f32 %v1677_v25, %v1678_v24  ;;  %v1735_v45 = vmax.f32 %v1733_v51, %v1734_v17  ;;  %v1788_v12 = vsel %vm1769_vm13, %v1672_v33, %v1787_v61  ;;  %v1794_v55 = vsel %vm1769_vm13, %v1728_v37, %v1793_v63  ;;  %v7749_v44 = vld [vmem:[%s12288_s1 + $0x5b4] sm:$0xf0]  ;;  %v6178_v63 = vld [vmem:[%s12288_s1 + $0x5b8] sm:$0xf0] }
 0x1ee   :  { %1959 = vmatpush.bf16.msra.mxu2 %v6023_v13  ;;  %v1738_v62 = vmax.f32 %v9540_v36, %v1737_v40  ;;  %v1768_v50 = vsel %vm1767_vm12, %v1672_v33, %v9626_v6  ;;  %v1683_v39 = vrot.slane %v1682_v59, 2  ;;  %v6193_v36 = vor.u32 %v7753_v56, %v6192_v41 }
 0x1ef   :  { %1973 = vmatpush.bf16.msra.mxu3 %v6027_v20  ;;  %2072 = vmatpush.bf16.msrb.mxu0 %v6095_v35  ;;  %v1789_v32 = vsel %vm1771_vm14, %v1679_v52, %v1788_v12  ;;  %v1795_v4 = vsel %vm1771_vm14, %v1735_v45, %v1794_v55  ;;  %v6197_v18 = vor.u32 %v7752_v22, %v6194_v46  ;;  %v6186_v20 = vld [vmem:[%s12288_s1 + $0x5c8] sm:$0xf0] }
 0x1f0   :  { %v1800_v3 = vsel %vm29_vm0, 0.0, %v1789_v32  ;;  %v1801_v43 = vsel %vm29_vm0, 0.0, %v1795_v4  ;;  %v1739_v21 = vrot.slane %v1738_v62, 2  ;;  %v1684_v6 = vmax.f32 %v1682_v59, %v1683_v39  ;;  %v7747_v4 = vld [vmem:[%s12288_s1 + $0x5a4] sm:$0xf0] }
 0x1f1   :  { %2086 = vmatpush.bf16.msrb.mxu1 %v6099_v53  ;;  %v9784_v2 = vpack.c.bf16 %v1800_v3, %v1800_v3  ;;  %v9786_v47 = vpack.c.bf16 %v1801_v43, %v1801_v43  ;;  %v1770_v5 = vsel %vm1769_vm13, %v1679_v52, %v1768_v50  ;;  %v1777_v58 = vsel %vm1767_vm12, %v1728_v37, %v1776_v23  ;;  %v7748_v23 = vld [vmem:[%s12288_s1 + $0x5b4] sm:$0xf]  ;;  %v7746_v50 = vld [vmem:[%s12288_s1 + $0x5a4] sm:$0xf]  ;;  %v6170_v3 = vld [vmem:[%s12288_s1 + $0x5a8] sm:$0xf0] }
 0x1f2   :  { %2204 = vmatpush.bf16.msrb.mxu2 %v6209_v1  ;;  %v1740_v60 = vmax.f32 %v1738_v62, %v1739_v21  ;;  %v1685_v57 = vrot.slane %v1684_v6, 1  ;;  %v6185_v34 = vor.u32 %v7751_v10, %v6184_v26  ;;  %v6189_v48 = vor.u32 %v7750_v31, %v6186_v20  ;;  %v6168_v62 = vld [vmem:[%s12288_s1 + $0x5a0] sm:$0xf]  ;;  %v6162_v10 = vld [vmem:[%s12288_s1 + $0x598] sm:$0xf0] }
 0x1f3   :  { %2218 = vmatpush.bf16.msrb.mxu3 %v6213_v29  ;;  %2073 = vmatpush.bf16.msrb.mxu0 %v6087_v54  ;;  %v1982_v42 = vunpack.c.l.b16 %v9784_v2  ;;  %v1983_v16 = vunpack.c.l.b16 %v9786_v47  ;;  %v1825_v11 = vshrl.u32 %v9784_v2, 16  ;;  %v1828_v13 = vshll.u32 %v9784_v2, 16  ;;  %v7743_v20 = vld [vmem:[%s12288_s1 + $0x584] sm:$0xf0] }
 0x1f4   :  { %v1741_v40 = vrot.slane %v1740_v60, 1  ;;  %v1839_v35 = vshrl.u32 %v9786_v47, 16  ;;  %v1842_v53 = vshll.u32 %v9786_v47, 16  ;;  %v1778_v29 = vsel %vm1769_vm13, %v1735_v45, %v1777_v58 }
 0x1f5   :  { %2087 = vmatpush.bf16.msrb.mxu1 %v6091_v15  ;;  %v1984_v1 = vpack.c.b16 %v1983_v16, %v1982_v42  ;;  %v1827_v54 = vrot.slane %v1825_v11, 4  ;;  %v1830_v33 = vrot.slane %v1828_v13, 5  ;;  %v1686_v25 = vmax.f32 %v1684_v6, %v1685_v57  ;;  %v7745_v42 = vld [vmem:[%s12288_s1 + $0x594] sm:$0xf0]  ;;  %v7744_v16 = vld [vmem:[%s12288_s1 + $0x594] sm:$0xf] }
 0x1f6   :  { %2205 = vmatpush.bf16.msrb.mxu2 %v6201_v7  ;;  %v1742_v37 = vmax.f32 %v1740_v60, %v1741_v40  ;;  %v1841_v51 = vrot.slane %v1839_v35, 4  ;;  %v1844_v14 = vrot.slane %v1842_v53, 5  ;;  %v6148_v52 = vrot.slane %v9784_v2, 9  ;;  %v6160_v60 = vld [vmem:[%s12288_s1 + $0x590] sm:$0xf] }
 0x1f7   :  { %2219 = vmatpush.bf16.msrb.mxu3 %v6205_v19  ;;  %2074 = vmatmul.bf16.vlgmr.msrb.gmra.mxu0 %v1984_v1  ;;  %v1831_v30 = vor.u32 %v1830_v33, %v1827_v54  ;;  %v1772_v38 = vsel %vm1771_vm14, %v1686_v25, %v1770_v5  ;;  %v1802_v0 = vsel %vm29_vm0, %v1686_v25, 0.0  ;;  %v6149_v45 = vrot.slane %v9786_v47, 9  ;;  %v6152_v13 = vld [vmem:[%s12288_s1 + $0x580] sm:$0xf]  ;;  %v7742_v57 = vld [vmem:[%s12288_s1 + $0x584] sm:$0xf] }
 0x1f8   :  { %2088 = vmatmul.bf16.vlgmr.msrb.gmra.mxu1 %v1984_v1  ;;  %v1779_v49 = vsel %vm1771_vm14, %v1742_v37, %v1778_v29  ;;  %v1803_v15 = vsel %vm29_vm0, %v1742_v37, 0.0  ;;  %1782 = vst [vmem:[%s12291_s3] sm:$0xff] %v1772_v38  ;;  %v1805_v9 = vpack.c.bf16 %v1802_v0, %v1802_v0  ;;  %v1845_v17 = vor.u32 %v1844_v14, %v1841_v51  ;;  %v6154_v40 = vld [vmem:[%s12288_s1 + $0x588] sm:$0xf0]  ;;  %v6272_v1 = vld [vmem:[%s12288_s1 + $0x770] sm:$0xf] }
 0x1f9   :  { %v1807_v24 = vpack.c.bf16 %v1803_v15, %v1803_v15  ;;  %1783 = vst [vmem:[%s12291_s3 + $0x8] sm:$0xff] %v1779_v49  ;;  %v1832_v61 = vrot.slane %v1831_v30, 4  ;;  %v6177_v19 = vor.u32 %v7749_v44, %v6176_v28  ;;  %v6181_v59 = vor.u32 %v7748_v23, %v6178_v63  ;;  %v7805_v29 = vld [vmem:[%s12288_s1 + $0x774] sm:$0xf0]  ;;  %v6336_v54 = vld [vmem:[%s12288_s1 + $0x7f0] sm:$0xf] }
 0x1fa   :  { %2206 = vmatpush.bf16.msrb.mxu2 %v6193_v36  ;;  %v1834_v12 = vshll.u32 %v1805_v9, 16  ;;  %v1846_v55 = vrot.slane %v1845_v17, 4  ;;  %v2098_v7 = vrot.slane %v1805_v9, 5  ;;  %v6169_v26 = vor.u32 %v7747_v4, %v6168_v62  ;;  %v7821_v25 = vld [vmem:[%s12288_s1 + $0x7f4] sm:$0xf0] }
 0x1fb   :  { %2220 = vmatpush.bf16.msrb.mxu3 %v6197_v18  ;;  %v1848_v41 = vshll.u32 %v1807_v24, 16  ;;  %v2102_v56 = vrot.slane %v1807_v24, 5  ;;  %v6173_v6 = vor.u32 %v7746_v50, %v6170_v3  ;;  %v6161_v31 = vor.u32 %v7745_v42, %v6160_v60  ;;  %v7804_v37 = vld [vmem:[%s12288_s1 + $0x774] sm:$0xf]  ;;  %v6274_v51 = vld [vmem:[%s12288_s1 + $0x778] sm:$0xf0] }
 0x1fc   :  { %v1836_v22 = vrot.slane %v1834_v12, 5  ;;  %v2099_v32 = vsel %vm8506_vm6, %v6148_v52, %v2098_v7  ;;  %v6165_v11 = vor.u32 %v7744_v16, %v6162_v10  ;;  %v6153_v35 = vor.u32 %v7743_v20, %v6152_v13  ;;  %v6338_v30 = vld [vmem:[%s12288_s1 + $0x7f8] sm:$0xf0]  ;;  %v6264_v38 = vld [vmem:[%s12288_s1 + $0x760] sm:$0xf] }
 0x1fd   :  { %v1850_v46 = vrot.slane %v1848_v41, 5  ;;  %v2103_v43 = vsel %vm8506_vm6, %v6149_v45, %v2102_v56  ;;  %v2120_v2 = vunpack.c.l.b16 %v2099_v32  ;;  %v6157_v53 = vor.u32 %v7742_v57, %v6154_v40  ;;  %v7803_v0 = vld [vmem:[%s12288_s1 + $0x764] sm:$0xf0]  ;;  %v6328_v15 = vld [vmem:[%s12288_s1 + $0x7e0] sm:$0xf] }
 0x1fe   :  { %2207 = vmatpush.bf16.msrb.mxu2 %v6185_v34  ;;  %v1837_v39 = vsel %vm8404_vm3, %v1832_v61, %v1836_v22  ;;  %v2121_v47 = vunpack.c.l.b16 %v2103_v43  ;;  %v6273_v33 = vor.u32 %v7805_v29, %v6272_v1  ;;  %v6337_v14 = vor.u32 %v7821_v25, %v6336_v54  ;;  %v7819_v9 = vld [vmem:[%s12288_s1 + $0x7e4] sm:$0xf0]  ;;  %v7802_v28 = vld [vmem:[%s12288_s1 + $0x764] sm:$0xf]  ;;  %v6266_v44 = vld [vmem:[%s12288_s1 + $0x768] sm:$0xf0] }
 0x1ff   :  { %2221 = vmatpush.bf16.msrb.mxu3 %v6189_v48  ;;  %v1851_v21 = vsel %vm8404_vm3, %v1846_v55, %v1850_v46  ;;  %v1868_v36 = vunpack.c.l.b16 %v1837_v39  ;;  %v6277_v34 = vor.u32 %v7804_v37, %v6274_v51  ;;  %v7820_v48 = vld [vmem:[%s12288_s1 + $0x7f4] sm:$0xf]  ;;  %v6265_v24 = vor.u32 %v7803_v0, %v6264_v38  ;;  %v7818_v23 = vld [vmem:[%s12288_s1 + $0x7e4] sm:$0xf]  ;;  %v6330_v63 = vld [vmem:[%s12288_s1 + $0x7e8] sm:$0xf0] }
 0x200   :  { %v1869_v18 = vunpack.c.l.b16 %v1851_v21  ;;  %v2122_v5 = vpack.c.b16 %v2121_v47, %v2120_v2  ;;  %2536 = vmatpush.bf16.msra.mxu0 %v6273_v33  ;;  %v6341_v49 = vor.u32 %v7820_v48, %v6338_v30  ;;  %2550 = vmatpush.bf16.msra.mxu1 %v6337_v14  ;;  %v6329_v17 = vor.u32 %v7819_v9, %v6328_v15  ;;  %v6256_v45 = vld [vmem:[%s12288_s1 + $0x750] sm:$0xf]  ;;  %v7801_v12 = vld [vmem:[%s12288_s1 + $0x754] sm:$0xf0]  ;;  %v6258_v56 = vld [vmem:[%s12288_s1 + $0x758] sm:$0xf0] }
 0x201   :  { %v6269_v61 = vor.u32 %v7802_v28, %v6266_v44  ;;  %v6333_v52 = vor.u32 %v7818_v23, %v6330_v63  ;;  %v6320_v55 = vld [vmem:[%s12288_s1 + $0x7d0] sm:$0xf]  ;;  %v6257_v41 = vor.u32 %v7801_v12, %v6256_v45  ;;  %v7817_v7 = vld [vmem:[%s12288_s1 + $0x7d4] sm:$0xf0]  ;;  %v6322_v62 = vld [vmem:[%s12288_s1 + $0x7d8] sm:$0xf0] }
 0x202   :  { %2208 = vmatpush.bf16.msrb.mxu2 %v6177_v19  ;;  %v1870_v58 = vpack.c.b16 %v1869_v18, %v1868_v36  ;;  %v7800_v19 = vld [vmem:[%s12288_s1 + $0x754] sm:$0xf]  ;;  %v6321_v22 = vor.u32 %v7817_v7, %v6320_v55  ;;  %v6248_v32 = vld [vmem:[%s12288_s1 + $0x740] sm:$0xf]  ;;  %v7799_v50 = vld [vmem:[%s12288_s1 + $0x744] sm:$0xf0] }
 0x203   :  { %2222 = vmatpush.bf16.msrb.mxu3 %v6181_v59  ;;  %v6261_v46 = vor.u32 %v7800_v19, %v6258_v56  ;;  %v7816_v59 = vld [vmem:[%s12288_s1 + $0x7d4] sm:$0xf]  ;;  %v6312_v3 = vld [vmem:[%s12288_s1 + $0x7c0] sm:$0xf]  ;;  %v7815_v43 = vld [vmem:[%s12288_s1 + $0x7c4] sm:$0xf0]  ;;  %v6249_v39 = vor.u32 %v7799_v50, %v6248_v32 }
 0x204   :  { %1960 = vmatmul.bf16.vlgmr.msra.gmra.mxu2 %v1870_v58  ;;  %1974 = vmatmul.bf16.vlgmr.msra.gmra.mxu3 %v1870_v58  ;;  %v6325_v4 = vor.u32 %v7816_v59, %v6322_v62  ;;  %v6313_v21 = vor.u32 %v7815_v43, %v6312_v3  ;;  %v7798_v2 = vld [vmem:[%s12288_s1 + $0x744] sm:$0xf]  ;;  %v6250_v47 = vld [vmem:[%s12288_s1 + $0x748] sm:$0xf0]  ;;  %v6240_v60 = vld [vmem:[%s12288_s1 + $0x730] sm:$0xf] }
 0x205   :  { %2537 = vmatpush.bf16.msra.mxu0 %v6265_v24  ;;  %2551 = vmatpush.bf16.msra.mxu1 %v6329_v17  ;;  %v7814_v36 = vld [vmem:[%s12288_s1 + $0x7c4] sm:$0xf]  ;;  %v6253_v18 = vor.u32 %v7798_v2, %v6250_v47  ;;  %v6304_v58 = vld [vmem:[%s12288_s1 + $0x7b0] sm:$0xf]  ;;  %v7813_v16 = vld [vmem:[%s12288_s1 + $0x7b4] sm:$0xf0] }
 0x206   :  { %2209 = vmatpush.bf16.msrb.mxu2 %v6169_v26  ;;  %v6314_v26 = vld [vmem:[%s12288_s1 + $0x7c8] sm:$0xf0]  ;;  %v7796_v10 = vld [vmem:[%s12288_s1 + $0x734] sm:$0xf]  ;;  %v6306_v57 = vld [vmem:[%s12288_s1 + $0x7b8] sm:$0xf0] }
 0x207   :  { %2223 = vmatpush.bf16.msrb.mxu3 %v6173_v6  ;;  %v6317_v6 = vor.u32 %v7814_v36, %v6314_v26  ;;  %v7812_v20 = vld [vmem:[%s12288_s1 + $0x7b4] sm:$0xf]  ;;  %v6232_v40 = vld [vmem:[%s12288_s1 + $0x720] sm:$0xf]  ;;  %v7811_v29 = vld [vmem:[%s12288_s1 + $0x7a4] sm:$0xf0] }
 0x208   :  { %v6296_v1 = vld [vmem:[%s12288_s1 + $0x7a0] sm:$0xf]  ;;  %v7794_v25 = vld [vmem:[%s12288_s1 + $0x724] sm:$0xf]  ;;  %v6234_v37 = vld [vmem:[%s12288_s1 + $0x728] sm:$0xf0] }
 0x209   :  { %2538 = vmatpush.bf16.msra.mxu0 %v6257_v41  ;;  %2552 = vmatpush.bf16.msra.mxu1 %v6321_v22  ;;  %v6297_v33 = vor.u32 %v7811_v29, %v6296_v1  ;;  %v7810_v51 = vld [vmem:[%s12288_s1 + $0x7a4] sm:$0xf]  ;;  %v6237_v14 = vor.u32 %v7794_v25, %v6234_v37  ;;  %v6224_v15 = vld [vmem:[%s12288_s1 + $0x710] sm:$0xf]  ;;  %v7793_v9 = vld [vmem:[%s12288_s1 + $0x714] sm:$0xf0] }
 0x20a   :  { %2210 = vmatpush.bf16.msrb.mxu2 %v6161_v31  ;;  %v6242_v31 = vld [vmem:[%s12288_s1 + $0x738] sm:$0xf0]  ;;  %v10027_v30 = vld [vmem:[%s12290_s2] sm:$0xff]  ;;  %v6288_v24 = vld [vmem:[%s12288_s1 + $0x790] sm:$0xf]  ;;  %v6225_v17 = vor.u32 %v7793_v9, %v6224_v15 }
 0x20b   :  { %2224 = vmatpush.bf16.msrb.mxu3 %v6165_v11  ;;  %v6305_v11 = vor.u32 %v7813_v16, %v6304_v58  ;;  %v6245_v13 = vor.u32 %v7796_v10, %v6242_v31  ;;  %v2236_v38 = vperm.slane %v10027_v30, 4  ;;  %v7809_v28 = vld [vmem:[%s12288_s1 + $0x794] sm:$0xf0]  ;;  %v7792_v44 = vld [vmem:[%s12288_s1 + $0x714] sm:$0xf]  ;;  %v2242_v58 = vperm.slane %v10027_v30, 5 }
 0x20c   :  { %v6226_v23 = vld [vmem:[%s12288_s1 + $0x718] sm:$0xf0]  ;;  %v6216_v12 = vld [vmem:[%s12288_s1 + $0x700] sm:$0xf]  ;;  %v7791_v41 = vld [vmem:[%s12288_s1 + $0x704] sm:$0xf0] }
 0x20d   :  { %2539 = vmatpush.bf16.msra.mxu0 %v6249_v39  ;;  %2553 = vmatpush.bf16.msra.mxu1 %v6313_v21  ;;  %v6229_v63 = vor.u32 %v7792_v44, %v6226_v23  ;;  %v6290_v45 = vld [vmem:[%s12288_s1 + $0x798] sm:$0xf0]  ;;  %v6280_v7 = vld [vmem:[%s12288_s1 + $0x780] sm:$0xf]  ;;  %v7807_v19 = vld [vmem:[%s12288_s1 + $0x784] sm:$0xf0]  ;;  %v6217_v56 = vor.u32 %v7791_v41, %v6216_v12 }
 0x20e   :  { %2211 = vmatpush.bf16.msrb.mxu2 %v6153_v35  ;;  %v6309_v35 = vor.u32 %v7812_v20, %v6306_v57  ;;  %v6281_v22 = vor.u32 %v7807_v19, %v6280_v7  ;;  %v6218_v59 = vld [vmem:[%s12288_s1 + $0x708] sm:$0xf0]  ;;  %v7806_v62 = vld [vmem:[%s12288_s1 + $0x784] sm:$0xf]  ;;  %v6400_v50 = vld [vmem:[%s12288_s1 + $0x670] sm:$0xf] }
 0x20f   :  { %2225 = vmatpush.bf16.msrb.mxu3 %v6157_v53  ;;  %v7795_v53 = vld [vmem:[%s12288_s1 + $0x724] sm:$0xf0]  ;;  %v7773_v3 = vld [vmem:[%s12288_s1 + $0x674] sm:$0xf0]  ;;  %v6464_v21 = vld [vmem:[%s12288_s1 + $0x6f0] sm:$0xf] }
 0x210   :  { %v6233_v54 = vor.u32 %v7795_v53, %v6232_v40  ;;  %v6401_v39 = vor.u32 %v7773_v3, %v6400_v50  ;;  %v7789_v2 = vld [vmem:[%s12288_s1 + $0x6f4] sm:$0xf0]  ;;  %v7772_v47 = vld [vmem:[%s12288_s1 + $0x674] sm:$0xf]  ;;  %v6456_v20 = vld [vmem:[%s12288_s1 + $0x6e0] sm:$0xf] }
 0x211   :  { %2554 = vmatpush.bf16.msra.mxu1 %v6305_v11  ;;  %v6465_v36 = vor.u32 %v7789_v2, %v6464_v21  ;;  %v7788_v26 = vld [vmem:[%s12288_s1 + $0x6f4] sm:$0xf]  ;;  %v6392_v11 = vld [vmem:[%s12288_s1 + $0x660] sm:$0xf]  ;;  %v7787_v40 = vld [vmem:[%s12288_s1 + $0x6e4] sm:$0xf0] }
 0x212   :  { %2564 = vmatpush.bf16.msra.mxu2 %v6277_v34  ;;  %v6298_v34 = vld [vmem:[%s12288_s1 + $0x7a8] sm:$0xf0]  ;;  %v6457_v29 = vor.u32 %v7787_v40, %v6456_v20  ;;  %v6384_v37 = vld [vmem:[%s12288_s1 + $0x650] sm:$0xf]  ;;  %v7785_v15 = vld [vmem:[%s12288_s1 + $0x6d4] sm:$0xf0] }
 0x213   :  { %2578 = vmatpush.bf16.msra.mxu3 %v6341_v49  ;;  %v6301_v48 = vor.u32 %v7810_v51, %v6298_v34  ;;  %v6394_v53 = vld [vmem:[%s12288_s1 + $0x668] sm:$0xf0]  ;;  %v7769_v34 = vld [vmem:[%s12288_s1 + $0x654] sm:$0xf0]  ;;  %v6440_v41 = vld [vmem:[%s12288_s1 + $0x6c0] sm:$0xf] }
 0x214   :  { %2212 = vmatmul.bf16.vlgmr.msrb.gmra.mxu2 %v2122_v5  ;;  %2226 = vmatmul.bf16.vlgmr.msrb.gmra.mxu3 %v2122_v5  ;;  %v7797_v5 = vld [vmem:[%s12288_s1 + $0x734] sm:$0xf0]  ;;  %v6458_v25 = vld [vmem:[%s12288_s1 + $0x6e8] sm:$0xf0]  ;;  %v6385_v9 = vor.u32 %v7769_v34, %v6384_v37  ;;  %v7783_v7 = vld [vmem:[%s12288_s1 + $0x6c4] sm:$0xf0] }
 0x215   :  { %v6241_v42 = vor.u32 %v7797_v5, %v6240_v60  ;;  %2555 = vmatpush.bf16.msra.mxu1 %v6297_v33  ;;  %v7786_v33 = vld [vmem:[%s12288_s1 + $0x6e4] sm:$0xf]  ;;  %v6441_v50 = vor.u32 %v7783_v7, %v6440_v41  ;;  %v6432_v21 = vld [vmem:[%s12288_s1 + $0x6b0] sm:$0xf]  ;;  %v6360_v40 = vld [vmem:[%s12288_s1 + $0x620] sm:$0xf] }
 0x216   :  { %2565 = vmatpush.bf16.msra.mxu2 %v6269_v61  ;;  %v6289_v61 = vor.u32 %v7809_v28, %v6288_v24  ;;  %v7768_v24 = vld [vmem:[%s12288_s1 + $0x654] sm:$0xf]  ;;  %v7766_v19 = vld [vmem:[%s12288_s1 + $0x644] sm:$0xf]  ;;  %v7777_v41 = vld [vmem:[%s12288_s1 + $0x694] sm:$0xf0] }
 0x217   :  { %2579 = vmatpush.bf16.msra.mxu3 %v6333_v52  ;;  %2540 = vmatpush.bf16.msra.mxu0 %v6241_v42  ;;  %v7808_v52 = vld [vmem:[%s12288_s1 + $0x794] sm:$0xf]  ;;  %v10114_v42 = vld [vmem:[%s12290_s2 + $0x8] sm:$0xff]  ;;  %v7762_v34 = vld [vmem:[%s12288_s1 + $0x624] sm:$0xf] }
 0x218   :  { %v6293_v55 = vor.u32 %v7808_v52, %v6290_v45  ;;  %v2237_v16 = vperm.slane %v10114_v42, 4  ;;  %v7784_v28 = vld [vmem:[%s12288_s1 + $0x6d4] sm:$0xf]  ;;  %v7767_v52 = vld [vmem:[%s12288_s1 + $0x644] sm:$0xf0] }
 0x219   :  { %2556 = vmatpush.bf16.msra.mxu1 %v6289_v61  ;;  %v6450_v61 = vld [vmem:[%s12288_s1 + $0x6d8] sm:$0xf0]  ;;  %v7760_v7 = vld [vmem:[%s12288_s1 + $0x614] sm:$0xf] }
 0x21a   :  { %2566 = vmatpush.bf16.msra.mxu2 %v6261_v46  ;;  %v7790_v46 = vld [vmem:[%s12288_s1 + $0x704] sm:$0xf] }
 0x21b   :  { %2580 = vmatpush.bf16.msra.mxu3 %v6325_v4  ;;  %2541 = vmatpush.bf16.msra.mxu0 %v6233_v54  ;;  %v6221_v32 = vor.u32 %v7790_v46, %v6218_v59  ;;  %v6282_v4 = vld [vmem:[%s12288_s1 + $0x788] sm:$0xf0] }
 0x21c   :  { %v6285_v43 = vor.u32 %v7806_v62, %v6282_v4  ;;  %v6442_v46 = vld [vmem:[%s12288_s1 + $0x6c8] sm:$0xf0] }
 0x21d   :  { %2557 = vmatpush.bf16.msra.mxu1 %v6281_v22 }
 0x21e   :  { %2567 = vmatpush.bf16.msra.mxu2 %v6253_v18  ;;  %v6402_v18 = vld [vmem:[%s12288_s1 + $0x678] sm:$0xf0] }
 0x21f   :  { %2581 = vmatpush.bf16.msra.mxu3 %v6317_v6  ;;  %2542 = vmatpush.bf16.msra.mxu0 %v6225_v17  ;;  %v6466_v6 = vld [vmem:[%s12288_s1 + $0x6f8] sm:$0xf0]  ;;  %v6405_v10 = vor.u32 %v7772_v47, %v6402_v18  ;;  %v7781_v18 = vld [vmem:[%s12288_s1 + $0x6b4] sm:$0xf0] }
 0x220   :  { %v6469_v31 = vor.u32 %v7788_v26, %v6466_v6  ;;  %v6386_v17 = vld [vmem:[%s12288_s1 + $0x658] sm:$0xf0]  ;;  %v7764_v26 = vld [vmem:[%s12288_s1 + $0x634] sm:$0xf] }
 0x221   :  { %2776 = vmatpush.bf16.msrb.mxu1 %v6465_v36  ;;  %v6389_v23 = vor.u32 %v7768_v24, %v6386_v17  ;;  %v6370_v6 = vld [vmem:[%s12288_s1 + $0x638] sm:$0xf0]  ;;  %v6426_v17 = vld [vmem:[%s12288_s1 + $0x6a8] sm:$0xf0] }
 0x222   :  { %2568 = vmatpush.bf16.msra.mxu2 %v6245_v13  ;;  %v7771_v13 = vld [vmem:[%s12288_s1 + $0x664] sm:$0xf0] }
 0x223   :  { %2582 = vmatpush.bf16.msra.mxu3 %v6309_v35  ;;  %2543 = vmatpush.bf16.msra.mxu0 %v6217_v56  ;;  %v6393_v57 = vor.u32 %v7771_v13, %v6392_v11  ;;  %v7770_v35 = vld [vmem:[%s12288_s1 + $0x664] sm:$0xf] }
 0x224   :  { %v6397_v54 = vor.u32 %v7770_v35, %v6394_v53  ;;  %v7763_v35 = vld [vmem:[%s12288_s1 + $0x624] sm:$0xf0] }
 0x225   :  { %2777 = vmatpush.bf16.msrb.mxu1 %v6457_v29  ;;  %v6433_v29 = vor.u32 %v7781_v18, %v6432_v21  ;;  %v6361_v24 = vor.u32 %v7763_v35, %v6360_v40  ;;  %v7759_v21 = vld [vmem:[%s12288_s1 + $0x604] sm:$0xf0]  ;;  %v7758_v18 = vld [vmem:[%s12288_s1 + $0x604] sm:$0xf]  ;;  %v6410_v40 = vld [vmem:[%s12288_s1 + $0x688] sm:$0xf0] }
 0x226   :  { %2569 = vmatpush.bf16.msra.mxu2 %v6237_v14  ;;  %v6461_v14 = vor.u32 %v7786_v33, %v6458_v25  ;;  %v6424_v33 = vld [vmem:[%s12288_s1 + $0x6a0] sm:$0xf]  ;;  %v7779_v25 = vld [vmem:[%s12288_s1 + $0x6a4] sm:$0xf0] }
 0x227   :  { %2583 = vmatpush.bf16.msra.mxu3 %v6301_v48  ;;  %2762 = vmatpush.bf16.msrb.mxu0 %v6401_v39  ;;  %v6448_v48 = vld [vmem:[%s12288_s1 + $0x6d0] sm:$0xf]  ;;  %v7765_v39 = vld [vmem:[%s12288_s1 + $0x634] sm:$0xf0] }
 0x228   :  { %v6449_v44 = vor.u32 %v7785_v15, %v6448_v48  ;;  %v6362_v48 = vld [vmem:[%s12288_s1 + $0x628] sm:$0xf0] }
 0x22a   :  { %2570 = vmatpush.bf16.msra.mxu2 %v6229_v63  ;;  %v6376_v63 = vld [vmem:[%s12288_s1 + $0x640] sm:$0xf]  ;;  %2778 = vmatpush.bf16.msrb.mxu1 %v6449_v44 }
 0x22b   :  { %2584 = vmatpush.bf16.msra.mxu3 %v6293_v55  ;;  %2763 = vmatpush.bf16.msrb.mxu0 %v6393_v57  ;;  %v6453_v55 = vor.u32 %v7784_v28, %v6450_v61  ;;  %v6377_v4 = vor.u32 %v7767_v52, %v6376_v63  ;;  %v6352_v28 = vld [vmem:[%s12288_s1 + $0x610] sm:$0xf]  ;;  %v7761_v52 = vld [vmem:[%s12288_s1 + $0x614] sm:$0xf0] }
 0x22e   :  { %2571 = vmatpush.bf16.msra.mxu2 %v6221_v32  ;;  %v2243_v32 = vperm.slane %v10114_v42, 5  ;;  %2779 = vmatpush.bf16.msrb.mxu1 %v6441_v50  ;;  %v6353_v50 = vor.u32 %v7761_v52, %v6352_v28 }
 0x22f   :  { %2585 = vmatpush.bf16.msra.mxu3 %v6285_v43  ;;  %2764 = vmatpush.bf16.msrb.mxu0 %v6385_v9  ;;  %v6368_v43 = vld [vmem:[%s12288_s1 + $0x630] sm:$0xf] }
 0x230   :  { %v6369_v57 = vor.u32 %v7765_v39, %v6368_v43  ;;  %v6344_v39 = vld [vmem:[%s12288_s1 + $0x600] sm:$0xf] }
 0x231   :  { %v6345_v35 = vor.u32 %v7759_v21, %v6344_v39  ;;  %v7852_v39 = vld [vmem:[%s12288_s1 + $0x8f4] sm:$0xf]  ;;  %v6596_v21 = vld [vmem:[%s12288_s1 + $0x8f8] sm:$0xf0] }
 0x232   :  { %2790 = vmatpush.bf16.msrb.mxu2 %v6405_v10  ;;  %v7780_v10 = vld [vmem:[%s12288_s1 + $0x6b4] sm:$0xf]  ;;  %2780 = vmatpush.bf16.msrb.mxu1 %v6433_v29 }
 0x233   :  { %2804 = vmatpush.bf16.msrb.mxu3 %v6469_v31  ;;  %v6434_v31 = vld [vmem:[%s12288_s1 + $0x6b8] sm:$0xf0]  ;;  %2765 = vmatpush.bf16.msrb.mxu0 %v6377_v4 }
 0x236   :  { %2791 = vmatpush.bf16.msrb.mxu2 %v6397_v54  ;;  %v6373_v54 = vor.u32 %v7764_v26, %v6370_v6 }
 0x237   :  { %2805 = vmatpush.bf16.msrb.mxu3 %v6461_v14  ;;  %2766 = vmatpush.bf16.msrb.mxu0 %v6369_v57  ;;  %v7774_v57 = vld [vmem:[%s12288_s1 + $0x684] sm:$0xf] }
 0x23a   :  { %2792 = vmatpush.bf16.msrb.mxu2 %v6389_v23 }
 0x23b   :  { %2806 = vmatpush.bf16.msrb.mxu3 %v6453_v55  ;;  %v6365_v55 = vor.u32 %v7762_v34, %v6362_v48  ;;  %2767 = vmatpush.bf16.msrb.mxu0 %v6361_v24 }
 0x23f   :  { %2768 = vmatpush.bf16.msrb.mxu0 %v6353_v50 }
 0x243   :  { %2769 = vmatpush.bf16.msrb.mxu0 %v6345_v35  ;;  %v6524_v35 = vld [vmem:[%s12288_s1 + $0x868] sm:$0xf0] }
 0x274   :  { %v2075_v1 = vpop.f32.mrf.mxu0 }
 0x275   :  { %v2089_v51 = vpop.f32.mrf.mxu1 }
 0x27c   :  { %v2077_v11 = vpop.f32.mrf.mxu0 }
 0x27d   :  { %v2091_v53 = vpop.f32.mrf.mxu1 }
 0x287   :  { %v10030_v49 = vpop.f32.mrf.mxu2  ;;  %v10032_v0 = vpop.f32.mrf.mxu3 }
 0x288   :  { %v2076_v45 = vadd.f32 %v2075_v1, %v10030_v49  ;;  %v2090_v12 = vadd.f32 %v2089_v51, %v10032_v0  ;;  %v6378_v49 = vld [vmem:[%s12288_s1 + $0x648] sm:$0xf0]  ;;  %v7782_v0 = vld [vmem:[%s12288_s1 + $0x6c4] sm:$0xf] }
 0x289   :  { %v6381_v3 = vor.u32 %v7766_v19, %v6378_v49  ;;  %v6445_v36 = vor.u32 %v7782_v0, %v6442_v46  ;;  %v6354_v19 = vld [vmem:[%s12288_s1 + $0x618] sm:$0xf0]  ;;  %v7776_v0 = vld [vmem:[%s12288_s1 + $0x694] sm:$0xf] }
 0x28a   :  { %v6418_v46 = vld [vmem:[%s12288_s1 + $0x698] sm:$0xf0]  ;;  %v6357_v43 = vor.u32 %v7760_v7, %v6354_v19 }
 0x28b   :  { %2793 = vmatpush.bf16.msrb.mxu2 %v6381_v3  ;;  %2807 = vmatpush.bf16.msrb.mxu3 %v6445_v36  ;;  %v7775_v36 = vld [vmem:[%s12288_s1 + $0x684] sm:$0xf0] }
 0x28f   :  { %v10106_v60 = vpop.f32.mrf.mxu2  ;;  %v10108_v5 = vpop.f32.mrf.mxu3  ;;  %2794 = vmatpush.bf16.msrb.mxu2 %v6373_v54 }
 0x290   :  { %v2078_v1 = vadd.f32 %v2077_v11, %v10106_v60  ;;  %v2092_v37 = vadd.f32 %v2091_v53, %v10108_v5  ;;  %v6437_v60 = vor.u32 %v7780_v10, %v6434_v31  ;;  %v7778_v5 = vld [vmem:[%s12288_s1 + $0x6a4] sm:$0xf] }
 0x291   :  { %v6429_v49 = vor.u32 %v7778_v5, %v6426_v17 }
 0x292   :  { %2808 = vmatpush.bf16.msrb.mxu3 %v6437_v60  ;;  %v6413_v60 = vor.u32 %v7774_v57, %v6410_v40  ;;  %v7851_v57 = vld [vmem:[%s12288_s1 + $0x8e4] sm:$0xf0]  ;;  %v7834_v40 = vld [vmem:[%s12288_s1 + $0x864] sm:$0xf] }
 0x293   :  { %2795 = vmatpush.bf16.msrb.mxu2 %v6365_v55 }
 0x296   :  { %2809 = vmatpush.bf16.msrb.mxu3 %v6429_v49 }
 0x297   :  { %v2213_v56 = vpop.f32.mrf.mxu2  ;;  %v2227_v22 = vpop.f32.mrf.mxu3  ;;  %2796 = vmatpush.bf16.msrb.mxu2 %v6357_v43 }
 0x298   :  { %v2232_v59 = vadd.f32 %v2213_v56, %v2076_v45  ;;  %v2233_v62 = vadd.f32 %v2227_v22, %v2090_v12  ;;  %v6416_v45 = vld [vmem:[%s12288_s1 + $0x690] sm:$0xf]  ;;  %v6425_v12 = vor.u32 %v7779_v25, %v6424_v33 }
 0x299   :  { %v6417_v3 = vor.u32 %v7777_v41, %v6416_v45 }
 0x29a   :  { %v2238_v2 = vmul.f32 %v2236_v38, %v2232_v59  ;;  %v2239_v47 = vmul.f32 %v2237_v16, %v2233_v62  ;;  %2781 = vmatpush.bf16.msrb.mxu1 %v6425_v12 }
 0x29c   :  { %v10222_v13 = vadd.f32 %v2242_v58, %v2238_v2  ;;  %v10226_v20 = vadd.f32 %v2243_v32, %v2239_v47  ;;  %v6408_v2 = vld [vmem:[%s12288_s1 + $0x680] sm:$0xf]  ;;  %v6421_v47 = vor.u32 %v7776_v0, %v6418_v46  ;;  %v6594_v0 = vld [vmem:[%s12288_s1 + $0x8f0] sm:$0xf]  ;;  %v7853_v46 = vld [vmem:[%s12288_s1 + $0x8f4] sm:$0xf0] }
 0x29d   :  { %v6409_v53 = vor.u32 %v7775_v36, %v6408_v2 }
 0x29e   :  { %v2248_v51 = vmax.f32 %v10222_v13, 0.0  ;;  %v2249_v14 = vmax.f32 %v10226_v20, 0.0  ;;  %2782 = vmatpush.bf16.msrb.mxu1 %v6417_v3  ;;  %2810 = vmatpush.bf16.msrb.mxu3 %v6421_v47  ;;  %v7883_v13 = vld [vmem:[%s12288_s1 + $0x9e4] sm:$0xf0] }
 0x29f   :  { %v2215_v15 = vpop.f32.mrf.mxu2  ;;  %v2229_v9 = vpop.f32.mrf.mxu3 }
 0x2a0   :  { %v2256_v44 = vrot.slane %v2248_v51, 7  ;;  %v2257_v23 = vrot.slane %v2249_v14, 7  ;;  %v2234_v61 = vadd.f32 %v2215_v15, %v2078_v1  ;;  %v2235_v63 = vadd.f32 %v2229_v9, %v2092_v37 }
 0x2a2   :  { %v2264_v56 = vsel %vm29_vm0, 0.0, %v2256_v44  ;;  %v2265_v22 = vsel %vm29_vm0, 0.0, %v2257_v23  ;;  %v2240_v62 = vmul.f32 %v2236_v38, %v2234_v61  ;;  %v2241_v4 = vmul.f32 %v2237_v16, %v2235_v63  ;;  %2783 = vmatpush.bf16.msrb.mxu1 %v6409_v53  ;;  %2811 = vmatpush.bf16.msrb.mxu3 %v6413_v60  ;;  %v7850_v53 = vld [vmem:[%s12288_s1 + $0x8e4] sm:$0xf] }
 0x2a3   :  { %v10286_v59 = vpack.c.bf16 %v2265_v22, %v2264_v56  ;;  %v2268_v26 = vsel %vm29_vm0, %v2256_v44, 0.0  ;;  %v6530_v56 = vld [vmem:[%s12288_s1 + $0x870] sm:$0xf]  ;;  %v7837_v22 = vld [vmem:[%s12288_s1 + $0x874] sm:$0xf0]  ;;  %v6527_v60 = vor.u32 %v7834_v40, %v6524_v35 }
 0x2a4   :  { %v10303_v38 = vadd.f32 %v2242_v58, %v2240_v62  ;;  %v10307_v16 = vadd.f32 %v2243_v32, %v2241_v4  ;;  %v6346_v58 = vld [vmem:[%s12288_s1 + $0x608] sm:$0xf0]  ;;  %v2269_v32 = vsel %vm29_vm0, %v2257_v23, 0.0  ;;  %v7836_v62 = vld [vmem:[%s12288_s1 + $0x874] sm:$0xf]  ;;  %v6531_v36 = vor.u32 %v7837_v22, %v6530_v56 }
 0x2a5   :  { %v2309_v6 = vshrl.u32 %v10286_v59, 16  ;;  %v2312_v10 = vshll.u32 %v10286_v59, 16  ;;  %v6349_v1 = vor.u32 %v7758_v18, %v6346_v58  ;;  %v10334_v37 = vpack.c.bf16 %v2269_v32, %v2268_v26  ;;  %v6522_v58 = vld [vmem:[%s12288_s1 + $0x860] sm:$0xf]  ;;  %v7835_v26 = vld [vmem:[%s12288_s1 + $0x864] sm:$0xf0] }
 0x2a6   :  { %v2250_v31 = vmax.f32 %v10303_v38, 0.0  ;;  %v2251_v11 = vmax.f32 %v10307_v16, 0.0  ;;  %v6595_v18 = vor.u32 %v7853_v46, %v6594_v0  ;;  %v6535_v32 = vor.u32 %v7836_v62, %v6532_v8  ;;  %v7846_v56 = vld [vmem:[%s12288_s1 + $0x8c4] sm:$0xf]  ;;  %v6572_v22 = vld [vmem:[%s12288_s1 + $0x8c8] sm:$0xf0] }
 0x2a7   :  { %v2311_v33 = vrot.slane %v2309_v6, 4  ;;  %v2314_v25 = vrot.slane %v2312_v10, 5  ;;  %2797 = vmatpush.bf16.msrb.mxu2 %v6349_v1  ;;  %v2318_v44 = vshll.u32 %v10334_v37, 16  ;;  %v6599_v6 = vor.u32 %v7852_v39, %v6596_v21  ;;  %v6586_v10 = vld [vmem:[%s12288_s1 + $0x8e0] sm:$0xf] }
 0x2a8   :  { %v2258_v29 = vrot.slane %v2250_v31, 7  ;;  %v2259_v54 = vrot.slane %v2251_v11, 7  ;;  %v6588_v1 = vld [vmem:[%s12288_s1 + $0x8e8] sm:$0xf0]  ;;  %v2594_v8 = vunpack.c.l.b16 %v10286_v59  ;;  %v6562_v39 = vld [vmem:[%s12288_s1 + $0x8b0] sm:$0xf] }
 0x2a9   :  { %v2315_v17 = vor.u32 %v2314_v25, %v2311_v33  ;;  %v2320_v12 = vrot.slane %v2318_v44, 5  ;;  %v6514_v33 = vld [vmem:[%s12288_s1 + $0x850] sm:$0xf]  ;;  %v7833_v25 = vld [vmem:[%s12288_s1 + $0x854] sm:$0xf0] }
 0x2aa   :  { %v2266_v34 = vsel %vm29_vm0, 0.0, %v2258_v29  ;;  %v2270_v48 = vsel %vm29_vm0, %v2258_v29, 0.0  ;;  %v2267_v15 = vsel %vm29_vm0, 0.0, %v2259_v54  ;;  %v2271_v9 = vsel %vm29_vm0, %v2259_v54, 0.0  ;;  %v6580_v44 = vld [vmem:[%s12288_s1 + $0x8d8] sm:$0xf0] }
 0x2ab   :  { %v10340_v24 = vpack.c.bf16 %v2267_v15, %v2266_v34  ;;  %v10342_v5 = vpack.c.bf16 %v2271_v9, %v2270_v48  ;;  %v2316_v52 = vrot.slane %v2315_v17, 4  ;;  %v6523_v29 = vor.u32 %v7835_v26, %v6522_v58  ;;  %v6578_v48 = vld [vmem:[%s12288_s1 + $0x8d0] sm:$0xf]  ;;  %v7849_v15 = vld [vmem:[%s12288_s1 + $0x8d4] sm:$0xf0] }
 0x2ac   :  { %v6587_v54 = vor.u32 %v7851_v57, %v6586_v10  ;;  %v6591_v34 = vor.u32 %v7850_v53, %v6588_v1  ;;  %v7832_v9 = vld [vmem:[%s12288_s1 + $0x854] sm:$0xf]  ;;  %v6516_v17 = vld [vmem:[%s12288_s1 + $0x858] sm:$0xf0]  ;;  %v7845_v21 = vld [vmem:[%s12288_s1 + $0x8b4] sm:$0xf0] }
 0x2ad   :  { %v2323_v28 = vshrl.u32 %v10340_v24, 16  ;;  %v2326_v23 = vshll.u32 %v10340_v24, 16  ;;  %v2332_v63 = vshll.u32 %v10342_v5, 16  ;;  %v2321_v7 = vsel %vm8404_vm3, %v2316_v52, %v2320_v12  ;;  %v7831_v52 = vld [vmem:[%s12288_s1 + $0x844] sm:$0xf0] }
 0x2ae   :  { %v2368_v4 = vunpack.c.l.b16 %v2321_v7  ;;  %v2369_v3 = vunpack.c.h.b16 %v2321_v7  ;;  %v7830_v7 = vld [vmem:[%s12288_s1 + $0x844] sm:$0xf]  ;;  %v2597_v62 = vunpack.c.h.b16 %v10340_v24  ;;  %v6564_v58 = vld [vmem:[%s12288_s1 + $0x8b8] sm:$0xf0]  ;;  %v6563_v10 = vor.u32 %v7845_v21, %v6562_v39  ;;  %v6490_v57 = vld [vmem:[%s12288_s1 + $0x820] sm:$0xf] }
 0x2af   :  { %v2325_v61 = vrot.slane %v2323_v28, 4  ;;  %v2328_v45 = vrot.slane %v2326_v23, 5  ;;  %v2334_v41 = vrot.slane %v2332_v63, 5  ;;  %v7848_v28 = vld [vmem:[%s12288_s1 + $0x8d4] sm:$0xf]  ;;  %v6515_v23 = vor.u32 %v7833_v25, %v6514_v33 }
 0x2b0   :  { %v6506_v63 = vld [vmem:[%s12288_s1 + $0x840] sm:$0xf]  ;;  %v6583_v12 = vor.u32 %v7848_v28, %v6580_v44  ;;  %v7827_v40 = vld [vmem:[%s12288_s1 + $0x824] sm:$0xf0]  ;;  %v6492_v33 = vld [vmem:[%s12288_s1 + $0x828] sm:$0xf0] }
 0x2b1   :  { %v2329_v55 = vor.u32 %v2328_v45, %v2325_v61  ;;  %v6579_v61 = vor.u32 %v7849_v15, %v6578_v48  ;;  %v6519_v45 = vor.u32 %v7832_v9, %v6516_v17  ;;  %v6507_v0 = vor.u32 %v7831_v52, %v6506_v63  ;;  %v6554_v1 = vld [vmem:[%s12288_s1 + $0x8a0] sm:$0xf]  ;;  %v7842_v25 = vld [vmem:[%s12288_s1 + $0x8a4] sm:$0xf]  ;;  %v6482_v15 = vld [vmem:[%s12288_s1 + $0x810] sm:$0xf] }
 0x2b2   :  { %v7825_v9 = vld [vmem:[%s12288_s1 + $0x814] sm:$0xf0]  ;;  %v6546_v17 = vld [vmem:[%s12288_s1 + $0x890] sm:$0xf]  ;;  %v6484_v63 = vld [vmem:[%s12288_s1 + $0x818] sm:$0xf0] }
 0x2b3   :  { %v2330_v19 = vrot.slane %v2329_v55, 4  ;;  %v6570_v55 = vld [vmem:[%s12288_s1 + $0x8c0] sm:$0xf]  ;;  %v2826_v52 = vrot.slane %v10342_v5, 5  ;;  %v7878_v38 = vld [vmem:[%s12288_s1 + $0x9c4] sm:$0xf] }
 0x2b4   :  { %v6474_v5 = vld [vmem:[%s12288_s1 + $0x800] sm:$0xf]  ;;  %v7876_v16 = vld [vmem:[%s12288_s1 + $0x9b4] sm:$0xf] }
 0x2b5   :  { %v2335_v49 = vsel %vm8404_vm3, %v2330_v19, %v2334_v41  ;;  %v7847_v41 = vld [vmem:[%s12288_s1 + $0x8c4] sm:$0xf0]  ;;  %v6508_v19 = vld [vmem:[%s12288_s1 + $0x848] sm:$0xf0]  ;;  %vm3235_vm3 = vcmask 1043458  }
 0x2b6   :  { %v2370_v50 = vunpack.c.l.b16 %v2335_v49  ;;  %v2371_v43 = vunpack.c.h.b16 %v2335_v49  ;;  %v2596_v49 = vunpack.c.l.b16 %v10340_v24  ;;  %v6571_v46 = vor.u32 %v7847_v41, %v6570_v55 }
 0x2b7   :  { %v6471_v55 = vrot.slane %v10340_v24, 9  ;;  %v2822_v41 = vrot.slane %v10334_v37, 5  ;;  %v6538_v37 = vld [vmem:[%s12288_s1 + $0x880] sm:$0xf] }
 0x2b8   :  { %v2372_v2 = vpack.c.b16 %v2370_v50, %v2368_v4  ;;  %v2373_v47 = vpack.c.b16 %v2371_v43, %v2369_v3  ;;  %v6498_v4 = vld [vmem:[%s12288_s1 + $0x830] sm:$0xf]  ;;  %v7829_v50 = vld [vmem:[%s12288_s1 + $0x834] sm:$0xf0]  ;;  %v6511_v3 = vor.u32 %v7830_v7, %v6508_v19  ;;  %v6575_v43 = vor.u32 %v7846_v56, %v6572_v22  ;;  %v7823_v56 = vld [vmem:[%s12288_s1 + $0x804] sm:$0xf0] }
 0x2b9   :  { %v2598_v26 = vpack.c.b16 %v2596_v49, %v2594_v8  ;;  %v6483_v7 = vor.u32 %v7825_v9, %v6482_v15  ;;  %v6470_v22 = vrot.slane %v10286_v59, 9 }
 0x2ba   :  { %2544 = vmatmul.bf16.vlgmr.msra.gmra.mxu0 %v2372_v2  ;;  %2558 = vmatmul.bf16.vlgmr.msra.gmra.mxu1 %v2373_v47 }
 0x2bb   :  { %2572 = vmatmul.bf16.vlgmr.msra.gmra.mxu2 %v2372_v2  ;;  %2586 = vmatmul.bf16.vlgmr.msra.gmra.mxu3 %v2373_v47  ;;  %v7828_v2 = vld [vmem:[%s12288_s1 + $0x834] sm:$0xf]  ;;  %v2595_v47 = vunpack.c.h.b16 %v10286_v59  ;;  %v6476_v59 = vld [vmem:[%s12288_s1 + $0x808] sm:$0xf0]  ;;  %v2823_v8 = vsel %vm8506_vm6, %v6470_v22, %v2822_v41 }
 0x2bc   :  { %3028 = vmatpush.bf16.msra.mxu0 %v6531_v36  ;;  %3042 = vmatpush.bf16.msra.mxu1 %v6595_v18  ;;  %v6500_v36 = vld [vmem:[%s12288_s1 + $0x838] sm:$0xf0]  ;;  %v7844_v18 = vld [vmem:[%s12288_s1 + $0x8b4] sm:$0xf] }
 0x2bd   :  { %3056 = vmatpush.bf16.msra.mxu2 %v6535_v32  ;;  %3070 = vmatpush.bf16.msra.mxu3 %v6599_v6  ;;  %v2599_v32 = vpack.c.b16 %v2597_v62, %v2595_v47  ;;  %v6499_v6 = vor.u32 %v7829_v50, %v6498_v4  ;;  %v6503_v35 = vor.u32 %v7828_v2, %v6500_v36  ;;  %v7838_v62 = vld [vmem:[%s12288_s1 + $0x884] sm:$0xf]  ;;  %v6540_v4 = vld [vmem:[%s12288_s1 + $0x888] sm:$0xf0]  ;;  %v2860_v36 = vunpack.c.l.b16 %v2823_v8 }
 0x2be   :  { %v6567_v53 = vor.u32 %v7844_v18, %v6564_v58  ;;  %v2827_v50 = vsel %vm8506_vm6, %v6471_v55, %v2826_v52  ;;  %v6543_v21 = vor.u32 %v7838_v62, %v6540_v4  ;;  %v2861_v18 = vunpack.c.h.b16 %v2823_v8  ;;  %vm10712_vm6 = vmor %vm3245_vm1, %vm3246_vm2 }
 0x2bf   :  { %v2862_v2 = vunpack.c.l.b16 %v2827_v50  ;;  %v2863_v47 = vunpack.c.h.b16 %v2827_v50  ;;  %v3095_v50 = vperm.slane %v10114_v42, 7 }
 0x2c0   :  { %3029 = vmatpush.bf16.msra.mxu0 %v6523_v29  ;;  %3043 = vmatpush.bf16.msra.mxu1 %v6587_v54  ;;  %v7843_v29 = vld [vmem:[%s12288_s1 + $0x8a4] sm:$0xf0]  ;;  %v7826_v54 = vld [vmem:[%s12288_s1 + $0x824] sm:$0xf] }
 0x2c1   :  { %3057 = vmatpush.bf16.msra.mxu2 %v6527_v60  ;;  %3071 = vmatpush.bf16.msra.mxu3 %v6591_v34  ;;  %v6556_v60 = vld [vmem:[%s12288_s1 + $0x8a8] sm:$0xf0]  ;;  %v6491_v34 = vor.u32 %v7827_v40, %v6490_v57  ;;  %v6555_v48 = vor.u32 %v7843_v29, %v6554_v1  ;;  %v6495_v28 = vor.u32 %v7826_v54, %v6492_v33 }
 0x2c2   :  { %v6559_v44 = vor.u32 %v7842_v25, %v6556_v60  ;;  %v2864_v58 = vpack.c.b16 %v2862_v2, %v2860_v36  ;;  %v7884_v2 = vld [vmem:[%s12288_s1 + $0x9f4] sm:$0xf] }
 0x2c4   :  { %3030 = vmatpush.bf16.msra.mxu0 %v6515_v23  ;;  %3044 = vmatpush.bf16.msra.mxu1 %v6579_v61  ;;  %v7841_v23 = vld [vmem:[%s12288_s1 + $0x894] sm:$0xf0]  ;;  %v7824_v61 = vld [vmem:[%s12288_s1 + $0x814] sm:$0xf] }
 0x2c5   :  { %3058 = vmatpush.bf16.msra.mxu2 %v6519_v45  ;;  %3072 = vmatpush.bf16.msra.mxu3 %v6583_v12  ;;  %v7840_v45 = vld [vmem:[%s12288_s1 + $0x894] sm:$0xf]  ;;  %v6548_v12 = vld [vmem:[%s12288_s1 + $0x898] sm:$0xf0]  ;;  %v6547_v19 = vor.u32 %v7841_v23, %v6546_v17  ;;  %v6487_v49 = vor.u32 %v7824_v61, %v6484_v63  ;;  %v3088_v63 = vperm.slane %v10027_v30, 6 }
 0x2c6   :  { %v6551_v24 = vor.u32 %v7840_v45, %v6548_v12 }
 0x2c8   :  { %3031 = vmatpush.bf16.msra.mxu0 %v6507_v0  ;;  %3045 = vmatpush.bf16.msra.mxu1 %v6571_v46  ;;  %v7839_v0 = vld [vmem:[%s12288_s1 + $0x884] sm:$0xf0]  ;;  %v7822_v46 = vld [vmem:[%s12288_s1 + $0x804] sm:$0xf] }
 0x2c9   :  { %3059 = vmatpush.bf16.msra.mxu2 %v6511_v3  ;;  %3073 = vmatpush.bf16.msra.mxu3 %v6575_v43  ;;  %v6475_v3 = vor.u32 %v7823_v56, %v6474_v5  ;;  %v6539_v43 = vor.u32 %v7839_v0, %v6538_v37  ;;  %v6479_v39 = vor.u32 %v7822_v46, %v6476_v59 }
 0x2ca   :  { %2770 = vmatmul.bf16.vlgmr.msrb.gmra.mxu0 %v2598_v26  ;;  %2784 = vmatmul.bf16.vlgmr.msrb.gmra.mxu1 %v2599_v32 }
 0x2cb   :  { %2798 = vmatmul.bf16.vlgmr.msrb.gmra.mxu2 %v2598_v26  ;;  %2812 = vmatmul.bf16.vlgmr.msrb.gmra.mxu3 %v2599_v32  ;;  %v2865_v26 = vpack.c.b16 %v2863_v47, %v2861_v18 }
 0x2cc   :  { %3032 = vmatpush.bf16.msra.mxu0 %v6499_v6  ;;  %3046 = vmatpush.bf16.msra.mxu1 %v6563_v10 }
 0x2cd   :  { %3060 = vmatpush.bf16.msra.mxu2 %v6503_v35  ;;  %3074 = vmatpush.bf16.msra.mxu3 %v6567_v53 }
 0x2d0   :  { %3033 = vmatpush.bf16.msra.mxu0 %v6491_v34  ;;  %3047 = vmatpush.bf16.msra.mxu1 %v6555_v48 }
 0x2d1   :  { %3061 = vmatpush.bf16.msra.mxu2 %v6495_v28  ;;  %3075 = vmatpush.bf16.msra.mxu3 %v6559_v44 }
 0x2d4   :  { %3034 = vmatpush.bf16.msra.mxu0 %v6483_v7  ;;  %3048 = vmatpush.bf16.msra.mxu1 %v6547_v19  ;;  %v3094_v7 = vperm.slane %v10027_v30, 7  ;;  %v6658_v30 = vld [vmem:[%s12288_s1 + $0x9f0] sm:$0xf] }
 0x2d5   :  { %3062 = vmatpush.bf16.msra.mxu2 %v6487_v49  ;;  %3076 = vmatpush.bf16.msra.mxu3 %v6551_v24  ;;  %v3089_v49 = vperm.slane %v10114_v42, 6  ;;  %v6660_v42 = vld [vmem:[%s12288_s1 + $0x9f8] sm:$0xf0] }
 0x2d6   :  { %v6663_v47 = vor.u32 %v7884_v2, %v6660_v42 }
 0x2d8   :  { %3035 = vmatpush.bf16.msra.mxu0 %v6475_v3  ;;  %3049 = vmatpush.bf16.msra.mxu1 %v6539_v43  ;;  %v7885_v43 = vld [vmem:[%s12288_s1 + $0x9f4] sm:$0xf0] }
 0x2d9   :  { %3063 = vmatpush.bf16.msra.mxu2 %v6479_v39  ;;  %3077 = vmatpush.bf16.msra.mxu3 %v6543_v21  ;;  %v6659_v21 = vor.u32 %v7885_v43, %v6658_v30 }
 0x2db   :  { %3036 = vmatmul.bf16.vlgmr.msra.gmra.mxu0 %v2864_v58  ;;  %3050 = vmatmul.bf16.vlgmr.msra.gmra.mxu1 %v2865_v26 }
 0x2dc   :  { %3064 = vmatmul.bf16.vlgmr.msra.gmra.mxu2 %v2864_v58  ;;  %3078 = vmatmul.bf16.vlgmr.msra.gmra.mxu3 %v2865_v26 }
 0x2dd   :  { %3381 = vmatpush.bf16.msrb.mxu0 %v6659_v21  ;;  %3394 = vmatpush.bf16.msrb.mxu1 %v6663_v47 }
 0x337   :  { %v2545_v27 = vpop.f32.mrf.mxu0  ;;  %v2559_v32 = vpop.f32.mrf.mxu1 }
 0x338   :  { %v2560_v34 = vadd.f32 %v2559_v32, %v2545_v27 }
 0x33e   :  { %v2573_v6 = vpop.f32.mrf.mxu2  ;;  %v2587_v10 = vpop.f32.mrf.mxu3 }
 0x33f   :  { %v2547_v57 = vpop.f32.mrf.mxu0  ;;  %v2561_v40 = vpop.f32.mrf.mxu1  ;;  %v2588_v61 = vadd.f32 %v2587_v10, %v2573_v6 }
 0x340   :  { %v2562_v52 = vadd.f32 %v2561_v40, %v2547_v57  ;;  %v6650_v57 = vld [vmem:[%s12288_s1 + $0x9e0] sm:$0xf]  ;;  %v7882_v40 = vld [vmem:[%s12288_s1 + $0x9e4] sm:$0xf] }
 0x346   :  { %v2575_v35 = vpop.f32.mrf.mxu2  ;;  %v2589_v53 = vpop.f32.mrf.mxu3 }
 0x347   :  { %v2771_v1 = vpop.f32.mrf.mxu0  ;;  %v2785_v29 = vpop.f32.mrf.mxu1  ;;  %v2590_v59 = vadd.f32 %v2589_v53, %v2575_v35  ;;  %v6652_v35 = vld [vmem:[%s12288_s1 + $0x9e8] sm:$0xf0] }
 0x348   :  { %v2772_v48 = vadd.f32 %v2771_v1, %v2560_v34  ;;  %v6655_v1 = vor.u32 %v7882_v40, %v6652_v35 }
 0x34a   :  { %v2786_v44 = vadd.f32 %v2785_v29, %v2772_v48  ;;  %3395 = vmatpush.bf16.msrb.mxu1 %v6655_v1  ;;  %v7880_v48 = vld [vmem:[%s12288_s1 + $0x9d4] sm:$0xf] }
 0x34e   :  { %v2799_v54 = vpop.f32.mrf.mxu2  ;;  %v2813_v33 = vpop.f32.mrf.mxu3 }
 0x34f   :  { %v2773_v25 = vpop.f32.mrf.mxu0  ;;  %v2787_v60 = vpop.f32.mrf.mxu1  ;;  %v2800_v12 = vadd.f32 %v2799_v54, %v2588_v61  ;;  %v6642_v54 = vld [vmem:[%s12288_s1 + $0x9d0] sm:$0xf] }
 0x350   :  { %v2774_v55 = vadd.f32 %v2773_v25, %v2562_v52 }
 0x351   :  { %v2814_v56 = vadd.f32 %v2813_v33, %v2800_v12  ;;  %v7881_v33 = vld [vmem:[%s12288_s1 + $0x9d4] sm:$0xf0]  ;;  %v7879_v12 = vld [vmem:[%s12288_s1 + $0x9c4] sm:$0xf0] }
 0x352   :  { %v2788_v0 = vadd.f32 %v2787_v60, %v2774_v55  ;;  %v6643_v34 = vor.u32 %v7881_v33, %v6642_v54  ;;  %v6620_v33 = vld [vmem:[%s12288_s1 + $0x9a8] sm:$0xf0] }
 0x356   :  { %v2801_v15 = vpop.f32.mrf.mxu2  ;;  %v2815_v9 = vpop.f32.mrf.mxu3 }
 0x357   :  { %v2802_v8 = vadd.f32 %v2801_v15, %v2590_v59  ;;  %v6644_v15 = vld [vmem:[%s12288_s1 + $0x9d8] sm:$0xf0] }
 0x358   :  { %v3037_v17 = vpop.f32.mrf.mxu0  ;;  %v3051_v28 = vpop.f32.mrf.mxu1 }
 0x359   :  { %v3052_v23 = vadd.f32 %v3051_v28, %v3037_v17  ;;  %v2816_v32 = vadd.f32 %v2815_v9, %v2802_v8  ;;  %v6647_v9 = vor.u32 %v7880_v48, %v6644_v15  ;;  %v6722_v15 = vld [vmem:[%s12288_s1 + $0x970] sm:$0xf] }
 0x35b   :  { %v3084_v45 = vadd.f32 %v3052_v23, %v2786_v44  ;;  %3396 = vmatpush.bf16.msrb.mxu1 %v6647_v9 }
 0x35d   :  { %v3090_v41 = vmul.f32 %v3088_v63, %v3084_v45  ;;  %v6634_v45 = vld [vmem:[%s12288_s1 + $0x9c0] sm:$0xf] }
 0x35f   :  { %v3065_v19 = vpop.f32.mrf.mxu2  ;;  %v3079_v5 = vpop.f32.mrf.mxu3  ;;  %v3096_v62 = vadd.f32 %v3094_v7, %v3090_v41 }
 0x360   :  { %v3080_v22 = vadd.f32 %v3079_v5, %v3065_v19  ;;  %v3039_v24 = vpop.f32.mrf.mxu0  ;;  %v3053_v37 = vpop.f32.mrf.mxu1  ;;  %v6635_v19 = vor.u32 %v7879_v12, %v6634_v45 }
 0x361   :  { %v3054_v46 = vadd.f32 %v3053_v37, %v3039_v24  ;;  %v3100_v36 = vadd.f32 %v3096_v62, %v2248_v51  ;;  %v6651_v51 = vor.u32 %v7883_v13, %v6650_v57  ;;  %v7875_v13 = vld [vmem:[%s12288_s1 + $0x9a4] sm:$0xf0] }
 0x362   :  { %v3085_v4 = vadd.f32 %v3080_v22, %v2814_v56 }
 0x363   :  { %v3086_v3 = vadd.f32 %v3054_v46, %v2788_v0  ;;  %v3104_v20 = vmax.f32 %v3100_v36, 0.0  ;;  %3382 = vmatpush.bf16.msrb.mxu0 %v6651_v51 }
 0x364   :  { %v3091_v39 = vmul.f32 %v3089_v49, %v3085_v4  ;;  %v6626_v4 = vld [vmem:[%s12288_s1 + $0x9b0] sm:$0xf] }
 0x365   :  { %v3092_v58 = vmul.f32 %v3088_v63, %v3086_v3 }
 0x366   :  { %v3097_v18 = vadd.f32 %v3095_v50, %v3091_v39 }
 0x367   :  { %v3067_v26 = vpop.f32.mrf.mxu2  ;;  %v3081_v27 = vpop.f32.mrf.mxu3  ;;  %v3098_v29 = vadd.f32 %v3094_v7, %v3092_v58  ;;  %3383 = vmatpush.bf16.msrb.mxu0 %v6643_v34 }
 0x368   :  { %v3101_v6 = vadd.f32 %v3097_v18, %v2249_v14  ;;  %v3082_v10 = vadd.f32 %v3081_v27, %v3067_v26  ;;  %v6618_v27 = vld [vmem:[%s12288_s1 + $0x9a0] sm:$0xf] }
 0x369   :  { %v3102_v63 = vadd.f32 %v3098_v29, %v2250_v31 }
 0x36a   :  { %v3105_v14 = vmax.f32 %v3101_v6, 0.0  ;;  %v3087_v53 = vadd.f32 %v3082_v10, %v2816_v32 }
 0x36b   :  { %3384 = vmatpush.bf16.msrb.mxu0 %v6635_v19  ;;  %v3106_v3 = vmax.f32 %v3102_v63, 0.0 }
 0x36c   :  { %v3108_v25 = vmax.f32 %v3104_v20, %v3105_v14  ;;  %v3093_v60 = vmul.f32 %v3089_v49, %v3087_v53  ;;  %v6636_v49 = vld [vmem:[%s12288_s1 + $0x9c8] sm:$0xf0]  ;;  %v7874_v14 = vld [vmem:[%s12288_s1 + $0x9a4] sm:$0xf] }
 0x36d   :  { %v6639_v37 = vor.u32 %v7878_v38, %v6636_v49  ;;  %v6623_v12 = vor.u32 %v7874_v14, %v6620_v33  ;;  %v7864_v33 = vld [vmem:[%s12288_s1 + $0x954] sm:$0xf] }
 0x36e   :  { %v3112_v17 = vrot.slane %v3108_v25, 2  ;;  %v3113_v28 = vrot.slane %v3108_v25, 4  ;;  %v3114_v44 = vrot.slane %v3108_v25, 6  ;;  %v3124_v23 = vsel %vm1630_vm7, %v3108_v25, -inf }
 0x36f   :  { %v3125_v61 = vrot.slane %v3124_v23, 4  ;;  %v3099_v52 = vadd.f32 %v3095_v50, %v3093_v60  ;;  %v7877_v50 = vld [vmem:[%s12288_s1 + $0x9b4] sm:$0xf0]  ;;  %3397 = vmatpush.bf16.msrb.mxu1 %v6639_v37 }
 0x370   :  { %v3131_v55 = vsel %vm1630_vm7, %v3112_v17, -inf  ;;  %v3138_v41 = vsel %vm1630_vm7, %v3113_v28, -inf  ;;  %v3145_v7 = vsel %vm1630_vm7, %v3114_v44, -inf  ;;  %v6627_v43 = vor.u32 %v7877_v50, %v6626_v4 }
 0x371   :  { %v3126_v31 = vmax.f32 %v3124_v23, %v3125_v61  ;;  %v3132_v5 = vrot.slane %v3131_v55, 4  ;;  %v3139_v56 = vrot.slane %v3138_v41, 4  ;;  %v3146_v22 = vrot.slane %v3145_v7, 4  ;;  %v7869_v23 = vld [vmem:[%s12288_s1 + $0x974] sm:$0xf0] }
 0x372   :  { %v3103_v24 = vadd.f32 %v3099_v52, %v2251_v11  ;;  %v6628_v11 = vld [vmem:[%s12288_s1 + $0x9b8] sm:$0xf0]  ;;  %3385 = vmatpush.bf16.msrb.mxu0 %v6627_v43  ;;  %v6619_v44 = vor.u32 %v7875_v13, %v6618_v27  ;;  %v7868_v61 = vld [vmem:[%s12288_s1 + $0x974] sm:$0xf]  ;;  %v6716_v43 = vld [vmem:[%s12288_s1 + $0x968] sm:$0xf0] }
 0x373   :  { %v3127_v0 = vrot.slane %v3126_v31, 2  ;;  %v3133_v46 = vmax.f32 %v3131_v55, %v3132_v5  ;;  %v3140_v59 = vmax.f32 %v3138_v41, %v3139_v56  ;;  %v3147_v62 = vmax.f32 %v3145_v7, %v3146_v22  ;;  %v6724_v55 = vld [vmem:[%s12288_s1 + $0x978] sm:$0xf0]  ;;  %v6610_v41 = vld [vmem:[%s12288_s1 + $0x990] sm:$0xf] }
 0x374   :  { %v3107_v30 = vmax.f32 %v3103_v24, 0.0  ;;  %v6631_v47 = vor.u32 %v7876_v16, %v6628_v11  ;;  %v7873_v7 = vld [vmem:[%s12288_s1 + $0x994] sm:$0xf0]  ;;  %v7872_v56 = vld [vmem:[%s12288_s1 + $0x994] sm:$0xf] }
 0x375   :  { %v3128_v8 = vmax.f32 %v3126_v31, %v3127_v0  ;;  %v3134_v39 = vrot.slane %v3133_v46, 2  ;;  %v3141_v21 = vrot.slane %v3140_v59, 2  ;;  %v3148_v2 = vrot.slane %v3147_v62, 2  ;;  %v6612_v22 = vld [vmem:[%s12288_s1 + $0x998] sm:$0xf0] }
 0x376   :  { %v3109_v42 = vmax.f32 %v3106_v3, %v3107_v30  ;;  %3398 = vmatpush.bf16.msrb.mxu1 %v6631_v47  ;;  %3386 = vmatpush.bf16.msrb.mxu0 %v6619_v44  ;;  %v6723_v3 = vor.u32 %v7869_v23, %v6722_v15  ;;  %v7866_v30 = vld [vmem:[%s12288_s1 + $0x964] sm:$0xf]  ;;  %v6708_v15 = vld [vmem:[%s12288_s1 + $0x958] sm:$0xf0] }
 0x377   :  { %v3129_v36 = vrot.slane %v3128_v8, 1  ;;  %v3135_v18 = vmax.f32 %v3133_v46, %v3134_v39  ;;  %v3142_v58 = vmax.f32 %v3140_v59, %v3141_v21  ;;  %v3149_v26 = vmax.f32 %v3147_v62, %v3148_v2  ;;  %v6714_v46 = vld [vmem:[%s12288_s1 + $0x960] sm:$0xf]  ;;  %v7867_v59 = vld [vmem:[%s12288_s1 + $0x964] sm:$0xf0] }
 0x378   :  { %v3115_v32 = vrot.slane %v3109_v42, 2  ;;  %v3116_v6 = vrot.slane %v3109_v42, 4  ;;  %v3117_v10 = vrot.slane %v3109_v42, 6  ;;  %v3152_v57 = vsel %vm1630_vm7, %v3109_v42, -inf  ;;  %v6602_v21 = vld [vmem:[%s12288_s1 + $0x980] sm:$0xf]  ;;  %3492 = vmatpush.bf16.msrb.mxu2 %v6723_v3 }
 0x379   :  { %v3130_v51 = vmax.f32 %v3128_v8, %v3129_v36  ;;  %v3136_v40 = vrot.slane %v3135_v18, 1  ;;  %v3143_v35 = vrot.slane %v3142_v58, 1  ;;  %v3150_v20 = vrot.slane %v3149_v26, 1  ;;  %v7871_v2 = vld [vmem:[%s12288_s1 + $0x984] sm:$0xf0] }
 0x37a   :  { %v3153_v53 = vrot.slane %v3152_v57, 4  ;;  %v3159_v1 = vsel %vm1630_vm7, %v3115_v32, -inf  ;;  %v3166_v29 = vsel %vm1630_vm7, %v3116_v6, -inf  ;;  %v3173_v54 = vsel %vm1630_vm7, %v3117_v10, -inf  ;;  %3399 = vmatpush.bf16.msrb.mxu1 %v6623_v12 }
 0x37b   :  { %v3137_v25 = vmax.f32 %v3135_v18, %v3136_v40  ;;  %v3144_v60 = vmax.f32 %v3142_v58, %v3143_v35  ;;  %v3151_v34 = vmax.f32 %v3149_v26, %v3150_v20  ;;  %v3160_v48 = vrot.slane %v3159_v1, 4  ;;  %v7870_v58 = vld [vmem:[%s12288_s1 + $0x984] sm:$0xf]  ;;  %v6604_v26 = vld [vmem:[%s12288_s1 + $0x988] sm:$0xf0] }
 0x37c   :  { %v3154_v9 = vmax.f32 %v3152_v57, %v3153_v53  ;;  %v3167_v17 = vrot.slane %v3166_v29, 4  ;;  %v3174_v28 = vrot.slane %v3173_v54, 4  ;;  %v6727_v39 = vor.u32 %v7868_v61, %v6724_v55  ;;  %v6706_v35 = vld [vmem:[%s12288_s1 + $0x950] sm:$0xf]  ;;  %v7900_v61 = vld [vmem:[%s12288_s1 + $0xa74] sm:$0xf] }
 0x37d   :  { %v3188_v63 = vsel %vm1759_vm8, %v3137_v25, %v3130_v51  ;;  %v3197_v52 = vsel %vm1761_vm9, %v3137_v25, %v3130_v51  ;;  %v3161_v45 = vmax.f32 %v3159_v1, %v3160_v48  ;;  %v6611_v18 = vor.u32 %v7873_v7, %v6610_v41  ;;  %v7863_v41 = vld [vmem:[%s12288_s1 + $0x944] sm:$0xf0]  ;;  %v7862_v7 = vld [vmem:[%s12288_s1 + $0x944] sm:$0xf]  ;;  %v6682_v20 = vld [vmem:[%s12288_s1 + $0x920] sm:$0xf] }
 0x37e   :  { %v3189_v19 = vsel %vm1761_vm9, %v3144_v60, %v3188_v63  ;;  %v3198_v38 = vsel %vm1763_vm10, %v3144_v60, %v3197_v52  ;;  %v3155_v31 = vrot.slane %v3154_v9, 2  ;;  %v3168_v5 = vmax.f32 %v3166_v29, %v3167_v17  ;;  %3505 = vmatpush.bf16.msrb.mxu3 %v6727_v39  ;;  %v7901_v17 = vld [vmem:[%s12288_s1 + $0xa74] sm:$0xf0]  ;;  %v6790_v63 = vld [vmem:[%s12288_s1 + $0xa78] sm:$0xf0] }
 0x37f   :  { %v3190_v49 = vsel %vm1763_vm10, %v3151_v34, %v3189_v19  ;;  %v3199_v24 = vsel %vm1765_vm11, %v3151_v34, %v3198_v38  ;;  %v3162_v37 = vrot.slane %v3161_v45, 2  ;;  %v3175_v0 = vmax.f32 %v3173_v54, %v3174_v28  ;;  %3387 = vmatpush.bf16.msrb.mxu0 %v6611_v18  ;;  %v7865_v54 = vld [vmem:[%s12288_s1 + $0x954] sm:$0xf0]  ;;  %v6698_v52 = vld [vmem:[%s12288_s1 + $0x940] sm:$0xf] }
 0x380   :  { %v3205_v62 = vsel %vm29_vm0, 0.0, %v3199_v24  ;;  %v3156_v4 = vmax.f32 %v3154_v9, %v3155_v31  ;;  %v3169_v50 = vrot.slane %v3168_v5, 2  ;;  %v6615_v6 = vor.u32 %v7872_v56, %v6612_v22  ;;  %v6788_v9 = vld [vmem:[%s12288_s1 + $0xa70] sm:$0xf]  ;;  %v6700_v19 = vld [vmem:[%s12288_s1 + $0x948] sm:$0xf0] }
 0x381   :  { %v3208_v16 = vsel %vm3207_vm15, %v3205_v62, 0.0  ;;  %v3163_v11 = vmax.f32 %v3161_v45, %v3162_v37  ;;  %v3176_v8 = vrot.slane %v3175_v0, 2  ;;  %v6715_v10 = vor.u32 %v7867_v59, %v6714_v46  ;;  %v7899_v59 = vld [vmem:[%s12288_s1 + $0xa64] sm:$0xf0]  ;;  %v7898_v62 = vld [vmem:[%s12288_s1 + $0xa64] sm:$0xf] }
 0x382   :  { %v10698_v42 = vpack.c.bf16 %v3208_v16, %v3208_v16  ;;  %v3157_v47 = vrot.slane %v3156_v4, 1  ;;  %v3170_v36 = vmax.f32 %v3168_v5, %v3169_v50  ;;  %v6719_v40 = vor.u32 %v7866_v30, %v6716_v43  ;;  %3400 = vmatpush.bf16.msrb.mxu1 %v6615_v6  ;;  %v6690_v43 = vld [vmem:[%s12288_s1 + $0x930] sm:$0xf]  ;;  %v7861_v16 = vld [vmem:[%s12288_s1 + $0x934] sm:$0xf0] }
 0x383   :  { %v3164_v27 = vrot.slane %v3163_v11, 1  ;;  %v3177_v32 = vmax.f32 %v3175_v0, %v3176_v8  ;;  %v6603_v1 = vor.u32 %v7871_v2, %v6602_v21  ;;  %v6607_v29 = vor.u32 %v7870_v58, %v6604_v26  ;;  %3493 = vmatpush.bf16.msrb.mxu2 %v6715_v10  ;;  %v7860_v2 = vld [vmem:[%s12288_s1 + $0x934] sm:$0xf] }
 0x384   :  { %v3230_v57 = vrot.slane %v10698_v42, 2  ;;  %v3158_v13 = vmax.f32 %v3156_v4, %v3157_v47  ;;  %v3171_v51 = vrot.slane %v3170_v36, 1  ;;  %3506 = vmatpush.bf16.msrb.mxu3 %v6719_v40  ;;  %v6707_v55 = vor.u32 %v7865_v54, %v6706_v35  ;;  %v6782_v4 = vld [vmem:[%s12288_s1 + $0xa68] sm:$0xf0]  ;;  %v6692_v47 = vld [vmem:[%s12288_s1 + $0x938] sm:$0xf0] }
 0x385   :  { %v3165_v14 = vmax.f32 %v3163_v11, %v3164_v27  ;;  %v3178_v53 = vrot.slane %v3177_v32, 1  ;;  %3388 = vmatpush.bf16.msrb.mxu0 %v6603_v1  ;;  %v6711_v0 = vor.u32 %v7864_v33, %v6708_v15  ;;  %v6789_v46 = vor.u32 %v7901_v17, %v6788_v9  ;;  %v6772_v27 = vld [vmem:[%s12288_s1 + $0xa50] sm:$0xf]  ;;  %v6774_v35 = vld [vmem:[%s12288_s1 + $0xa58] sm:$0xf0] }
 0x386   :  { %v10724_v25 = vsel %vm1630_vm7, %v10698_v42, %v3230_v57  ;;  %v10728_v60 = vsel %vm3235_vm3, %v10698_v42, %v3230_v57  ;;  %v3172_v34 = vmax.f32 %v3170_v36, %v3171_v51  ;;  %v3191_v48 = vsel %vm1765_vm11, %v3158_v13, %v3190_v49  ;;  %3401 = vmatpush.bf16.msrb.mxu1 %v6607_v29  ;;  %v6780_v49 = vld [vmem:[%s12288_s1 + $0xa60] sm:$0xf]  ;;  %v7858_v29 = vld [vmem:[%s12288_s1 + $0x924] sm:$0xf]  ;;  %v6684_v54 = vld [vmem:[%s12288_s1 + $0x928] sm:$0xf0] }
 0x387   :  { %v3238_v28 = vrot.slane %v10728_v60, 2  ;;  %v3252_v44 = vshrl.u32 %v10724_v25, 16  ;;  %v3255_v23 = vshll.u32 %v10724_v25, 16  ;;  %v3192_v45 = vsel %vm1767_vm12, %v3165_v14, %v3191_v48  ;;  %vm10766_vm12 = vmor %vm10712_vm6, %vm3248_vm4  ;;  %3494 = vmatpush.bf16.msrb.mxu2 %v6707_v55  ;;  %v7895_v48 = vld [vmem:[%s12288_s1 + $0xa44] sm:$0xf0] }
 0x388   :  { %v3200_v12 = vsel %vm1761_vm9, %v3165_v14, %v3158_v13  ;;  %v3179_v22 = vmax.f32 %v3177_v32, %v3178_v53  ;;  %v3193_v24 = vsel %vm1769_vm13, %v3172_v34, %v3192_v45  ;;  %vm10796_vm1 = vmor %vm10766_vm12, %vm3250_vm5  ;;  %3507 = vmatpush.bf16.msrb.mxu3 %v6711_v0  ;;  %v6793_v39 = vor.u32 %v7900_v61, %v6790_v63  ;;  %v7897_v32 = vld [vmem:[%s12288_s1 + $0xa54] sm:$0xf0]  ;;  %v7896_v13 = vld [vmem:[%s12288_s1 + $0xa54] sm:$0xf] }
 0x389   :  { %v3254_v31 = vrot.slane %v3252_v44, 6  ;;  %v3257_v5 = vrot.slane %v3255_v23, 7  ;;  %v3261_v56 = vshll.u32 %v3238_v28, 16  ;;  %v3201_v37 = vsel %vm1763_vm10, %v3172_v34, %v3200_v12  ;;  %3638 = vmatpush.bf16.msra.mxu0 %v6789_v46  ;;  %v7859_v14 = vld [vmem:[%s12288_s1 + $0x924] sm:$0xf0] }
 0x38a   :  { %v3194_v30 = vsel %vm1771_vm14, %v3179_v22, %v3193_v24  ;;  %v3202_v8 = vsel %vm1765_vm11, %v3179_v22, %v3201_v37  ;;  %v6699_v21 = vor.u32 %v7863_v41, %v6698_v52  ;;  %v6703_v58 = vor.u32 %v7862_v7, %v6700_v19  ;;  %3651 = vmatpush.bf16.msra.mxu1 %v6793_v39  ;;  %v6764_v34 = vld [vmem:[%s12288_s1 + $0xa40] sm:$0xf]  ;;  %v7894_v17 = vld [vmem:[%s12288_s1 + $0xa44] sm:$0xf]  ;;  %v6766_v44 = vld [vmem:[%s12288_s1 + $0xa48] sm:$0xf0] }
 0x38b   :  { %v3258_v50 = vor.u32 %v3257_v5, %v3254_v31  ;;  %v3263_v3 = vrot.slane %v3261_v56, 7  ;;  %3196 = vst [vmem:[%s12292_s4] sm:$0xff] %v3194_v30  ;;  %v3206_v18 = vsel %vm29_vm0, 0.0, %v3202_v8  ;;  %v6781_v26 = vor.u32 %v7899_v59, %v6780_v49  ;;  %v6674_v52 = vld [vmem:[%s12288_s1 + $0x910] sm:$0xf]  ;;  %v7857_v45 = vld [vmem:[%s12288_s1 + $0x914] sm:$0xf0]  ;;  %vm3522_vm14 = vmor %vm29_vm0, %vm1761_vm9 }
 0x38c   :  { %v3209_v6 = vsel %vm3207_vm15, %v3206_v18, 0.0  ;;  %3495 = vmatpush.bf16.msrb.mxu2 %v6699_v21  ;;  %v6785_v10 = vor.u32 %v7898_v62, %v6782_v4  ;;  %v6691_v57 = vor.u32 %v7861_v16, %v6690_v43  ;;  %3508 = vmatpush.bf16.msrb.mxu3 %v6703_v58  ;;  %v6695_v53 = vor.u32 %v7860_v2, %v6692_v47  ;;  %v7856_v19 = vld [vmem:[%s12288_s1 + $0x914] sm:$0xf]  ;;  %v6676_v31 = vld [vmem:[%s12288_s1 + $0x918] sm:$0xf0]  ;;  %vm3524_vm2 = vmor %vm3522_vm14, %vm1765_vm11 }
 0x38d   :  { %v3259_v36 = vrot.slane %v3258_v50, 2  ;;  %v10823_v40 = vpack.c.bf16 %v3209_v6, %v3209_v6  ;;  %3639 = vmatpush.bf16.msra.mxu0 %v6781_v26  ;;  %v6773_v1 = vor.u32 %v7897_v32, %v6772_v27  ;;  %v6777_v15 = vor.u32 %v7896_v13, %v6774_v35  ;;  %v6756_v5 = vld [vmem:[%s12288_s1 + $0xa30] sm:$0xf]  ;;  %v7893_v56 = vld [vmem:[%s12288_s1 + $0xa34] sm:$0xf0]  ;;  %vm10950_vm4 = vmor %vm3524_vm2, %vm1769_vm13 }
 0x38e   :  { %3652 = vmatpush.bf16.msra.mxu1 %v6785_v10  ;;  %v6683_v9 = vor.u32 %v7859_v14, %v6682_v20  ;;  %v6687_v63 = vor.u32 %v7858_v29, %v6684_v54  ;;  %v6765_v7 = vor.u32 %v7895_v48, %v6764_v34  ;;  %v6769_v38 = vor.u32 %v7894_v17, %v6766_v44  ;;  %v7892_v0 = vld [vmem:[%s12288_s1 + $0xa34] sm:$0xf]  ;;  %v6758_v46 = vld [vmem:[%s12288_s1 + $0xa38] sm:$0xf0]  ;;  %v6666_v59 = vld [vmem:[%s12288_s1 + $0x900] sm:$0xf] }
 0x38f   :  { %v3264_v51 = vsel %vm10796_vm1, %v3259_v36, %v3263_v3  ;;  %v3231_v33 = vrot.slane %v10823_v40, 2  ;;  %v6675_v37 = vor.u32 %v7857_v45, %v6674_v52  ;;  %v7855_v62 = vld [vmem:[%s12288_s1 + $0x904] sm:$0xf0]  ;;  %v6679_v50 = vor.u32 %v7856_v19, %v6676_v31  ;;  %v7854_v30 = vld [vmem:[%s12288_s1 + $0x904] sm:$0xf] }
 0x390   :  { %3295 = vst [vmem:[#allocation1] ss:$4 sm:$0xff] %v3264_v51  ;;  %3496 = vmatpush.bf16.msrb.mxu2 %v6691_v57  ;;  %3509 = vmatpush.bf16.msrb.mxu3 %v6695_v53  ;;  %v6757_v3 = vor.u32 %v7893_v56, %v6756_v5  ;;  %v6668_v43 = vld [vmem:[%s12288_s1 + $0x908] sm:$0xf0]  ;;  %v6748_v16 = vld [vmem:[%s12288_s1 + $0xa20] sm:$0xf]  ;;  %v6761_v2 = vor.u32 %v7892_v0, %v6758_v46 }
 0x391   :  { %v10855_v23 = vsel %vm1630_vm7, %v10823_v40, %v3231_v33  ;;  %v10859_v61 = vsel %vm3235_vm3, %v10823_v40, %v3231_v33  ;;  %3640 = vmatpush.bf16.msra.mxu0 %v6773_v1  ;;  %v7891_v8 = vld [vmem:[%s12288_s1 + $0xa24] sm:$0xf0]  ;;  %v6667_v47 = vor.u32 %v7855_v62, %v6666_v59  ;;  %v7890_v36 = vld [vmem:[%s12288_s1 + $0xa24] sm:$0xf]  ;;  %v6750_v18 = vld [vmem:[%s12288_s1 + $0xa28] sm:$0xf0]  ;;  %v6671_v26 = vor.u32 %v7854_v30, %v6668_v43 }
 0x392   :  { %v3244_v12 = vrot.slane %v10859_v61, 2  ;;  %v3265_v55 = vshrl.u32 %v10855_v23, 16  ;;  %v3268_v41 = vshll.u32 %v10855_v23, 16  ;;  %3653 = vmatpush.bf16.msra.mxu1 %v6777_v15  ;;  %v6749_v27 = vor.u32 %v7891_v8, %v6748_v16  ;;  %v6740_v32 = vld [vmem:[%s12288_s1 + $0xa10] sm:$0xf] }
 0x393   :  { %v7889_v6 = vld [vmem:[%s12288_s1 + $0xa14] sm:$0xf0]  ;;  %v6753_v10 = vor.u32 %v7890_v36, %v6750_v18  ;;  %v7888_v57 = vld [vmem:[%s12288_s1 + $0xa14] sm:$0xf]  ;;  %v6742_v13 = vld [vmem:[%s12288_s1 + $0xa18] sm:$0xf0] }
 0x394   :  { %v3267_v22 = vrot.slane %v3265_v55, 6  ;;  %v3270_v49 = vrot.slane %v3268_v41, 7  ;;  %v3274_v24 = vshll.u32 %v3244_v12, 16  ;;  %3497 = vmatpush.bf16.msrb.mxu2 %v6683_v9  ;;  %3510 = vmatpush.bf16.msrb.mxu3 %v6687_v63  ;;  %v6741_v51 = vor.u32 %v7889_v6, %v6740_v32  ;;  %v6732_v35 = vld [vmem:[%s12288_s1 + $0xa00] sm:$0xf] }
 0x395   :  { %3641 = vmatpush.bf16.msra.mxu0 %v6765_v7  ;;  %v7887_v20 = vld [vmem:[%s12288_s1 + $0xa04] sm:$0xf0]  ;;  %v6745_v14 = vor.u32 %v7888_v57, %v6742_v13  ;;  %v7886_v53 = vld [vmem:[%s12288_s1 + $0xa04] sm:$0xf]  ;;  %v6734_v1 = vld [vmem:[%s12288_s1 + $0xa08] sm:$0xf0] }
 0x396   :  { %v3271_v4 = vor.u32 %v3270_v49, %v3267_v22  ;;  %v3276_v21 = vrot.slane %v3274_v24, 7  ;;  %3654 = vmatpush.bf16.msra.mxu1 %v6769_v38  ;;  %v6733_v54 = vor.u32 %v7887_v20, %v6732_v35  ;;  %v6737_v33 = vor.u32 %v7886_v53, %v6734_v1  ;;  %v7965_v63 = vld [vmem:[%s12288_s1 + $0xc74] sm:$0xf0]  ;;  %v7948_v52 = vld [vmem:[%s12288_s1 + $0xbf4] sm:$0xf] }
 0x397   :  { %v3533_v34 = vrot.slane %v3244_v12, 7  ;;  %v3529_v48 = vrot.slane %v3238_v28, 7  ;;  %v6852_v28 = vld [vmem:[%s12288_s1 + $0xbf0] sm:$0xf]  ;;  %v6854_v45 = vld [vmem:[%s12288_s1 + $0xbf8] sm:$0xf0] }
 0x398   :  { %v3272_v39 = vrot.slane %v3271_v4, 2  ;;  %3498 = vmatpush.bf16.msrb.mxu2 %v6675_v37  ;;  %3511 = vmatpush.bf16.msrb.mxu3 %v6679_v50  ;;  %v6857_v55 = vor.u32 %v7948_v52, %v6854_v45  ;;  %v7964_v41 = vld [vmem:[%s12288_s1 + $0xc74] sm:$0xf]  ;;  %v6918_v7 = vld [vmem:[%s12288_s1 + $0xc78] sm:$0xf0]  ;;  %vm3679_vm11 = vcmask 1043456  }
 0x399   :  { %3642 = vmatpush.bf16.msra.mxu0 %v6757_v3  ;;  %v6921_v19 = vor.u32 %v7964_v41, %v6918_v7  ;;  %v6844_v38 = vld [vmem:[%s12288_s1 + $0xbe0] sm:$0xf]  ;;  %v7947_v31 = vld [vmem:[%s12288_s1 + $0xbe4] sm:$0xf0]  ;;  %v7946_v49 = vld [vmem:[%s12288_s1 + $0xbe4] sm:$0xf] }
 0x39a   :  { %v3277_v58 = vsel %vm10796_vm1, %v3272_v39, %v3276_v21  ;;  %3655 = vmatpush.bf16.msra.mxu1 %v6761_v2  ;;  %v6908_v5 = vld [vmem:[%s12288_s1 + $0xc60] sm:$0xf]  ;;  %v6845_v56 = vor.u32 %v7947_v31, %v6844_v38  ;;  %v7963_v22 = vld [vmem:[%s12288_s1 + $0xc64] sm:$0xf0]  ;;  %v6846_v24 = vld [vmem:[%s12288_s1 + $0xbe8] sm:$0xf0] }
 0x39b   :  { %3298 = vst [vmem:[#allocation1 + $0x1] ss:$4 sm:$0xff] %v3277_v58  ;;  %v6909_v37 = vor.u32 %v7963_v22, %v6908_v5  ;;  %v6849_v0 = vor.u32 %v7946_v49, %v6846_v24  ;;  %v7962_v46 = vld [vmem:[%s12288_s1 + $0xc64] sm:$0xf]  ;;  %v6910_v59 = vld [vmem:[%s12288_s1 + $0xc68] sm:$0xf0] }
 0x39c   :  { %3499 = vmatpush.bf16.msrb.mxu2 %v6667_v47  ;;  %3512 = vmatpush.bf16.msrb.mxu3 %v6671_v26  ;;  %v6913_v62 = vor.u32 %v7962_v46, %v6910_v59  ;;  %v6836_v4 = vld [vmem:[%s12288_s1 + $0xbd0] sm:$0xf]  ;;  %v7945_v50 = vld [vmem:[%s12288_s1 + $0xbd4] sm:$0xf0]  ;;  %v7944_v16 = vld [vmem:[%s12288_s1 + $0xbd4] sm:$0xf] }
 0x39d   :  { %3643 = vmatpush.bf16.msra.mxu0 %v6749_v27  ;;  %v6900_v3 = vld [vmem:[%s12288_s1 + $0xc50] sm:$0xf]  ;;  %v6837_v30 = vor.u32 %v7945_v50, %v6836_v4  ;;  %v7961_v43 = vld [vmem:[%s12288_s1 + $0xc54] sm:$0xf0]  ;;  %v6838_v8 = vld [vmem:[%s12288_s1 + $0xbd8] sm:$0xf0] }
 0x39e   :  { %3656 = vmatpush.bf16.msra.mxu1 %v6753_v10  ;;  %v6901_v39 = vor.u32 %v7961_v43, %v6900_v3  ;;  %v6841_v21 = vor.u32 %v7944_v16, %v6838_v8  ;;  %v7960_v2 = vld [vmem:[%s12288_s1 + $0xc54] sm:$0xf]  ;;  %v6902_v47 = vld [vmem:[%s12288_s1 + $0xc58] sm:$0xf0]  ;;  %v6828_v18 = vld [vmem:[%s12288_s1 + $0xbc0] sm:$0xf] }
 0x39f   :  { %v6905_v36 = vor.u32 %v7960_v2, %v6902_v47  ;;  %v7943_v58 = vld [vmem:[%s12288_s1 + $0xbc4] sm:$0xf0]  ;;  %v6892_v26 = vld [vmem:[%s12288_s1 + $0xc40] sm:$0xf]  ;;  %v7942_v6 = vld [vmem:[%s12288_s1 + $0xbc4] sm:$0xf] }
 0x3a0   :  { %v6829_v27 = vor.u32 %v7943_v58, %v6828_v18  ;;  %v7959_v32 = vld [vmem:[%s12288_s1 + $0xc44] sm:$0xf0]  ;;  %v6830_v10 = vld [vmem:[%s12288_s1 + $0xbc8] sm:$0xf0]  ;;  %v6820_v1 = vld [vmem:[%s12288_s1 + $0xbb0] sm:$0xf] }
 0x3a1   :  { %3644 = vmatpush.bf16.msra.mxu0 %v6741_v51  ;;  %v6893_v57 = vor.u32 %v7959_v32, %v6892_v26  ;;  %v6833_v13 = vor.u32 %v7942_v6, %v6830_v10  ;;  %v7958_v51 = vld [vmem:[%s12288_s1 + $0xc44] sm:$0xf]  ;;  %v6894_v35 = vld [vmem:[%s12288_s1 + $0xc48] sm:$0xf0]  ;;  %v11111_v31 = vld [vmem:[%s12290_s2 + $0x10] sm:$0x3f] }
 0x3a2   :  { %v3299_v29 = vld.sshfl [vmem:[#allocation1] sm:$0xff pattern:$0x73625140]  ;;  %3657 = vmatpush.bf16.msra.mxu1 %v6745_v14  ;;  %v6897_v53 = vor.u32 %v7958_v51, %v6894_v35  ;;  %v6814_v45 = vld [vmem:[%s12288_s1 + $0xba8] sm:$0xf0]  ;;  %v3670_v43 = vperm.slane %v11111_v31, 1 }
 0x3a3   :  { %3407 = vst [vmem:[#allocation1] ss:$4 sm:$0xff] %v10698_v42  ;;  %3389 = vmatmul.bf16.vlgmr.msrb.gmra.mxu0 %v3299_v29  ;;  %3402 = vmatmul.bf16.vlgmr.msrb.gmra.mxu1 %v3299_v29  ;;  %v6729_v42 = vrot.slane %v10855_v23, 9  ;;  %v6916_v23 = vld [vmem:[%s12288_s1 + $0xc70] sm:$0xf] }
 0x3a4   :  { %3409 = vst [vmem:[#allocation1 + $0x1] ss:$4 sm:$0xff] %v10823_v40  ;;  %v6728_v40 = vrot.slane %v10724_v25, 9  ;;  %v7949_v25 = vld [vmem:[%s12288_s1 + $0xbf4] sm:$0xf0]  ;;  %v6917_v12 = vor.u32 %v7965_v63, %v6916_v23 }
 0x3a5   :  { %3645 = vmatpush.bf16.msra.mxu0 %v6733_v54  ;;  %v3534_v17 = vsel %vm10950_vm4, %v6729_v42, %v3533_v34  ;;  %v6853_v61 = vor.u32 %v7949_v25, %v6852_v28  ;;  %v7941_v29 = vld [vmem:[%s12288_s1 + $0xbb4] sm:$0xf0]  ;;  %v6884_v54 = vld [vmem:[%s12288_s1 + $0xc30] sm:$0xf]  ;;  %v6822_v42 = vld [vmem:[%s12288_s1 + $0xbb8] sm:$0xf0] }
 0x3a6   :  { %3658 = vmatpush.bf16.msra.mxu1 %v6737_v33  ;;  %v3530_v44 = vsel %vm10950_vm4, %v6728_v40, %v3529_v48  ;;  %3996 = vmatpush.bf16.msra.mxu3 %v6917_v12  ;;  %v6821_v33 = vor.u32 %v7941_v29, %v6820_v1  ;;  %v7957_v34 = vld [vmem:[%s12288_s1 + $0xc34] sm:$0xf0]  ;;  %v7940_v48 = vld [vmem:[%s12288_s1 + $0xbb4] sm:$0xf]  ;;  %v6812_v28 = vld [vmem:[%s12288_s1 + $0xba0] sm:$0xf] }
 0x3a7   :  { %3983 = vmatpush.bf16.msra.mxu2 %v6853_v61  ;;  %v6885_v40 = vor.u32 %v7957_v34, %v6884_v54  ;;  %v7939_v25 = vld [vmem:[%s12288_s1 + $0xba4] sm:$0xf0]  ;;  %v6876_v23 = vld [vmem:[%s12288_s1 + $0xc20] sm:$0xf]  ;;  %v7938_v52 = vld [vmem:[%s12288_s1 + $0xba4] sm:$0xf] }
 0x3a8   :  { %v6813_v61 = vor.u32 %v7939_v25, %v6812_v28  ;;  %v7955_v63 = vld [vmem:[%s12288_s1 + $0xc24] sm:$0xf0]  ;;  %v7954_v41 = vld [vmem:[%s12288_s1 + $0xc24] sm:$0xf]  ;;  %v6878_v7 = vld [vmem:[%s12288_s1 + $0xc28] sm:$0xf0] }
 0x3a9   :  { %4009 = vmatpush.bf16.msrb.mxu0 %v6857_v55  ;;  %v6877_v12 = vor.u32 %v7955_v63, %v6876_v23  ;;  %v6817_v55 = vor.u32 %v7938_v52, %v6814_v45  ;;  %v11116_v5 = vld [vmem:[%s12290_s2 + $0x18] sm:$0x3f]  ;;  %v6804_v22 = vld [vmem:[%s12288_s1 + $0xb90] sm:$0xf]  ;;  %v7936_v46 = vld [vmem:[%s12288_s1 + $0xb94] sm:$0xf] }
 0x3aa   :  { %4022 = vmatpush.bf16.msrb.mxu1 %v6921_v19  ;;  %3997 = vmatpush.bf16.msra.mxu3 %v6909_v37  ;;  %v7937_v49 = vld [vmem:[%s12288_s1 + $0xb94] sm:$0xf0]  ;;  %v6868_v24 = vld [vmem:[%s12288_s1 + $0xc10] sm:$0xf]  ;;  %v6806_v59 = vld [vmem:[%s12288_s1 + $0xb98] sm:$0xf0] }
 0x3ab   :  { %v3410_v9 = vld.sshfl [vmem:[#allocation1] sm:$0xff pattern:$0x73625140]  ;;  %3984 = vmatpush.bf16.msra.mxu2 %v6845_v56  ;;  %v6881_v56 = vor.u32 %v7954_v41, %v6878_v7  ;;  %v6805_v37 = vor.u32 %v7937_v49, %v6804_v22  ;;  %v6809_v50 = vor.u32 %v7936_v46, %v6806_v59  ;;  %v7952_v3 = vld [vmem:[%s12288_s1 + $0xc14] sm:$0xf]  ;;  %v3667_v16 = vperm.slane %v11116_v5, 0 }
 0x3ac   :  { %3555 = vst [vmem:[#allocation1 + $0x1] ss:$4 sm:$0xff] %v3534_v17  ;;  %3500 = vmatmul.bf16.vlgmr.msrb.gmra.mxu2 %v3410_v9  ;;  %3513 = vmatmul.bf16.vlgmr.msrb.gmra.mxu3 %v3410_v9  ;;  %v6825_v9 = vor.u32 %v7940_v48, %v6822_v42  ;;  %v7956_v17 = vld [vmem:[%s12288_s1 + $0xc34] sm:$0xf]  ;;  %v3671_v8 = vperm.slane %v11116_v5, 1 }
 0x3ad   :  { %3552 = vst [vmem:[#allocation1] ss:$4 sm:$0xff] %v3530_v44  ;;  %4010 = vmatpush.bf16.msrb.mxu0 %v6849_v0  ;;  %v6886_v44 = vld [vmem:[%s12288_s1 + $0xc38] sm:$0xf0]  ;;  %v7953_v0 = vld [vmem:[%s12288_s1 + $0xc14] sm:$0xf0] }
 0x3ae   :  { %4023 = vmatpush.bf16.msrb.mxu1 %v6913_v62  ;;  %3998 = vmatpush.bf16.msra.mxu3 %v6901_v39  ;;  %v3666_v62 = vperm.slane %v11111_v31, 0  ;;  %v6869_v4 = vor.u32 %v7953_v0, %v6868_v24  ;;  %v7935_v2 = vld [vmem:[%s12288_s1 + $0xb84] sm:$0xf0]  ;;  %v6860_v47 = vld [vmem:[%s12288_s1 + $0xc00] sm:$0xf] }
 0x3af   :  { %3985 = vmatpush.bf16.msra.mxu2 %v6837_v30  ;;  %v6870_v30 = vld [vmem:[%s12288_s1 + $0xc18] sm:$0xf0]  ;;  %v7951_v18 = vld [vmem:[%s12288_s1 + $0xc04] sm:$0xf0]  ;;  %v7934_v58 = vld [vmem:[%s12288_s1 + $0xb84] sm:$0xf] }
 0x3b0   :  { %v6873_v39 = vor.u32 %v7952_v3, %v6870_v30  ;;  %v6798_v26 = vld [vmem:[%s12288_s1 + $0xb88] sm:$0xf0]  ;;  %v6861_v6 = vor.u32 %v7951_v18, %v6860_v47  ;;  %v6980_v51 = vld [vmem:[%s12288_s1 + $0xaf0] sm:$0xf]  ;;  %v7917_v29 = vld [vmem:[%s12288_s1 + $0xaf4] sm:$0xf0] }
 0x3b1   :  { %4011 = vmatpush.bf16.msrb.mxu0 %v6841_v21  ;;  %v6796_v21 = vld [vmem:[%s12288_s1 + $0xb80] sm:$0xf]  ;;  %v6801_v10 = vor.u32 %v7934_v58, %v6798_v26  ;;  %v7044_v54 = vld [vmem:[%s12288_s1 + $0xb70] sm:$0xf]  ;;  %v6981_v34 = vor.u32 %v7917_v29, %v6980_v51  ;;  %v6982_v48 = vld [vmem:[%s12288_s1 + $0xaf8] sm:$0xf0] }
 0x3b2   :  { %4024 = vmatpush.bf16.msrb.mxu1 %v6905_v36  ;;  %3999 = vmatpush.bf16.msra.mxu3 %v6893_v57  ;;  %v6797_v36 = vor.u32 %v7935_v2, %v6796_v21  ;;  %v7950_v57 = vld [vmem:[%s12288_s1 + $0xc04] sm:$0xf]  ;;  %v7932_v42 = vld [vmem:[%s12288_s1 + $0xb74] sm:$0xf]  ;;  %v7915_v28 = vld [vmem:[%s12288_s1 + $0xae4] sm:$0xf0] }
 0x3b3   :  { %3986 = vmatpush.bf16.msra.mxu2 %v6829_v27  ;;  %v7036_v63 = vld [vmem:[%s12288_s1 + $0xb60] sm:$0xf]  ;;  %v7931_v52 = vld [vmem:[%s12288_s1 + $0xb64] sm:$0xf0]  ;;  %v7914_v45 = vld [vmem:[%s12288_s1 + $0xae4] sm:$0xf] }
 0x3b4   :  { %v3556_v60 = vld.sshfl [vmem:[#allocation1] sm:$0xff pattern:$0x73625140]  ;;  %v6974_v41 = vld [vmem:[%s12288_s1 + $0xae8] sm:$0xf0] }
 0x3b5   :  { %3646 = vmatmul.bf16.vlgmr.msra.gmra.mxu0 %v3556_v60  ;;  %3659 = vmatmul.bf16.vlgmr.msra.gmra.mxu1 %v3556_v60  ;;  %v6889_v60 = vor.u32 %v7956_v17, %v6886_v44  ;;  %v7046_v44 = vld [vmem:[%s12288_s1 + $0xb78] sm:$0xf0]  ;;  %v7930_v7 = vld [vmem:[%s12288_s1 + $0xb64] sm:$0xf]  ;;  %v6977_v22 = vor.u32 %v7914_v45, %v6974_v41  ;;  %v6964_v24 = vld [vmem:[%s12288_s1 + $0xad0] sm:$0xf] }
 0x3b6   :  { %4012 = vmatpush.bf16.msrb.mxu0 %v6833_v13  ;;  %4025 = vmatpush.bf16.msrb.mxu1 %v6897_v53  ;;  %v6862_v13 = vld [vmem:[%s12288_s1 + $0xc08] sm:$0xf0]  ;;  %v7028_v0 = vld [vmem:[%s12288_s1 + $0xb50] sm:$0xf]  ;;  %v7929_v3 = vld [vmem:[%s12288_s1 + $0xb54] sm:$0xf0] }
 0x3b7   :  { %3987 = vmatpush.bf16.msra.mxu2 %v6821_v33  ;;  %4000 = vmatpush.bf16.msra.mxu3 %v6885_v40  ;;  %v6865_v1 = vor.u32 %v7950_v57, %v6862_v13  ;;  %v7933_v33 = vld [vmem:[%s12288_s1 + $0xb74] sm:$0xf0]  ;;  %v7912_v30 = vld [vmem:[%s12288_s1 + $0xad4] sm:$0xf]  ;;  %v6966_v31 = vld [vmem:[%s12288_s1 + $0xad8] sm:$0xf0]  ;;  %v7029_v5 = vor.u32 %v7929_v3, %v7028_v0 }
 0x3b8   :  { %v7911_v47 = vld [vmem:[%s12288_s1 + $0xac4] sm:$0xf0]  ;;  %v7926_v51 = vld [vmem:[%s12288_s1 + $0xb44] sm:$0xf]  ;;  %v7909_v29 = vld [vmem:[%s12288_s1 + $0xab4] sm:$0xf0] }
 0x3b9   :  { %v7927_v26 = vld [vmem:[%s12288_s1 + $0xb44] sm:$0xf0]  ;;  %v7906_v45 = vld [vmem:[%s12288_s1 + $0xaa4] sm:$0xf]  ;;  %v7006_v41 = vld [vmem:[%s12288_s1 + $0xb28] sm:$0xf0] }
 0x3ba   :  { %4013 = vmatpush.bf16.msrb.mxu0 %v6825_v9  ;;  %4026 = vmatpush.bf16.msrb.mxu1 %v6889_v60  ;;  %v6972_v60 = vld [vmem:[%s12288_s1 + $0xae0] sm:$0xf]  ;;  %v6934_v0 = vld [vmem:[%s12288_s1 + $0xa98] sm:$0xf0]  ;;  %v8076_v11 = vld [vmem:[%s12288_s1 + $0xff4] sm:$0xf] }
 0x3bb   :  { %3988 = vmatpush.bf16.msra.mxu2 %v6813_v61  ;;  %4001 = vmatpush.bf16.msra.mxu3 %v6877_v12  ;;  %v7049_v61 = vor.u32 %v7932_v42, %v7046_v44  ;;  %v6973_v12 = vor.u32 %v7915_v28, %v6972_v60  ;;  %v6950_v42 = vld [vmem:[%s12288_s1 + $0xab8] sm:$0xf0]  ;;  %v6940_v28 = vld [vmem:[%s12288_s1 + $0xaa0] sm:$0xf]  ;;  %v7528_v15 = vld [vmem:[%s12288_s1 + $0x1030] sm:$0xf] }
 0x3bc   :  { %v7014_v60 = vld [vmem:[%s12288_s1 + $0xb38] sm:$0xf0] }
 0x3be   :  { %4014 = vmatpush.bf16.msrb.mxu0 %v6817_v55  ;;  %4027 = vmatpush.bf16.msrb.mxu1 %v6881_v56  ;;  %v7037_v55 = vor.u32 %v7931_v52, %v7036_v63  ;;  %v7923_v63 = vld [vmem:[%s12288_s1 + $0xb24] sm:$0xf0] }
 0x3bf   :  { %3989 = vmatpush.bf16.msra.mxu2 %v6805_v37  ;;  %4002 = vmatpush.bf16.msra.mxu3 %v6869_v4  ;;  %v7913_v37 = vld [vmem:[%s12288_s1 + $0xad4] sm:$0xf0] }
 0x3c2   :  { %4015 = vmatpush.bf16.msrb.mxu0 %v6809_v50  ;;  %4028 = vmatpush.bf16.msrb.mxu1 %v6873_v39  ;;  %v6965_v50 = vor.u32 %v7913_v37, %v6964_v24  ;;  %v6956_v39 = vld [vmem:[%s12288_s1 + $0xac0] sm:$0xf]  ;;  %v7904_v24 = vld [vmem:[%s12288_s1 + $0xa94] sm:$0xf] }
 0x3c3   :  { %3990 = vmatpush.bf16.msra.mxu2 %v6797_v36  ;;  %4003 = vmatpush.bf16.msra.mxu3 %v6861_v6  ;;  %v7020_v36 = vld [vmem:[%s12288_s1 + $0xb40] sm:$0xf]  ;;  %v6957_v57 = vor.u32 %v7911_v47, %v6956_v39  ;;  %v6937_v47 = vor.u32 %v7904_v24, %v6934_v0 }
 0x3c4   :  { %v7021_v13 = vor.u32 %v7927_v26, %v7020_v36 }
 0x3c6   :  { %4016 = vmatpush.bf16.msrb.mxu0 %v6801_v10  ;;  %4029 = vmatpush.bf16.msrb.mxu1 %v6865_v1  ;;  %v6948_v1 = vld [vmem:[%s12288_s1 + $0xab0] sm:$0xf] }
 0x3c7   :  { %4202 = vmatpush.bf16.msrb.mxu2 %v6981_v34 }
 0x3ca   :  { %4241 = vmatpush.bf16.msra.mxu1 %v7049_v61  ;;  %v7004_v61 = vld [vmem:[%s12288_s1 + $0xb20] sm:$0xf] }
 0x3cb   :  { %4203 = vmatpush.bf16.msrb.mxu2 %v6973_v12  ;;  %v6942_v12 = vld [vmem:[%s12288_s1 + $0xaa8] sm:$0xf0] }
 0x3cc   :  { %v6945_v37 = vor.u32 %v7906_v45, %v6942_v12 }
 0x3cf   :  { %4204 = vmatpush.bf16.msrb.mxu2 %v6965_v50 }
 0x3d3   :  { %4205 = vmatpush.bf16.msrb.mxu2 %v6957_v57 }
 0x420   :  { %v11056_v20 = vpop.f32.mrf.mxu0  ;;  %v11058_v14 = vpop.f32.mrf.mxu1 }
 0x428   :  { %v3392_v19 = vpop.f32.mrf.mxu0  ;;  %v3405_v38 = vpop.f32.mrf.mxu1 }
 0x429   :  { %v7038_v19 = vld [vmem:[%s12288_s1 + $0xb68] sm:$0xf0] }
 0x42a   :  { %v7041_v49 = vor.u32 %v7930_v7, %v7038_v19  ;;  %v6932_v7 = vld [vmem:[%s12288_s1 + $0xa90] sm:$0xf]  ;;  %v7905_v19 = vld [vmem:[%s12288_s1 + $0xa94] sm:$0xf0] }
 0x42b   :  { %v6933_v39 = vor.u32 %v7905_v19, %v6932_v7 }
 0x42c   :  { %4242 = vmatpush.bf16.msra.mxu1 %v7041_v49  ;;  %v7921_v49 = vld [vmem:[%s12288_s1 + $0xb14] sm:$0xf0] }
 0x42f   :  { %v3501_v27 = vpop.f32.mrf.mxu2  ;;  %v3514_v32 = vpop.f32.mrf.mxu3 }
 0x430   :  { %v3502_v35 = vadd.f32 %v3501_v27, %v11056_v20  ;;  %v3515_v53 = vadd.f32 %v3514_v32, %v11058_v14  ;;  %v7045_v20 = vor.u32 %v7933_v33, %v7044_v54  ;;  %v7916_v14 = vld [vmem:[%s12288_s1 + $0xaf4] sm:$0xf]  ;;  %v7910_v27 = vld [vmem:[%s12288_s1 + $0xac4] sm:$0xf]  ;;  %v6958_v32 = vld [vmem:[%s12288_s1 + $0xac8] sm:$0xf0] }
 0x431   :  { %v6985_v17 = vor.u32 %v7916_v14, %v6982_v48  ;;  %v7012_v54 = vld [vmem:[%s12288_s1 + $0xb30] sm:$0xf]  ;;  %v7925_v14 = vld [vmem:[%s12288_s1 + $0xb34] sm:$0xf0]  ;;  %v7908_v48 = vld [vmem:[%s12288_s1 + $0xab4] sm:$0xf] }
 0x432   :  { %v3647_v40 = vpop.f32.mrf.mxu0  ;;  %v3660_v9 = vpop.f32.mrf.mxu1  ;;  %4215 = vmatpush.bf16.msrb.mxu3 %v7045_v20  ;;  %v7013_v44 = vor.u32 %v7925_v14, %v7012_v54  ;;  %v7918_v54 = vld [vmem:[%s12288_s1 + $0xb04] sm:$0xf] }
 0x433   :  { %v3664_v25 = vadd.f32 %v3647_v40, %v3502_v35  ;;  %v3665_v23 = vadd.f32 %v3660_v9, %v3515_v53  ;;  %4228 = vmatpush.bf16.msra.mxu0 %v6985_v17  ;;  %v7022_v35 = vld [vmem:[%s12288_s1 + $0xb48] sm:$0xf0]  ;;  %v6961_v53 = vor.u32 %v7910_v27, %v6958_v32  ;;  %v7924_v9 = vld [vmem:[%s12288_s1 + $0xb34] sm:$0xf]  ;;  %v6949_v17 = vor.u32 %v7909_v29, %v6948_v1  ;;  %v6988_v27 = vld [vmem:[%s12288_s1 + $0xb00] sm:$0xf] }
 0x434   :  { %v7025_v20 = vor.u32 %v7926_v51, %v7022_v35  ;;  %v7017_v52 = vor.u32 %v7924_v9, %v7014_v60  ;;  %v7902_v51 = vld [vmem:[%s12288_s1 + $0xa84] sm:$0xf]  ;;  %v6926_v29 = vld [vmem:[%s12288_s1 + $0xa88] sm:$0xf0] }
 0x435   :  { %v3668_v38 = vmul.f32 %v3666_v62, %v3664_v25  ;;  %v3669_v56 = vmul.f32 %v3667_v16, %v3665_v23  ;;  %v7928_v16 = vld [vmem:[%s12288_s1 + $0xb54] sm:$0xf]  ;;  %v7907_v25 = vld [vmem:[%s12288_s1 + $0xaa4] sm:$0xf0]  ;;  %v6953_v23 = vor.u32 %v7908_v48, %v6950_v42  ;;  %4206 = vmatpush.bf16.msrb.mxu2 %v6949_v17  ;;  %v6990_v48 = vld [vmem:[%s12288_s1 + $0xb08] sm:$0xf0]  ;;  %v6929_v9 = vor.u32 %v7902_v51, %v6926_v29 }
 0x436   :  { %4216 = vmatpush.bf16.msrb.mxu3 %v7037_v55  ;;  %v7922_v55 = vld [vmem:[%s12288_s1 + $0xb24] sm:$0xf]  ;;  %v6993_v17 = vor.u32 %v7918_v54, %v6990_v48 }
 0x437   :  { %v3672_v46 = vadd.f32 %v3670_v43, %v3668_v38  ;;  %v11233_v59 = vadd.f32 %v3671_v8, %v3669_v56  ;;  %v3503_v62 = vpop.f32.mrf.mxu2  ;;  %v3516_v4 = vpop.f32.mrf.mxu3  ;;  %4229 = vmatpush.bf16.msra.mxu0 %v6977_v22  ;;  %v6969_v43 = vor.u32 %v7912_v30, %v6966_v31  ;;  %v7030_v8 = vld [vmem:[%s12288_s1 + $0xb58] sm:$0xf0]  ;;  %v6941_v38 = vor.u32 %v7907_v25, %v6940_v28  ;;  %v6996_v22 = vld [vmem:[%s12288_s1 + $0xb10] sm:$0xf] }
 0x438   :  { %v7033_v2 = vor.u32 %v7928_v16, %v7030_v8  ;;  %v7005_v56 = vor.u32 %v7923_v63, %v7004_v61  ;;  %v6998_v62 = vld [vmem:[%s12288_s1 + $0xb18] sm:$0xf0]  ;;  %v7009_v3 = vor.u32 %v7922_v55, %v7006_v41 }
 0x439   :  { %v3675_v21 = vmax.f32 %v11233_v59, 0.0  ;;  %v11269_v6 = vmax.f32 %v3672_v46, 0.0  ;;  %v7920_v46 = vld [vmem:[%s12288_s1 + $0xb14] sm:$0xf]  ;;  %4207 = vmatpush.bf16.msrb.mxu2 %v6941_v38 }
 0x43a   :  { %v3649_v18 = vpop.f32.mrf.mxu0  ;;  %v3662_v58 = vpop.f32.mrf.mxu1  ;;  %4217 = vmatpush.bf16.msrb.mxu3 %v7029_v5  ;;  %4243 = vmatpush.bf16.msra.mxu1 %v7033_v2  ;;  %v6924_v5 = vld [vmem:[%s12288_s1 + $0xa80] sm:$0xf]  ;;  %v6997_v2 = vor.u32 %v7921_v49, %v6996_v22  ;;  %v7001_v57 = vor.u32 %v7920_v46, %v6998_v62 }
 0x43b   :  { %v3678_v10 = vrot.slane %v3675_v21, 4  ;;  %4230 = vmatpush.bf16.msra.mxu0 %v6969_v43  ;;  %v7903_v43 = vld [vmem:[%s12288_s1 + $0xa84] sm:$0xf0] }
 0x43d   :  { %v3680_v33 = vsel %vm3679_vm11, %v11269_v6, %v3678_v10  ;;  %v3681_v34 = vsel %vm3679_vm11, %v3678_v10, %v11269_v6  ;;  %4208 = vmatpush.bf16.msrb.mxu2 %v6933_v39  ;;  %v7176_v39 = vld [vmem:[%s12288_s1 + $0xd78] sm:$0xf0] }
 0x43e   :  { %v3682_v40 = vrot.slane %v3681_v34, 4  ;;  %3683 = vst [vmem:[#allocation1] ss:$2 sm:$0xff] %v3680_v33  ;;  %4218 = vmatpush.bf16.msrb.mxu3 %v7021_v13  ;;  %4244 = vmatpush.bf16.msra.mxu1 %v7025_v20  ;;  %v7919_v13 = vld [vmem:[%s12288_s1 + $0xb04] sm:$0xf0]  ;;  %v6925_v20 = vor.u32 %v7903_v43, %v6924_v5 }
 0x43f   :  { %4231 = vmatpush.bf16.msra.mxu0 %v6961_v53  ;;  %v6989_v14 = vor.u32 %v7919_v13, %v6988_v27  ;;  %v7997_v5 = vld [vmem:[%s12288_s1 + $0xd74] sm:$0xf0]  ;;  %v7980_v43 = vld [vmem:[%s12288_s1 + $0xcf4] sm:$0xf]  ;;  %v7978_v27 = vld [vmem:[%s12288_s1 + $0xce4] sm:$0xf] }
 0x440   :  { %3687 = vst [vmem:[#allocation1 + $0x10] ss:$2 sm:$0xff] %v3682_v40 }
 0x441   :  { %4209 = vmatpush.bf16.msrb.mxu2 %v6925_v20  ;;  %v7977_v20 = vld [vmem:[%s12288_s1 + $0xcd4] sm:$0xf0] }
 0x442   :  { %4219 = vmatpush.bf16.msrb.mxu3 %v7013_v44  ;;  %4245 = vmatpush.bf16.msra.mxu1 %v7017_v52 }
 0x443   :  { %4232 = vmatpush.bf16.msra.mxu0 %v6953_v23 }
 0x445   :  { %v3684_v4 = vld.sshfl [vmem:[#allocation1] sm:$0xff pattern:$0x75316420]  ;;  %v3685_v50 = vld.sshfl [vmem:[#allocation1 + $0x8] sm:$0xff pattern:$0x75316420] }
 0x446   :  { %v3690_v30 = vrot.slane %v3684_v4, 7  ;;  %v3691_v31 = vrot.slane %v3685_v50, 7  ;;  %4220 = vmatpush.bf16.msrb.mxu3 %v7005_v56  ;;  %4246 = vmatpush.bf16.msra.mxu1 %v7009_v3  ;;  %v7110_v3 = vld [vmem:[%s12288_s1 + $0xcf0] sm:$0xf] }
 0x447   :  { %v3688_v16 = vld.sshfl [vmem:[#allocation1 + $0x10] sm:$0xff pattern:$0x75316420]  ;;  %v3689_v8 = vld.sshfl [vmem:[#allocation1 + $0x18] sm:$0xff pattern:$0x75316420]  ;;  %4233 = vmatpush.bf16.msra.mxu0 %v6945_v37 }
 0x448   :  { %v3692_v36 = vrot.slane %v3688_v16, 7  ;;  %v3693_v18 = vrot.slane %v3689_v8, 7  ;;  %v3698_v58 = vsel %vm29_vm0, 0.0, %v3690_v30  ;;  %v3699_v26 = vsel %vm29_vm0, 0.0, %v3691_v31  ;;  %v7981_v30 = vld [vmem:[%s12288_s1 + $0xcf4] sm:$0xf0] }
 0x449   :  { %v3702_v32 = vsel %vm3207_vm15, %v3698_v58, 0.0  ;;  %v3703_v10 = vsel %vm3207_vm15, %v3699_v26, 0.0  ;;  %v7174_v31 = vld [vmem:[%s12288_s1 + $0xd70] sm:$0xf]  ;;  %v7112_v16 = vld [vmem:[%s12288_s1 + $0xcf8] sm:$0xf0] }
 0x44a   :  { %v3700_v35 = vsel %vm29_vm0, 0.0, %v3692_v36  ;;  %v3701_v53 = vsel %vm29_vm0, 0.0, %v3693_v18  ;;  %v3706_v1 = vpack.c.bf16 %v3703_v10, %v3702_v32  ;;  %4221 = vmatpush.bf16.msrb.mxu3 %v6997_v2  ;;  %4247 = vmatpush.bf16.msra.mxu1 %v7001_v57  ;;  %v7996_v8 = vld [vmem:[%s12288_s1 + $0xd74] sm:$0xf]  ;;  %v7102_v2 = vld [vmem:[%s12288_s1 + $0xce0] sm:$0xf]  ;;  %v7111_v18 = vor.u32 %v7981_v30, %v7110_v3 }
 0x44b   :  { %v3704_v33 = vsel %vm3207_vm15, %v3700_v35, 0.0  ;;  %v3705_v34 = vsel %vm3207_vm15, %v3701_v53, 0.0  ;;  %4234 = vmatpush.bf16.msra.mxu0 %v6937_v47  ;;  %v7979_v47 = vld [vmem:[%s12288_s1 + $0xce4] sm:$0xf0]  ;;  %v7166_v36 = vld [vmem:[%s12288_s1 + $0xd60] sm:$0xf]  ;;  %v7175_v58 = vor.u32 %v7997_v5, %v7174_v31  ;;  %v7115_v13 = vor.u32 %v7980_v43, %v7112_v16 }
 0x44c   :  { %v3707_v42 = vpack.c.bf16 %v3705_v34, %v3704_v33  ;;  %v3710_v40 = vrot.slane %v3706_v1, 2  ;;  %v7995_v26 = vld [vmem:[%s12288_s1 + $0xd64] sm:$0xf0]  ;;  %v7104_v32 = vld [vmem:[%s12288_s1 + $0xce8] sm:$0xf0]  ;;  %v7179_v51 = vor.u32 %v7996_v8, %v7176_v39  ;;  %v7103_v54 = vor.u32 %v7979_v47, %v7102_v2 }
 0x44d   :  { %v7994_v35 = vld [vmem:[%s12288_s1 + $0xd64] sm:$0xf]  ;;  %v7168_v53 = vld [vmem:[%s12288_s1 + $0xd68] sm:$0xf0]  ;;  %v7167_v33 = vor.u32 %v7995_v26, %v7166_v36  ;;  %v7094_v34 = vld [vmem:[%s12288_s1 + $0xcd0] sm:$0xf] }
 0x44e   :  { %v3711_v44 = vrot.slane %v3707_v42, 2  ;;  %v11388_v60 = vsel %vm1630_vm7, %v3706_v1, %v3710_v40  ;;  %v3750_v28 = vsel %vm3235_vm3, %v3706_v1, %v3710_v40  ;;  %4222 = vmatpush.bf16.msrb.mxu3 %v6989_v14  ;;  %4248 = vmatpush.bf16.msra.mxu1 %v6993_v17  ;;  %v7107_v14 = vor.u32 %v7978_v27, %v7104_v32  ;;  %v7993_v40 = vld [vmem:[%s12288_s1 + $0xd54] sm:$0xf0]  ;;  %v7096_v17 = vld [vmem:[%s12288_s1 + $0xcd8] sm:$0xf0] }
 0x44f   :  { %v3752_v25 = vrot.slane %v3750_v28, 2  ;;  %v3756_v23 = vshrl.u32 %v11388_v60, 16  ;;  %v3759_v61 = vshll.u32 %v11388_v60, 16  ;;  %4235 = vmatpush.bf16.msra.mxu0 %v6929_v9  ;;  %v7050_v1 = vrot.slane %v11388_v60, 9  ;;  %v7976_v9 = vld [vmem:[%s12288_s1 + $0xcd4] sm:$0xf] }
 0x450   :  { %v11394_v63 = vsel %vm1630_vm7, %v3707_v42, %v3711_v44  ;;  %v11397_v52 = vsel %vm3235_vm3, %v3707_v42, %v3711_v44  ;;  %v7171_v48 = vor.u32 %v7994_v35, %v7168_v53  ;;  %v7158_v42 = vld [vmem:[%s12288_s1 + $0xd50] sm:$0xf]  ;;  %v7992_v44 = vld [vmem:[%s12288_s1 + $0xd54] sm:$0xf]  ;;  %v7086_v28 = vld [vmem:[%s12288_s1 + $0xcc0] sm:$0xf] }
 0x451   :  { %v3758_v45 = vrot.slane %v3756_v23, 6  ;;  %v3761_v12 = vrot.slane %v3759_v61, 7  ;;  %v3765_v55 = vshll.u32 %v3752_v25, 16  ;;  %v3755_v41 = vrot.slane %v11397_v52, 2  ;;  %v7142_v30 = vld [vmem:[%s12288_s1 + $0xd30] sm:$0xf] }
 0x452   :  { %v3769_v7 = vshrl.u32 %v11394_v63, 16  ;;  %v3772_v19 = vshll.u32 %v11394_v63, 16  ;;  %v4258_v29 = vrot.slane %v3752_v25, 7  ;;  %v7975_v25 = vld [vmem:[%s12288_s1 + $0xcc4] sm:$0xf0]  ;;  %v7051_v23 = vrot.slane %v11394_v63, 9 }
 0x453   :  { %v3762_v38 = vor.u32 %v3761_v12, %v3758_v45  ;;  %v3778_v49 = vshll.u32 %v3755_v41, 16  ;;  %v3767_v37 = vrot.slane %v3765_v55, 7  ;;  %v4262_v61 = vrot.slane %v3755_v41, 7  ;;  %v7150_v55 = vld [vmem:[%s12288_s1 + $0xd40] sm:$0xf] }
 0x454   :  { %v3771_v56 = vrot.slane %v3769_v7, 6  ;;  %v3774_v22 = vrot.slane %v3772_v19, 7  ;;  %v7095_v45 = vor.u32 %v7977_v20, %v7094_v34  ;;  %v7159_v12 = vor.u32 %v7993_v40, %v7158_v42  ;;  %v7991_v7 = vld [vmem:[%s12288_s1 + $0xd44] sm:$0xf0]  ;;  %v7974_v19 = vld [vmem:[%s12288_s1 + $0xcc4] sm:$0xf] }
 0x455   :  { %v3763_v24 = vrot.slane %v3762_v38, 2  ;;  %v3780_v4 = vrot.slane %v3778_v49, 7  ;;  %v7088_v41 = vld [vmem:[%s12288_s1 + $0xcc8] sm:$0xf0]  ;;  %v7990_v38 = vld [vmem:[%s12288_s1 + $0xd44] sm:$0xf] }
 0x456   :  { %v3775_v0 = vor.u32 %v3774_v22, %v3771_v56  ;;  %v7152_v56 = vld [vmem:[%s12288_s1 + $0xd48] sm:$0xf0]  ;;  %v4259_v22 = vsel %vm10950_vm4, %v7050_v1, %v4258_v29  ;;  %v7989_v31 = vld [vmem:[%s12288_s1 + $0xd34] sm:$0xf0]  ;;  %v7972_v5 = vld [vmem:[%s12288_s1 + $0xcb4] sm:$0xf] }
 0x457   :  { %v3768_v46 = vsel %vm10796_vm1, %v3763_v24, %v3767_v37  ;;  %v4263_v37 = vsel %vm10950_vm4, %v7051_v23, %v4262_v61  ;;  %v7155_v3 = vor.u32 %v7990_v38, %v7152_v56  ;;  %v7080_v43 = vld [vmem:[%s12288_s1 + $0xcb8] sm:$0xf0]  ;;  %v7988_v16 = vld [vmem:[%s12288_s1 + $0xd34] sm:$0xf]  ;;  %v7143_v2 = vor.u32 %v7989_v31, %v7142_v30  ;;  %v7070_v47 = vld [vmem:[%s12288_s1 + $0xca0] sm:$0xf] }
 0x458   :  { %3815 = vst [vmem:[#allocation1] ss:$4 sm:$0xff] %v3768_v46  ;;  %v3776_v62 = vrot.slane %v3775_v0, 2  ;;  %v7087_v0 = vor.u32 %v7975_v25, %v7086_v28  ;;  %v7151_v46 = vor.u32 %v7991_v7, %v7150_v55  ;;  %v7144_v8 = vld [vmem:[%s12288_s1 + $0xd38] sm:$0xf0] }
 0x459   :  { %v7971_v36 = vld [vmem:[%s12288_s1 + $0xca4] sm:$0xf0]  ;;  %v7134_v26 = vld [vmem:[%s12288_s1 + $0xd20] sm:$0xf]  ;;  %v7970_v32 = vld [vmem:[%s12288_s1 + $0xca4] sm:$0xf] }
 0x45a   :  { %v3781_v50 = vsel %vm10796_vm1, %v3776_v62, %v3780_v4  ;;  %v7078_v62 = vld [vmem:[%s12288_s1 + $0xcb0] sm:$0xf]  ;;  %v7973_v4 = vld [vmem:[%s12288_s1 + $0xcb4] sm:$0xf0]  ;;  %v7987_v27 = vld [vmem:[%s12288_s1 + $0xd24] sm:$0xf0] }
 0x45b   :  { %3818 = vst [vmem:[#allocation1 + $0x1] ss:$4 sm:$0xff] %v3781_v50  ;;  %v7091_v50 = vor.u32 %v7974_v19, %v7088_v41  ;;  %v7079_v39 = vor.u32 %v7973_v4, %v7078_v62  ;;  %v7135_v35 = vor.u32 %v7987_v27, %v7134_v26  ;;  %v7062_v53 = vld [vmem:[%s12288_s1 + $0xc90] sm:$0xf]  ;;  %v7969_v1 = vld [vmem:[%s12288_s1 + $0xc94] sm:$0xf0] }
 0x45c   :  { %v7985_v34 = vld [vmem:[%s12288_s1 + $0xd14] sm:$0xf0]  ;;  %v7968_v20 = vld [vmem:[%s12288_s1 + $0xc94] sm:$0xf]  ;;  %v7128_v42 = vld [vmem:[%s12288_s1 + $0xd18] sm:$0xf0]  ;;  %v7063_v40 = vor.u32 %v7969_v1, %v7062_v53 }
 0x45d   :  { %v7118_v25 = vld [vmem:[%s12288_s1 + $0xd00] sm:$0xf]  ;;  %v7983_v23 = vld [vmem:[%s12288_s1 + $0xd04] sm:$0xf0]  ;;  %v7966_v61 = vld [vmem:[%s12288_s1 + $0xc84] sm:$0xf] }
 0x45e   :  { %v7120_v55 = vld [vmem:[%s12288_s1 + $0xd08] sm:$0xf0]  ;;  %v7119_v19 = vor.u32 %v7983_v23, %v7118_v25  ;;  %v7238_v56 = vld [vmem:[%s12288_s1 + $0xef0] sm:$0xf]  ;;  %v8042_v26 = vld [vmem:[%s12288_s1 + $0xee4] sm:$0xf] }
 0x45f   :  { %v7232_v27 = vld [vmem:[%s12288_s1 + $0xee8] sm:$0xf0]  ;;  %v8041_v53 = vld [vmem:[%s12288_s1 + $0xed4] sm:$0xf0]  ;;  %v7286_v1 = vld [vmem:[%s12288_s1 + $0xf50] sm:$0xf] }
 0x462   :  { %v3819_v10 = vld.sshfl [vmem:[#allocation1] sm:$0xff pattern:$0x73625140]  ;;  %v3820_v57 = vld.sshfl [vmem:[#allocation1 + $0x8] sm:$0xff pattern:$0x73625140] }
 0x463   :  { %3991 = vmatmul.bf16.vlgmr.msra.gmra.mxu2 %v3819_v10  ;;  %4004 = vmatmul.bf16.vlgmr.msra.gmra.mxu3 %v3820_v57  ;;  %4035 = vst [vmem:[#allocation1] ss:$4 sm:$0xff] %v11388_v60  ;;  %v7160_v60 = vld [vmem:[%s12288_s1 + $0xd58] sm:$0xf0] }
 0x464   :  { %4037 = vst [vmem:[#allocation1 + $0x1] ss:$4 sm:$0xff] %v11394_v63  ;;  %4017 = vmatmul.bf16.vlgmr.msrb.gmra.mxu0 %v3819_v10  ;;  %4030 = vmatmul.bf16.vlgmr.msrb.gmra.mxu1 %v3820_v57  ;;  %v7099_v63 = vor.u32 %v7976_v9, %v7096_v17  ;;  %v7163_v52 = vor.u32 %v7992_v44, %v7160_v60  ;;  %v7072_v10 = vld [vmem:[%s12288_s1 + $0xca8] sm:$0xf0]  ;;  %v7986_v57 = vld [vmem:[%s12288_s1 + $0xd24] sm:$0xf] }
 0x465   :  { %4465 = vmatpush.bf16.msra.mxu2 %v7111_v18  ;;  %4478 = vmatpush.bf16.msra.mxu3 %v7175_v58  ;;  %v7083_v18 = vor.u32 %v7972_v5, %v7080_v43  ;;  %v7147_v58 = vor.u32 %v7988_v16, %v7144_v8  ;;  %v7075_v29 = vor.u32 %v7970_v32, %v7072_v10  ;;  %v7054_v17 = vld [vmem:[%s12288_s1 + $0xc80] sm:$0xf]  ;;  %v7967_v44 = vld [vmem:[%s12288_s1 + $0xc84] sm:$0xf0] }
 0x466   :  { %4491 = vmatpush.bf16.msrb.mxu0 %v7115_v13  ;;  %4504 = vmatpush.bf16.msrb.mxu1 %v7179_v51  ;;  %v7136_v13 = vld [vmem:[%s12288_s1 + $0xd28] sm:$0xf0]  ;;  %v7071_v51 = vor.u32 %v7971_v36, %v7070_v47  ;;  %v7055_v7 = vor.u32 %v7967_v44, %v7054_v17  ;;  %v7230_v8 = vld [vmem:[%s12288_s1 + $0xee0] sm:$0xf]  ;;  %v7235_v10 = vor.u32 %v8042_v26, %v7232_v27  ;;  %v8051_v26 = vld [vmem:[%s12288_s1 + $0xf24] sm:$0xf0] }
 0x467   :  { %v7214_v44 = vld [vmem:[%s12288_s1 + $0xec0] sm:$0xf]  ;;  %v8034_v27 = vld [vmem:[%s12288_s1 + $0xea4] sm:$0xf] }
 0x469   :  { %4466 = vmatpush.bf16.msra.mxu2 %v7103_v54  ;;  %4479 = vmatpush.bf16.msra.mxu3 %v7167_v33  ;;  %v7139_v54 = vor.u32 %v7986_v57, %v7136_v13  ;;  %v7126_v33 = vld [vmem:[%s12288_s1 + $0xd10] sm:$0xf]  ;;  %v8058_v57 = vld [vmem:[%s12288_s1 + $0xf64] sm:$0xf]  ;;  %v7296_v13 = vld [vmem:[%s12288_s1 + $0xf68] sm:$0xf0] }
 0x46a   :  { %4492 = vmatpush.bf16.msrb.mxu0 %v7107_v14  ;;  %4505 = vmatpush.bf16.msrb.mxu1 %v7171_v48  ;;  %v7064_v14 = vld [vmem:[%s12288_s1 + $0xc98] sm:$0xf0]  ;;  %v7984_v48 = vld [vmem:[%s12288_s1 + $0xd14] sm:$0xf]  ;;  %v7127_v9 = vor.u32 %v7985_v34, %v7126_v33 }
 0x46b   :  { %v4038_v49 = vld.sshfl [vmem:[#allocation1] sm:$0xff pattern:$0x73625140]  ;;  %v4039_v24 = vld.sshfl [vmem:[#allocation1 + $0x8] sm:$0xff pattern:$0x73625140]  ;;  %v7067_v60 = vor.u32 %v7968_v20, %v7064_v14  ;;  %v7131_v28 = vor.u32 %v7984_v48, %v7128_v42 }
 0x46c   :  { %4297 = vst [vmem:[#allocation1] ss:$4 sm:$0xff] %v4259_v22  ;;  %v8045_v22 = vld [vmem:[%s12288_s1 + $0xef4] sm:$0xf0]  ;;  %v8040_v33 = vld [vmem:[%s12288_s1 + $0xed4] sm:$0xf] }
 0x46d   :  { %4467 = vmatpush.bf16.msra.mxu2 %v7095_v45  ;;  %4480 = vmatpush.bf16.msra.mxu3 %v7159_v12  ;;  %4300 = vst [vmem:[#allocation1 + $0x1] ss:$4 sm:$0xff] %v4263_v37  ;;  %v7056_v45 = vld [vmem:[%s12288_s1 + $0xc88] sm:$0xf0]  ;;  %v7982_v12 = vld [vmem:[%s12288_s1 + $0xd04] sm:$0xf] }
 0x46e   :  { %4493 = vmatpush.bf16.msrb.mxu0 %v7099_v63  ;;  %4506 = vmatpush.bf16.msrb.mxu1 %v7163_v52  ;;  %v7059_v63 = vor.u32 %v7966_v61, %v7056_v45  ;;  %v7123_v52 = vor.u32 %v7982_v12, %v7120_v55  ;;  %v8061_v37 = vld [vmem:[%s12288_s1 + $0xf74] sm:$0xf0]  ;;  %v7224_v34 = vld [vmem:[%s12288_s1 + $0xed8] sm:$0xf0]  ;;  %v8055_v45 = vld [vmem:[%s12288_s1 + $0xf44] sm:$0xf0] }
 0x46f   :  { %v7227_v42 = vor.u32 %v8040_v33, %v7224_v34  ;;  %v8038_v12 = vld [vmem:[%s12288_s1 + $0xec4] sm:$0xf]  ;;  %v7216_v55 = vld [vmem:[%s12288_s1 + $0xec8] sm:$0xf0]  ;;  %v8049_v34 = vld [vmem:[%s12288_s1 + $0xf14] sm:$0xf0] }
 0x471   :  { %4468 = vmatpush.bf16.msra.mxu2 %v7087_v0  ;;  %4481 = vmatpush.bf16.msra.mxu3 %v7151_v46  ;;  %v8044_v0 = vld [vmem:[%s12288_s1 + $0xef4] sm:$0xf]  ;;  %v7240_v46 = vld [vmem:[%s12288_s1 + $0xef8] sm:$0xf0] }
 0x472   :  { %4494 = vmatpush.bf16.msrb.mxu0 %v7091_v50  ;;  %4507 = vmatpush.bf16.msrb.mxu1 %v7155_v3  ;;  %v7243_v4 = vor.u32 %v8044_v0, %v7240_v46  ;;  %v8060_v50 = vld [vmem:[%s12288_s1 + $0xf74] sm:$0xf]  ;;  %v7304_v3 = vld [vmem:[%s12288_s1 + $0xf78] sm:$0xf0] }
 0x473   :  { %4210 = vmatmul.bf16.vlgmr.msrb.gmra.mxu2 %v4038_v49  ;;  %4223 = vmatmul.bf16.vlgmr.msrb.gmra.mxu3 %v4039_v24  ;;  %v7307_v30 = vor.u32 %v8060_v50, %v7304_v3  ;;  %v7208_v0 = vld [vmem:[%s12288_s1 + $0xeb8] sm:$0xf0]  ;;  %v8052_v3 = vld [vmem:[%s12288_s1 + $0xf34] sm:$0xf] }
 0x474   :  { %4236 = vmatmul.bf16.vlgmr.msra.gmra.mxu0 %v4038_v49  ;;  %4249 = vmatmul.bf16.vlgmr.msra.gmra.mxu1 %v4039_v24  ;;  %v4301_v41 = vld.sshfl [vmem:[#allocation1] sm:$0xff pattern:$0x73625140]  ;;  %v4302_v38 = vld.sshfl [vmem:[#allocation1 + $0x8] sm:$0xff pattern:$0x73625140]  ;;  %v7239_v24 = vor.u32 %v8045_v22, %v7238_v56 }
 0x475   :  { %4469 = vmatpush.bf16.msra.mxu2 %v7079_v39  ;;  %4482 = vmatpush.bf16.msra.mxu3 %v7143_v2  ;;  %v7302_v49 = vld [vmem:[%s12288_s1 + $0xf70] sm:$0xf]  ;;  %v8043_v39 = vld [vmem:[%s12288_s1 + $0xee4] sm:$0xf0]  ;;  %v7294_v2 = vld [vmem:[%s12288_s1 + $0xf60] sm:$0xf] }
 0x476   :  { %4495 = vmatpush.bf16.msrb.mxu0 %v7083_v18  ;;  %4508 = vmatpush.bf16.msrb.mxu1 %v7147_v58  ;;  %v7303_v62 = vor.u32 %v8061_v37, %v7302_v49  ;;  %v7231_v18 = vor.u32 %v8043_v39, %v7230_v8  ;;  %v8059_v58 = vld [vmem:[%s12288_s1 + $0xf64] sm:$0xf0]  ;;  %v8037_v56 = vld [vmem:[%s12288_s1 + $0xeb4] sm:$0xf0]  ;;  %v7270_v22 = vld [vmem:[%s12288_s1 + $0xf30] sm:$0xf] }
 0x477   :  { %v7295_v32 = vor.u32 %v8059_v58, %v7294_v2  ;;  %v8036_v37 = vld [vmem:[%s12288_s1 + $0xeb4] sm:$0xf]  ;;  %v7198_v39 = vld [vmem:[%s12288_s1 + $0xea0] sm:$0xf]  ;;  %v8035_v2 = vld [vmem:[%s12288_s1 + $0xea4] sm:$0xf0] }
 0x478   :  { %v7211_v50 = vor.u32 %v8036_v37, %v7208_v0  ;;  %v7199_v58 = vor.u32 %v8035_v2, %v7198_v39  ;;  %v8046_v0 = vld [vmem:[%s12288_s1 + $0xf04] sm:$0xf]  ;;  %v8029_v39 = vld [vmem:[%s12288_s1 + $0xe74] sm:$0xf0] }
 0x479   :  { %4470 = vmatpush.bf16.msra.mxu2 %v7071_v51  ;;  %4483 = vmatpush.bf16.msra.mxu3 %v7135_v35  ;;  %v7299_v51 = vor.u32 %v8058_v57, %v7296_v13  ;;  %v7222_v35 = vld [vmem:[%s12288_s1 + $0xed0] sm:$0xf]  ;;  %v8050_v13 = vld [vmem:[%s12288_s1 + $0xf24] sm:$0xf] }
 0x47a   :  { %4496 = vmatpush.bf16.msrb.mxu0 %v7075_v29  ;;  %4509 = vmatpush.bf16.msrb.mxu1 %v7139_v54  ;;  %v7223_v29 = vor.u32 %v8041_v53, %v7222_v35  ;;  %v8057_v54 = vld [vmem:[%s12288_s1 + $0xf54] sm:$0xf0]  ;;  %v7190_v53 = vld [vmem:[%s12288_s1 + $0xe90] sm:$0xf] }
 0x47b   :  { %v7287_v48 = vor.u32 %v8057_v54, %v7286_v1  ;;  %v8033_v1 = vld [vmem:[%s12288_s1 + $0xe94] sm:$0xf0] }
 0x47c   :  { %v7191_v33 = vor.u32 %v8033_v1, %v7190_v53  ;;  %v8010_v53 = vld [vmem:[%s12288_s1 + $0xde4] sm:$0xf] }
 0x47d   :  { %4471 = vmatpush.bf16.msra.mxu2 %v7063_v40  ;;  %4484 = vmatpush.bf16.msra.mxu3 %v7127_v9  ;;  %v8056_v40 = vld [vmem:[%s12288_s1 + $0xf54] sm:$0xf]  ;;  %v7288_v9 = vld [vmem:[%s12288_s1 + $0xf58] sm:$0xf0] }
 0x47e   :  { %4497 = vmatpush.bf16.msrb.mxu0 %v7067_v60  ;;  %4510 = vmatpush.bf16.msrb.mxu1 %v7131_v28  ;;  %v7291_v17 = vor.u32 %v8056_v40, %v7288_v9  ;;  %v8039_v60 = vld [vmem:[%s12288_s1 + $0xec4] sm:$0xf0]  ;;  %v7278_v28 = vld [vmem:[%s12288_s1 + $0xf40] sm:$0xf] }
 0x47f   :  { %v7215_v61 = vor.u32 %v8039_v60, %v7214_v44  ;;  %v8048_v44 = vld [vmem:[%s12288_s1 + $0xf14] sm:$0xf]  ;;  %v7256_v60 = vld [vmem:[%s12288_s1 + $0xf18] sm:$0xf0] }
 0x481   :  { %4472 = vmatpush.bf16.msra.mxu2 %v7055_v7  ;;  %4485 = vmatpush.bf16.msra.mxu3 %v7119_v19  ;;  %v7279_v7 = vor.u32 %v8055_v45, %v7278_v28  ;;  %v7219_v19 = vor.u32 %v8038_v12, %v7216_v55  ;;  %v7259_v55 = vor.u32 %v8048_v44, %v7256_v60  ;;  %v7350_v44 = vld [vmem:[%s12288_s1 + $0xdd0] sm:$0xf]  ;;  %v8009_v60 = vld [vmem:[%s12288_s1 + $0xdd4] sm:$0xf0] }
 0x482   :  { %4498 = vmatpush.bf16.msrb.mxu0 %v7059_v63  ;;  %4511 = vmatpush.bf16.msrb.mxu1 %v7123_v52  ;;  %v8054_v63 = vld [vmem:[%s12288_s1 + $0xf44] sm:$0xf]  ;;  %v7280_v52 = vld [vmem:[%s12288_s1 + $0xf48] sm:$0xf0] }
 0x484   :  { %4473 = vmatmul.bf16.vlgmr.msra.gmra.mxu2 %v4301_v41  ;;  %4486 = vmatmul.bf16.vlgmr.msra.gmra.mxu3 %v4302_v38 }
 0x485   :  { %4499 = vmatmul.bf16.vlgmr.msrb.gmra.mxu0 %v4301_v41  ;;  %4512 = vmatmul.bf16.vlgmr.msrb.gmra.mxu1 %v4302_v38  ;;  %v7283_v41 = vor.u32 %v8054_v63, %v7280_v52  ;;  %v7206_v38 = vld [vmem:[%s12288_s1 + $0xeb0] sm:$0xf]  ;;  %v8047_v52 = vld [vmem:[%s12288_s1 + $0xf04] sm:$0xf0] }
 0x486   :  { %4835 = vmatpush.bf16.msrb.mxu2 %v7239_v24  ;;  %4848 = vmatpush.bf16.msrb.mxu3 %v7303_v62  ;;  %v7207_v49 = vor.u32 %v8037_v56, %v7206_v38  ;;  %v8053_v24 = vld [vmem:[%s12288_s1 + $0xf34] sm:$0xf0]  ;;  %v7184_v38 = vld [vmem:[%s12288_s1 + $0xe88] sm:$0xf0] }
 0x487   :  { %4861 = vmatpush.bf16.msra.mxu0 %v7243_v4  ;;  %4874 = vmatpush.bf16.msra.mxu1 %v7307_v30  ;;  %v7271_v4 = vor.u32 %v8053_v24, %v7270_v22  ;;  %v7272_v30 = vld [vmem:[%s12288_s1 + $0xf38] sm:$0xf0] }
 0x488   :  { %v7275_v8 = vor.u32 %v8052_v3, %v7272_v30 }
 0x48a   :  { %4836 = vmatpush.bf16.msrb.mxu2 %v7231_v18  ;;  %4849 = vmatpush.bf16.msrb.mxu3 %v7295_v32  ;;  %v7200_v32 = vld [vmem:[%s12288_s1 + $0xea8] sm:$0xf0] }
 0x48b   :  { %4862 = vmatpush.bf16.msra.mxu0 %v7235_v10  ;;  %4875 = vmatpush.bf16.msra.mxu1 %v7299_v51  ;;  %v7203_v57 = vor.u32 %v8034_v27, %v7200_v32  ;;  %v7264_v51 = vld [vmem:[%s12288_s1 + $0xf28] sm:$0xf0]  ;;  %v7358_v32 = vld [vmem:[%s12288_s1 + $0xde0] sm:$0xf] }
 0x48c   :  { %v7267_v35 = vor.u32 %v8050_v13, %v7264_v51  ;;  %v7422_v51 = vld [vmem:[%s12288_s1 + $0xe60] sm:$0xf] }
 0x48e   :  { %4837 = vmatpush.bf16.msrb.mxu2 %v7223_v29  ;;  %4850 = vmatpush.bf16.msrb.mxu3 %v7287_v48  ;;  %v7254_v29 = vld [vmem:[%s12288_s1 + $0xf10] sm:$0xf] }
 0x48f   :  { %4863 = vmatpush.bf16.msra.mxu0 %v7227_v42  ;;  %4876 = vmatpush.bf16.msra.mxu1 %v7291_v17  ;;  %v7255_v9 = vor.u32 %v8049_v34, %v7254_v29  ;;  %v7360_v34 = vld [vmem:[%s12288_s1 + $0xde8] sm:$0xf0] }
 0x492   :  { %4838 = vmatpush.bf16.msrb.mxu2 %v7215_v61  ;;  %4851 = vmatpush.bf16.msrb.mxu3 %v7279_v7  ;;  %v11807_v61 = vld [vmem:[%s12290_s2 + $0x10] sm:$0x3f]  ;;  %v7182_v7 = vld [vmem:[%s12288_s1 + $0xe80] sm:$0xf] }
 0x493   :  { %4864 = vmatpush.bf16.msra.mxu0 %v7219_v19  ;;  %4877 = vmatpush.bf16.msra.mxu1 %v7283_v41  ;;  %v4519_v45 = vperm.slane %v11807_v61, 2  ;;  %v4523_v12 = vperm.slane %v11807_v61, 3  ;;  %v7246_v19 = vld [vmem:[%s12288_s1 + $0xf00] sm:$0xf]  ;;  %v8030_v41 = vld [vmem:[%s12288_s1 + $0xe84] sm:$0xf] }
 0x494   :  { %v7247_v24 = vor.u32 %v8047_v52, %v7246_v19  ;;  %v7187_v37 = vor.u32 %v8030_v41, %v7184_v38  ;;  %v8008_v19 = vld [vmem:[%s12288_s1 + $0xdd4] sm:$0xf] }
 0x495   :  { %v8024_v38 = vld [vmem:[%s12288_s1 + $0xe54] sm:$0xf] }
 0x496   :  { %4839 = vmatpush.bf16.msrb.mxu2 %v7207_v49  ;;  %4852 = vmatpush.bf16.msrb.mxu3 %v7271_v4  ;;  %v7248_v4 = vld [vmem:[%s12288_s1 + $0xf08] sm:$0xf0] }
 0x497   :  { %4865 = vmatpush.bf16.msra.mxu0 %v7211_v50  ;;  %4878 = vmatpush.bf16.msra.mxu1 %v7275_v8  ;;  %v7366_v50 = vld [vmem:[%s12288_s1 + $0xdf0] sm:$0xf] }
 0x498   :  { %v7430_v8 = vld [vmem:[%s12288_s1 + $0xe70] sm:$0xf] }
 0x49a   :  { %4840 = vmatpush.bf16.msrb.mxu2 %v7199_v58  ;;  %v8028_v58 = vld [vmem:[%s12288_s1 + $0xe74] sm:$0xf] }
 0x49b   :  { %4866 = vmatpush.bf16.msra.mxu0 %v7203_v57  ;;  %4879 = vmatpush.bf16.msra.mxu1 %v7267_v35  ;;  %v8027_v35 = vld [vmem:[%s12288_s1 + $0xe64] sm:$0xf0] }
 0x49e   :  { %4841 = vmatpush.bf16.msrb.mxu2 %v7191_v33  ;;  %v7423_v33 = vor.u32 %v8027_v35, %v7422_v51  ;;  %v7336_v35 = vld [vmem:[%s12288_s1 + $0xdb8] sm:$0xf0] }
 0x49f   :  { %4880 = vmatpush.bf16.msra.mxu1 %v7259_v55 }
 0x4e1   :  { %v11634_v31 = vpop.f32.mrf.mxu0  ;;  %v11636_v5 = vpop.f32.mrf.mxu1 }
 0x4e2   :  { %v4032_v54 = vadd.f32 %v11636_v5, %v11634_v31  ;;  %v11793_v31 = vld [vmem:[%s12290_s2 + $0x18] sm:$0x3f] }
 0x4e3   :  { %v4520_v5 = vperm.slane %v11793_v31, 2  ;;  %v4524_v40 = vperm.slane %v11793_v31, 3 }
 0x4e6   :  { %v11638_v43 = vpop.f32.mrf.mxu2  ;;  %v11640_v16 = vpop.f32.mrf.mxu3 }
 0x4e7   :  { %v4006_v56 = vadd.f32 %v11640_v16, %v11638_v43  ;;  %v7251_v43 = vor.u32 %v8046_v0, %v7248_v4  ;;  %v8013_v16 = vld [vmem:[%s12288_s1 + $0xdf4] sm:$0xf0]  ;;  %v8007_v0 = vld [vmem:[%s12288_s1 + $0xdc4] sm:$0xf0] }
 0x4e9   :  { %v4020_v47 = vpop.f32.mrf.mxu0  ;;  %v4033_v36 = vpop.f32.mrf.mxu1  ;;  %4881 = vmatpush.bf16.msra.mxu1 %v7251_v43 }
 0x4ea   :  { %v7262_v47 = vld [vmem:[%s12288_s1 + $0xf20] sm:$0xf] }
 0x4eb   :  { %v7263_v10 = vor.u32 %v8051_v26, %v7262_v47  ;;  %v7431_v47 = vor.u32 %v8029_v39, %v7430_v8  ;;  %v8022_v39 = vld [vmem:[%s12288_s1 + $0xe44] sm:$0xf] }
 0x4ed   :  { %4853 = vmatpush.bf16.msrb.mxu3 %v7263_v10  ;;  %v8011_v10 = vld [vmem:[%s12288_s1 + $0xde4] sm:$0xf0] }
 0x4ee   :  { %v3994_v20 = vpop.f32.mrf.mxu2  ;;  %v4007_v14 = vpop.f32.mrf.mxu3  ;;  %v7359_v13 = vor.u32 %v8011_v10, %v7358_v32  ;;  %v8021_v32 = vld [vmem:[%s12288_s1 + $0xe34] sm:$0xf0]  ;;  %v8004_v10 = vld [vmem:[%s12288_s1 + $0xdb4] sm:$0xf] }
 0x4ef   :  { %v8032_v20 = vld [vmem:[%s12288_s1 + $0xe94] sm:$0xf]  ;;  %v7192_v14 = vld [vmem:[%s12288_s1 + $0xe98] sm:$0xf0] }
 0x4f0   :  { %v7195_v17 = vor.u32 %v8032_v20, %v7192_v14  ;;  %v8026_v20 = vld [vmem:[%s12288_s1 + $0xe64] sm:$0xf]  ;;  %v7424_v14 = vld [vmem:[%s12288_s1 + $0xe68] sm:$0xf0] }
 0x4f1   :  { %v11699_v25 = vpop.f32.mrf.mxu0  ;;  %v11701_v23 = vpop.f32.mrf.mxu1  ;;  %4854 = vmatpush.bf16.msrb.mxu3 %v7255_v9  ;;  %v7427_v9 = vor.u32 %v8026_v20, %v7424_v14  ;;  %v8003_v20 = vld [vmem:[%s12288_s1 + $0xda4] sm:$0xf0]  ;;  %v7390_v14 = vld [vmem:[%s12288_s1 + $0xe20] sm:$0xf] }
 0x4f2   :  { %v4238_v28 = vadd.f32 %v11699_v25, %v4032_v54  ;;  %4867 = vmatpush.bf16.msra.mxu0 %v7195_v17  ;;  %v8031_v25 = vld [vmem:[%s12288_s1 + $0xe84] sm:$0xf0] }
 0x4f3   :  { %v7183_v63 = vor.u32 %v8031_v25, %v7182_v7  ;;  %v7351_v25 = vor.u32 %v8009_v60, %v7350_v44  ;;  %v8018_v44 = vld [vmem:[%s12288_s1 + $0xe24] sm:$0xf]  ;;  %v7392_v60 = vld [vmem:[%s12288_s1 + $0xe28] sm:$0xf0] }
 0x4f4   :  { %v4251_v3 = vadd.f32 %v11701_v23, %v4238_v28  ;;  %v7367_v23 = vor.u32 %v8013_v16, %v7366_v50  ;;  %v7414_v28 = vld [vmem:[%s12288_s1 + $0xe50] sm:$0xf] }
 0x4f5   :  { %4842 = vmatpush.bf16.msrb.mxu2 %v7183_v63  ;;  %4855 = vmatpush.bf16.msrb.mxu3 %v7247_v24  ;;  %v7352_v63 = vld [vmem:[%s12288_s1 + $0xdd8] sm:$0xf0] }
 0x4f6   :  { %v11736_v46 = vpop.f32.mrf.mxu2  ;;  %v11738_v62 = vpop.f32.mrf.mxu3  ;;  %4868 = vmatpush.bf16.msra.mxu0 %v7187_v37  ;;  %v7355_v41 = vor.u32 %v8008_v19, %v7352_v63  ;;  %v7342_v37 = vld [vmem:[%s12288_s1 + $0xdc0] sm:$0xf]  ;;  %v8000_v19 = vld [vmem:[%s12288_s1 + $0xd94] sm:$0xf]  ;;  %v7320_v63 = vld [vmem:[%s12288_s1 + $0xd98] sm:$0xf0] }
 0x4f7   :  { %v4212_v2 = vadd.f32 %v11736_v46, %v4006_v56  ;;  %v7432_v46 = vld [vmem:[%s12288_s1 + $0xe78] sm:$0xf0]  ;;  %v7343_v50 = vor.u32 %v8007_v0, %v7342_v37  ;;  %v7323_v0 = vor.u32 %v8000_v19, %v7320_v63 }
 0x4f8   :  { %v7435_v57 = vor.u32 %v8028_v58, %v7432_v46  ;;  %v7416_v56 = vld [vmem:[%s12288_s1 + $0xe58] sm:$0xf0]  ;;  %v7334_v58 = vld [vmem:[%s12288_s1 + $0xdb0] sm:$0xf] }
 0x4f9   :  { %v4239_v36 = vpop.f32.mrf.mxu0  ;;  %v4252_v18 = vpop.f32.mrf.mxu1  ;;  %5054 = vmatpush.bf16.msra.mxu2 %v7367_v23  ;;  %5067 = vmatpush.bf16.msra.mxu3 %v7431_v47  ;;  %v7419_v24 = vor.u32 %v8024_v38, %v7416_v56  ;;  %v7398_v46 = vld [vmem:[%s12288_s1 + $0xe30] sm:$0xf]  ;;  %v7310_v38 = vld [vmem:[%s12288_s1 + $0xd80] sm:$0xf]  ;;  %v7999_v56 = vld [vmem:[%s12288_s1 + $0xd84] sm:$0xf0] }
 0x4fa   :  { %v8012_v36 = vld [vmem:[%s12288_s1 + $0xdf4] sm:$0xf]  ;;  %v7368_v18 = vld [vmem:[%s12288_s1 + $0xdf8] sm:$0xf0]  ;;  %5093 = vmatpush.bf16.msrb.mxu1 %v7435_v57  ;;  %v7399_v51 = vor.u32 %v8021_v32, %v7398_v46 }
 0x4fb   :  { %v7371_v27 = vor.u32 %v8012_v36, %v7368_v18 }
 0x4fd   :  { %5080 = vmatpush.bf16.msrb.mxu0 %v7371_v27  ;;  %5055 = vmatpush.bf16.msra.mxu2 %v7359_v13 }
 0x4fe   :  { %v4213_v48 = vpop.f32.mrf.mxu2  ;;  %v4226_v42 = vpop.f32.mrf.mxu3  ;;  %5068 = vmatpush.bf16.msra.mxu3 %v7423_v33  ;;  %5094 = vmatpush.bf16.msrb.mxu1 %v7427_v9  ;;  %v7326_v33 = vld [vmem:[%s12288_s1 + $0xda0] sm:$0xf] }
 0x4ff   :  { %v4225_v48 = vadd.f32 %v11738_v62, %v4212_v2  ;;  %v7408_v2 = vld [vmem:[%s12288_s1 + $0xe48] sm:$0xf0]  ;;  %v7327_v9 = vor.u32 %v8003_v20, %v7326_v33 }
 0x500   :  { %v7411_v18 = vor.u32 %v8022_v39, %v7408_v2 }
 0x501   :  { %5056 = vmatpush.bf16.msra.mxu2 %v7351_v25  ;;  %v8017_v25 = vld [vmem:[%s12288_s1 + $0xe14] sm:$0xf0] }
 0x502   :  { %v4500_v22 = vpop.f32.mrf.mxu0  ;;  %v4513_v49 = vpop.f32.mrf.mxu1  ;;  %5095 = vmatpush.bf16.msrb.mxu1 %v7419_v24 }
 0x503   :  { %v4514_v30 = vadd.f32 %v4513_v49, %v4500_v22 }
 0x505   :  { %v4518_v26 = vadd.f32 %v4514_v30, %v4251_v3  ;;  %v8023_v3 = vld [vmem:[%s12288_s1 + $0xe44] sm:$0xf0]  ;;  %v8006_v30 = vld [vmem:[%s12288_s1 + $0xdc4] sm:$0xf]  ;;  %5057 = vmatpush.bf16.msra.mxu2 %v7343_v50 }
 0x506   :  { %5096 = vmatpush.bf16.msrb.mxu1 %v7411_v18  ;;  %v7311_v18 = vor.u32 %v7999_v56, %v7310_v38 }
 0x507   :  { %v4522_v1 = vmul.f32 %v4520_v5, %v4518_v26  ;;  %v4474_v29 = vpop.f32.mrf.mxu2  ;;  %v4487_v54 = vpop.f32.mrf.mxu3  ;;  %v7363_v5 = vor.u32 %v8010_v53, %v7360_v34  ;;  %v8005_v26 = vld [vmem:[%s12288_s1 + $0xdb4] sm:$0xf0]  ;;  %v8020_v53 = vld [vmem:[%s12288_s1 + $0xe34] sm:$0xf] }
 0x508   :  { %v4488_v42 = vadd.f32 %v4487_v54, %v4474_v29  ;;  %v7335_v27 = vor.u32 %v8005_v26, %v7334_v58  ;;  %v7339_v54 = vor.u32 %v8004_v10, %v7336_v35  ;;  %v7312_v26 = vld [vmem:[%s12288_s1 + $0xd88] sm:$0xf0] }
 0x509   :  { %v4526_v17 = vadd.f32 %v4524_v40, %v4522_v1  ;;  %v8025_v40 = vld [vmem:[%s12288_s1 + $0xe54] sm:$0xf0]  ;;  %5081 = vmatpush.bf16.msrb.mxu0 %v7363_v5  ;;  %v7400_v1 = vld [vmem:[%s12288_s1 + $0xe38] sm:$0xf0]  ;;  %v7328_v5 = vld [vmem:[%s12288_s1 + $0xda8] sm:$0xf0] }
 0x50a   :  { %v4517_v62 = vadd.f32 %v4488_v42, %v4225_v48  ;;  %v4502_v55 = vpop.f32.mrf.mxu0  ;;  %v4515_v7 = vpop.f32.mrf.mxu1  ;;  %v7415_v52 = vor.u32 %v8025_v40, %v7414_v28  ;;  %v7403_v34 = vor.u32 %v8020_v53, %v7400_v1  ;;  %v8019_v48 = vld [vmem:[%s12288_s1 + $0xe24] sm:$0xf0]  ;;  %v8002_v42 = vld [vmem:[%s12288_s1 + $0xda4] sm:$0xf]  ;;  %5058 = vmatpush.bf16.msra.mxu2 %v7335_v27  ;;  %v7318_v28 = vld [vmem:[%s12288_s1 + $0xd90] sm:$0xf]  ;;  %v7395_v40 = vor.u32 %v8018_v44, %v7392_v60 }
 0x50b   :  { %v4528_v22 = vmax.f32 %v4526_v17, 0.0  ;;  %v7391_v17 = vor.u32 %v8019_v48, %v7390_v14  ;;  %v8001_v55 = vld [vmem:[%s12288_s1 + $0xd94] sm:$0xf0]  ;;  %v7382_v7 = vld [vmem:[%s12288_s1 + $0xe10] sm:$0xf] }
 0x50c   :  { %v4521_v49 = vmul.f32 %v4519_v45, %v4517_v62  ;;  %5069 = vmatpush.bf16.msra.mxu3 %v7415_v52  ;;  %v7406_v45 = vld [vmem:[%s12288_s1 + $0xe40] sm:$0xf]  ;;  %v7331_v62 = vor.u32 %v8002_v42, %v7328_v5  ;;  %5097 = vmatpush.bf16.msrb.mxu1 %v7403_v34  ;;  %v8016_v52 = vld [vmem:[%s12288_s1 + $0xe14] sm:$0xf]  ;;  %v8014_v27 = vld [vmem:[%s12288_s1 + $0xe04] sm:$0xf] }
 0x50d   :  { %5082 = vmatpush.bf16.msrb.mxu0 %v7355_v41  ;;  %v7407_v8 = vor.u32 %v8023_v3, %v7406_v45  ;;  %v4531_v23 = vrot.slane %v4528_v22, 4  ;;  %v7384_v41 = vld [vmem:[%s12288_s1 + $0xe18] sm:$0xf0]  ;;  %v7319_v22 = vor.u32 %v8001_v55, %v7318_v28  ;;  %v7374_v45 = vld [vmem:[%s12288_s1 + $0xe00] sm:$0xf] }
 0x50e   :  { %v4525_v4 = vadd.f32 %v4523_v12, %v4521_v49  ;;  %v7344_v12 = vld [vmem:[%s12288_s1 + $0xdc8] sm:$0xf0]  ;;  %5059 = vmatpush.bf16.msra.mxu2 %v7327_v9  ;;  %v7383_v49 = vor.u32 %v8017_v25, %v7382_v7  ;;  %v8015_v3 = vld [vmem:[%s12288_s1 + $0xe04] sm:$0xf0] }
 0x50f   :  { %v4476_v43 = vpop.f32.mrf.mxu2  ;;  %v4489_v16 = vpop.f32.mrf.mxu3  ;;  %v7347_v36 = vor.u32 %v8006_v30, %v7344_v12  ;;  %v7375_v58 = vor.u32 %v8015_v3, %v7374_v45  ;;  %v7562_v45 = vld [vmem:[%s12288_s1 + $0x1078] sm:$0xf0]  ;;  %v7488_v3 = vld [vmem:[%s12288_s1 + $0xfe0] sm:$0xf] }
 0x510   :  { %v4527_v47 = vmax.f32 %v4525_v4, 0.0  ;;  %5070 = vmatpush.bf16.msra.mxu3 %v7407_v8  ;;  %5098 = vmatpush.bf16.msrb.mxu1 %v7395_v40  ;;  %v7387_v16 = vor.u32 %v8016_v52, %v7384_v41 }
 0x511   :  { %5083 = vmatpush.bf16.msrb.mxu0 %v7347_v36 }
 0x512   :  { %v4532_v57 = vsel %vm3679_vm11, %v4527_v47, %v4531_v23  ;;  %v4533_v13 = vsel %vm3679_vm11, %v4531_v23, %v4527_v47  ;;  %v7998_v23 = vld [vmem:[%s12288_s1 + $0xd84] sm:$0xf]  ;;  %5060 = vmatpush.bf16.msra.mxu2 %v7319_v22 }
 0x513   :  { %v4534_v29 = vrot.slane %v4533_v13, 4  ;;  %4535 = vst [vmem:[#allocation1] ss:$2 sm:$0xff] %v4532_v57  ;;  %v7315_v57 = vor.u32 %v7998_v23, %v7312_v26  ;;  %v7376_v13 = vld [vmem:[%s12288_s1 + $0xe08] sm:$0xf0] }
 0x514   :  { %5071 = vmatpush.bf16.msra.mxu3 %v7399_v51  ;;  %5099 = vmatpush.bf16.msrb.mxu1 %v7387_v16  ;;  %v7379_v53 = vor.u32 %v8014_v27, %v7376_v13  ;;  %v7554_v26 = vld [vmem:[%s12288_s1 + $0x1068] sm:$0xf0]  ;;  %v8073_v13 = vld [vmem:[%s12288_s1 + $0xfd4] sm:$0xf0] }
 0x515   :  { %4539 = vst [vmem:[#allocation1 + $0x10] ss:$2 sm:$0xff] %v4534_v29  ;;  %5084 = vmatpush.bf16.msrb.mxu0 %v7339_v54 }
 0x516   :  { %5061 = vmatpush.bf16.msra.mxu2 %v7311_v18 }
 0x518   :  { %5072 = vmatpush.bf16.msra.mxu3 %v7391_v17  ;;  %5100 = vmatpush.bf16.msrb.mxu1 %v7379_v53  ;;  %v7544_v53 = vld [vmem:[%s12288_s1 + $0x1050] sm:$0xf] }
 0x519   :  { %5085 = vmatpush.bf16.msrb.mxu0 %v7331_v62 }
 0x51a   :  { %v4536_v24 = vld.sshfl [vmem:[#allocation1] sm:$0xff pattern:$0x75316420]  ;;  %v4537_v37 = vld.sshfl [vmem:[#allocation1 + $0x8] sm:$0xff pattern:$0x75316420] }
 0x51b   :  { %v4542_v4 = vrot.slane %v4536_v24, 7  ;;  %v4543_v50 = vrot.slane %v4537_v37, 7  ;;  %v8077_v24 = vld [vmem:[%s12288_s1 + $0xff4] sm:$0xf0]  ;;  %v7560_v37 = vld [vmem:[%s12288_s1 + $0x1070] sm:$0xf] }
 0x51c   :  { %v4540_v30 = vld.sshfl [vmem:[#allocation1 + $0x10] sm:$0xff pattern:$0x75316420]  ;;  %v4541_v43 = vld.sshfl [vmem:[#allocation1 + $0x18] sm:$0xff pattern:$0x75316420]  ;;  %5073 = vmatpush.bf16.msra.mxu3 %v7383_v49 }
 0x51d   :  { %v4544_v8 = vrot.slane %v4540_v30, 7  ;;  %v4545_v12 = vrot.slane %v4541_v43, 7  ;;  %v4550_v39 = vsel %vm29_vm0, 0.0, %v4542_v4  ;;  %v4551_v2 = vsel %vm29_vm0, 0.0, %v4543_v50  ;;  %5086 = vmatpush.bf16.msrb.mxu0 %v7323_v0  ;;  %v7496_v49 = vld [vmem:[%s12288_s1 + $0xff0] sm:$0xf] }
 0x51e   :  { %v4554_v47 = vsel %vm3207_vm15, %v4550_v39, 0.0  ;;  %v4555_v36 = vsel %vm3207_vm15, %v4551_v2, 0.0  ;;  %v8093_v0 = vld [vmem:[%s12288_s1 + $0x1074] sm:$0xf0]  ;;  %v7498_v4 = vld [vmem:[%s12288_s1 + $0xff8] sm:$0xf0]  ;;  %v7497_v16 = vor.u32 %v8077_v24, %v7496_v49 }
 0x51f   :  { %v4552_v46 = vsel %vm29_vm0, 0.0, %v4544_v8  ;;  %v4553_v32 = vsel %vm29_vm0, 0.0, %v4545_v12  ;;  %v4558_v10 = vpack.c.bf16 %v4555_v36, %v4554_v47  ;;  %v8092_v50 = vld [vmem:[%s12288_s1 + $0x1074] sm:$0xf]  ;;  %v8075_v30 = vld [vmem:[%s12288_s1 + $0xfe4] sm:$0xf0]  ;;  %v7561_v8 = vor.u32 %v8093_v0, %v7560_v37 }
 0x520   :  { %v4556_v51 = vsel %vm3207_vm15, %v4552_v46, 0.0  ;;  %v4557_v35 = vsel %vm3207_vm15, %v4553_v32, 0.0  ;;  %5074 = vmatpush.bf16.msra.mxu3 %v7375_v58  ;;  %v7552_v43 = vld [vmem:[%s12288_s1 + $0x1060] sm:$0xf]  ;;  %v8091_v12 = vld [vmem:[%s12288_s1 + $0x1064] sm:$0xf0]  ;;  %v7501_v36 = vor.u32 %v8076_v11, %v7498_v4  ;;  %v7565_v18 = vor.u32 %v8092_v50, %v7562_v45 }
 0x521   :  { %v4559_v1 = vpack.c.bf16 %v4557_v35, %v4556_v51  ;;  %v4562_v29 = vrot.slane %v4558_v10, 2  ;;  %5087 = vmatpush.bf16.msrb.mxu0 %v7315_v57  ;;  %v8074_v39 = vld [vmem:[%s12288_s1 + $0xfe4] sm:$0xf]  ;;  %v7490_v2 = vld [vmem:[%s12288_s1 + $0xfe8] sm:$0xf0]  ;;  %v7489_v32 = vor.u32 %v8075_v30, %v7488_v3 }
 0x522   :  { %v8090_v58 = vld [vmem:[%s12288_s1 + $0x1064] sm:$0xf]  ;;  %v7480_v57 = vld [vmem:[%s12288_s1 + $0xfd0] sm:$0xf]  ;;  %v7493_v51 = vor.u32 %v8074_v39, %v7490_v2  ;;  %v8085_v37 = vld [vmem:[%s12288_s1 + $0x1034] sm:$0xf0] }
 0x523   :  { %v4563_v54 = vrot.slane %v4559_v1, 2  ;;  %v12049_v33 = vsel %vm1630_vm7, %v4558_v10, %v4562_v29  ;;  %v4602_v34 = vsel %vm3235_vm3, %v4558_v10, %v4562_v29  ;;  %v7553_v10 = vor.u32 %v8091_v12, %v7552_v43  ;;  %v8072_v29 = vld [vmem:[%s12288_s1 + $0xfd4] sm:$0xf]  ;;  %v7466_v11 = vld [vmem:[%s12288_s1 + $0xfb8] sm:$0xf0] }
 0x524   :  { %v4604_v20 = vrot.slane %v4602_v34, 2  ;;  %v4608_v14 = vshrl.u32 %v12049_v33, 16  ;;  %v4611_v48 = vshll.u32 %v12049_v33, 16  ;;  %v7436_v27 = vrot.slane %v12049_v33, 9  ;;  %v7546_v34 = vld [vmem:[%s12288_s1 + $0x1058] sm:$0xf0] }
 0x525   :  { %v12055_v42 = vsel %vm1630_vm7, %v4559_v1, %v4563_v54  ;;  %v12058_v5 = vsel %vm3235_vm3, %v4559_v1, %v4563_v54  ;;  %v7557_v35 = vor.u32 %v8090_v58, %v7554_v26  ;;  %v8089_v1 = vld [vmem:[%s12288_s1 + $0x1054] sm:$0xf0]  ;;  %v7482_v54 = vld [vmem:[%s12288_s1 + $0xfd8] sm:$0xf0]  ;;  %v8068_v0 = vld [vmem:[%s12288_s1 + $0xfb4] sm:$0xf]  ;;  %v7529_v3 = vor.u32 %v8085_v37, %v7528_v15 }
 0x526   :  { %v4607_v9 = vrot.slane %v12058_v5, 2  ;;  %v4621_v17 = vshrl.u32 %v12055_v42, 16  ;;  %v4624_v44 = vshll.u32 %v12055_v42, 16  ;;  %v4610_v60 = vrot.slane %v4608_v14, 6  ;;  %v8070_v5 = vld [vmem:[%s12288_s1 + $0xfc4] sm:$0xf] }
 0x527   :  { %v4613_v28 = vrot.slane %v4611_v48, 7  ;;  %v4617_v62 = vshll.u32 %v4604_v20, 16  ;;  %v5110_v46 = vrot.slane %v4604_v20, 7  ;;  %v7437_v20 = vrot.slane %v12055_v42, 9  ;;  %v7472_v48 = vld [vmem:[%s12288_s1 + $0xfc0] sm:$0xf] }
 0x528   :  { %v4623_v55 = vrot.slane %v4621_v17, 6  ;;  %v4626_v7 = vrot.slane %v4624_v44, 7  ;;  %v4630_v25 = vshll.u32 %v4607_v9, 16  ;;  %v5114_v14 = vrot.slane %v4607_v9, 7  ;;  %v8071_v17 = vld [vmem:[%s12288_s1 + $0xfc4] sm:$0xf0] }
 0x529   :  { %v4614_v40 = vor.u32 %v4613_v28, %v4610_v60  ;;  %v4619_v52 = vrot.slane %v4617_v62, 7  ;;  %v7481_v44 = vor.u32 %v8073_v13, %v7480_v57  ;;  %v7545_v60 = vor.u32 %v8089_v1, %v7544_v53  ;;  %v7536_v28 = vld [vmem:[%s12288_s1 + $0x1040] sm:$0xf]  ;;  %v8084_v4 = vld [vmem:[%s12288_s1 + $0x1034] sm:$0xf] }
 0x52a   :  { %v4627_v19 = vor.u32 %v4626_v7, %v4623_v55  ;;  %v4632_v38 = vrot.slane %v4630_v25, 7  ;;  %v7485_v9 = vor.u32 %v8072_v29, %v7482_v54  ;;  %v7474_v55 = vld [vmem:[%s12288_s1 + $0xfc8] sm:$0xf0]  ;;  %v8086_v7 = vld [vmem:[%s12288_s1 + $0x1044] sm:$0xf] }
 0x52b   :  { %v4615_v63 = vrot.slane %v4614_v40, 2  ;;  %v7538_v25 = vld [vmem:[%s12288_s1 + $0x1048] sm:$0xf0]  ;;  %v5111_v40 = vsel %vm10950_vm4, %v7436_v27, %v5110_v46  ;;  %v7477_v49 = vor.u32 %v8070_v5, %v7474_v55  ;;  %v7530_v50 = vld [vmem:[%s12288_s1 + $0x1038] sm:$0xf0] }
 0x52c   :  { %v4628_v41 = vrot.slane %v4627_v19, 2  ;;  %v7541_v24 = vor.u32 %v8086_v7, %v7538_v25  ;;  %v7456_v30 = vld [vmem:[%s12288_s1 + $0xfa0] sm:$0xf]  ;;  %v8067_v43 = vld [vmem:[%s12288_s1 + $0xfa4] sm:$0xf0] }
 0x52d   :  { %v4620_v56 = vsel %vm10796_vm1, %v4615_v63, %v4619_v52  ;;  %v5115_v52 = vsel %vm10950_vm4, %v7437_v20, %v5114_v14  ;;  %v7520_v12 = vld [vmem:[%s12288_s1 + $0x1020] sm:$0xf]  ;;  %v8083_v39 = vld [vmem:[%s12288_s1 + $0x1024] sm:$0xf0]  ;;  %v8066_v2 = vld [vmem:[%s12288_s1 + $0xfa4] sm:$0xf] }
 0x52e   :  { %v4633_v22 = vsel %vm10796_vm1, %v4628_v41, %v4632_v38  ;;  %4667 = vst [vmem:[#allocation1] ss:$4 sm:$0xff] %v4620_v56  ;;  %v7473_v41 = vor.u32 %v8071_v17, %v7472_v48  ;;  %v7464_v56 = vld [vmem:[%s12288_s1 + $0xfb0] sm:$0xf]  ;;  %v7521_v58 = vor.u32 %v8083_v39, %v7520_v12  ;;  %v8065_v27 = vld [vmem:[%s12288_s1 + $0xf94] sm:$0xf0] }
 0x52f   :  { %4670 = vst [vmem:[#allocation1 + $0x1] ss:$4 sm:$0xff] %v4633_v22  ;;  %v8069_v22 = vld [vmem:[%s12288_s1 + $0xfb4] sm:$0xf0]  ;;  %v7448_v26 = vld [vmem:[%s12288_s1 + $0xf90] sm:$0xf] }
 0x530   :  { %v7465_v45 = vor.u32 %v8069_v22, %v7464_v56  ;;  %v8081_v57 = vld [vmem:[%s12288_s1 + $0x1014] sm:$0xf0]  ;;  %v8064_v13 = vld [vmem:[%s12288_s1 + $0xf94] sm:$0xf]  ;;  %v7514_v53 = vld [vmem:[%s12288_s1 + $0x1018] sm:$0xf0]  ;;  %v7449_v1 = vor.u32 %v8065_v27, %v7448_v26 }
 0x531   :  { %v7440_v54 = vld [vmem:[%s12288_s1 + $0xf80] sm:$0xf]  ;;  %v8079_v48 = vld [vmem:[%s12288_s1 + $0x1004] sm:$0xf0]  ;;  %v8062_v17 = vld [vmem:[%s12288_s1 + $0xf84] sm:$0xf] }
 0x532   :  { %v7504_v14 = vld [vmem:[%s12288_s1 + $0x1000] sm:$0xf]  ;;  %v5372_v12 = vperm.slane %v11793_v31, 4  ;;  %v5371_v27 = vperm.slane %v11807_v61, 4 }
 0x533   :  { %v7505_v5 = vor.u32 %v8079_v48, %v7504_v14 }
 0x536   :  { %v4671_v23 = vld.sshfl [vmem:[#allocation1] sm:$0xff pattern:$0x73625140]  ;;  %v4672_v47 = vld.sshfl [vmem:[#allocation1 + $0x8] sm:$0xff pattern:$0x73625140] }
 0x537   :  { %4843 = vmatmul.bf16.vlgmr.msrb.gmra.mxu2 %v4671_v23  ;;  %4856 = vmatmul.bf16.vlgmr.msrb.gmra.mxu3 %v4672_v47  ;;  %4887 = vst [vmem:[#allocation1] ss:$4 sm:$0xff] %v12049_v33  ;;  %v8088_v33 = vld [vmem:[%s12288_s1 + $0x1054] sm:$0xf] }
 0x538   :  { %4889 = vst [vmem:[#allocation1 + $0x1] ss:$4 sm:$0xff] %v12055_v42  ;;  %4869 = vmatmul.bf16.vlgmr.msra.gmra.mxu0 %v4671_v23  ;;  %4882 = vmatmul.bf16.vlgmr.msra.gmra.mxu1 %v4672_v47  ;;  %v8087_v42 = vld [vmem:[%s12288_s1 + $0x1044] sm:$0xf0]  ;;  %v7549_v62 = vor.u32 %v8088_v33, %v7546_v34  ;;  %v7458_v23 = vld [vmem:[%s12288_s1 + $0xfa8] sm:$0xf0] }
 0x539   :  { %5317 = vmatpush.bf16.msrb.mxu2 %v7497_v16  ;;  %5330 = vmatpush.bf16.msrb.mxu3 %v7561_v8  ;;  %v7537_v38 = vor.u32 %v8087_v42, %v7536_v28  ;;  %v7469_v16 = vor.u32 %v8068_v0, %v7466_v11  ;;  %v7533_v8 = vor.u32 %v8084_v4, %v7530_v50  ;;  %v8082_v47 = vld [vmem:[%s12288_s1 + $0x1024] sm:$0xf]  ;;  %v8063_v33 = vld [vmem:[%s12288_s1 + $0xf84] sm:$0xf0]  ;;  %v7506_v28 = vld [vmem:[%s12288_s1 + $0x1008] sm:$0xf0] }
 0x53a   :  { %5343 = vmatpush.bf16.msra.mxu0 %v7501_v36  ;;  %5356 = vmatpush.bf16.msra.mxu1 %v7565_v18  ;;  %v7522_v36 = vld [vmem:[%s12288_s1 + $0x1028] sm:$0xf0]  ;;  %v7457_v18 = vor.u32 %v8067_v43, %v7456_v30  ;;  %v7461_v46 = vor.u32 %v8066_v2, %v7458_v23  ;;  %v7441_v42 = vor.u32 %v8063_v33, %v7440_v54  ;;  %v5376_v23 = vperm.slane %v11793_v31, 5 }
 0x53d   :  { %5318 = vmatpush.bf16.msrb.mxu2 %v7489_v32  ;;  %5331 = vmatpush.bf16.msrb.mxu3 %v7553_v10  ;;  %v7525_v32 = vor.u32 %v8082_v47, %v7522_v36  ;;  %v7512_v10 = vld [vmem:[%s12288_s1 + $0x1010] sm:$0xf] }
 0x53e   :  { %5344 = vmatpush.bf16.msra.mxu0 %v7493_v51  ;;  %5357 = vmatpush.bf16.msra.mxu1 %v7557_v35  ;;  %v7450_v51 = vld [vmem:[%s12288_s1 + $0xf98] sm:$0xf0]  ;;  %v8080_v35 = vld [vmem:[%s12288_s1 + $0x1014] sm:$0xf]  ;;  %v7513_v29 = vor.u32 %v8081_v57, %v7512_v10  ;;  %v5375_v10 = vperm.slane %v11807_v61, 5 }
 0x53f   :  { %v4890_v19 = vld.sshfl [vmem:[#allocation1] sm:$0xff pattern:$0x73625140]  ;;  %v4891_v63 = vld.sshfl [vmem:[#allocation1 + $0x8] sm:$0xff pattern:$0x73625140]  ;;  %v7453_v34 = vor.u32 %v8064_v13, %v7450_v51  ;;  %v7517_v20 = vor.u32 %v8080_v35, %v7514_v53 }
 0x540   :  { %5149 = vst [vmem:[#allocation1] ss:$4 sm:$0xff] %v5111_v40 }
 0x541   :  { %5319 = vmatpush.bf16.msrb.mxu2 %v7481_v44  ;;  %5332 = vmatpush.bf16.msrb.mxu3 %v7545_v60  ;;  %5152 = vst [vmem:[#allocation1 + $0x1] ss:$4 sm:$0xff] %v5115_v52  ;;  %v7442_v44 = vld [vmem:[%s12288_s1 + $0xf88] sm:$0xf0]  ;;  %v8078_v60 = vld [vmem:[%s12288_s1 + $0x1004] sm:$0xf] }
 0x542   :  { %5345 = vmatpush.bf16.msra.mxu0 %v7485_v9  ;;  %5358 = vmatpush.bf16.msra.mxu1 %v7549_v62  ;;  %v7445_v9 = vor.u32 %v8062_v17, %v7442_v44  ;;  %v7509_v62 = vor.u32 %v8078_v60, %v7506_v28 }
 0x545   :  { %5320 = vmatpush.bf16.msrb.mxu2 %v7473_v41  ;;  %5333 = vmatpush.bf16.msrb.mxu3 %v7537_v38 }
 0x546   :  { %5346 = vmatpush.bf16.msra.mxu0 %v7477_v49  ;;  %5359 = vmatpush.bf16.msra.mxu1 %v7541_v24 }
 0x547   :  { %5062 = vmatmul.bf16.vlgmr.msra.gmra.mxu2 %v4890_v19  ;;  %5075 = vmatmul.bf16.vlgmr.msra.gmra.mxu3 %v4891_v63 }
 0x548   :  { %5088 = vmatmul.bf16.vlgmr.msrb.gmra.mxu0 %v4890_v19  ;;  %5101 = vmatmul.bf16.vlgmr.msrb.gmra.mxu1 %v4891_v63  ;;  %v5153_v55 = vld.sshfl [vmem:[#allocation1] sm:$0xff pattern:$0x73625140]  ;;  %v5154_v7 = vld.sshfl [vmem:[#allocation1 + $0x8] sm:$0xff pattern:$0x73625140] }
 0x549   :  { %5321 = vmatpush.bf16.msrb.mxu2 %v7465_v45  ;;  %5334 = vmatpush.bf16.msrb.mxu3 %v7529_v3 }
 0x54a   :  { %5347 = vmatpush.bf16.msra.mxu0 %v7469_v16  ;;  %5360 = vmatpush.bf16.msra.mxu1 %v7533_v8 }
 0x54d   :  { %5322 = vmatpush.bf16.msrb.mxu2 %v7457_v18  ;;  %5335 = vmatpush.bf16.msrb.mxu3 %v7521_v58 }
 0x54e   :  { %5348 = vmatpush.bf16.msra.mxu0 %v7461_v46  ;;  %5361 = vmatpush.bf16.msra.mxu1 %v7525_v32 }
 0x551   :  { %5323 = vmatpush.bf16.msrb.mxu2 %v7449_v1  ;;  %5336 = vmatpush.bf16.msrb.mxu3 %v7513_v29 }
 0x552   :  { %5349 = vmatpush.bf16.msra.mxu0 %v7453_v34  ;;  %5362 = vmatpush.bf16.msra.mxu1 %v7517_v20 }
 0x555   :  { %5324 = vmatpush.bf16.msrb.mxu2 %v7441_v42  ;;  %5337 = vmatpush.bf16.msrb.mxu3 %v7505_v5 }
 0x556   :  { %5350 = vmatpush.bf16.msra.mxu0 %v7445_v9  ;;  %5363 = vmatpush.bf16.msra.mxu1 %v7509_v62 }
 0x558   :  { %5325 = vmatmul.bf16.vlgmr.msrb.gmra.mxu2 %v5153_v55  ;;  %5338 = vmatmul.bf16.vlgmr.msrb.gmra.mxu3 %v5154_v7 }
 0x559   :  { %5351 = vmatmul.bf16.vlgmr.msra.gmra.mxu0 %v5153_v55  ;;  %5364 = vmatmul.bf16.vlgmr.msra.gmra.mxu1 %v5154_v7 }
 0x5b5   :  { %v4870_v25 = vpop.f32.mrf.mxu0  ;;  %v4883_v40 = vpop.f32.mrf.mxu1 }
 0x5b6   :  { %v4884_v11 = vadd.f32 %v4883_v40, %v4870_v25 }
 0x5ba   :  { %v4844_v19 = vpop.f32.mrf.mxu2  ;;  %v4857_v63 = vpop.f32.mrf.mxu3 }
 0x5bb   :  { %v4858_v3 = vadd.f32 %v4857_v63, %v4844_v19 }
 0x5bd   :  { %v4872_v52 = vpop.f32.mrf.mxu0  ;;  %v4885_v41 = vpop.f32.mrf.mxu1 }
 0x5c2   :  { %v4846_v38 = vpop.f32.mrf.mxu2  ;;  %v4859_v56 = vpop.f32.mrf.mxu3 }
 0x5c5   :  { %v5089_v22 = vpop.f32.mrf.mxu0  ;;  %v5102_v49 = vpop.f32.mrf.mxu1 }
 0x5c6   :  { %v5090_v45 = vadd.f32 %v5089_v22, %v4884_v11 }
 0x5c8   :  { %v5103_v16 = vadd.f32 %v5102_v49, %v5090_v45 }
 0x5ca   :  { %v5063_v24 = vpop.f32.mrf.mxu2  ;;  %v5076_v15 = vpop.f32.mrf.mxu3 }
 0x5cb   :  { %v5064_v39 = vadd.f32 %v5063_v24, %v4858_v3 }
 0x5cd   :  { %v5091_v37 = vpop.f32.mrf.mxu0  ;;  %v5104_v0 = vpop.f32.mrf.mxu1  ;;  %v5077_v58 = vadd.f32 %v5076_v15, %v5064_v39 }
 0x5d2   :  { %v5065_v4 = vpop.f32.mrf.mxu2  ;;  %v5078_v50 = vpop.f32.mrf.mxu3 }
 0x5d6   :  { %v5352_v30 = vpop.f32.mrf.mxu0  ;;  %v5365_v43 = vpop.f32.mrf.mxu1 }
 0x5d7   :  { %v5366_v8 = vadd.f32 %v5365_v43, %v5352_v30 }
 0x5d9   :  { %v5370_v2 = vadd.f32 %v5366_v8, %v5103_v16 }
 0x5db   :  { %v5374_v47 = vmul.f32 %v5372_v12, %v5370_v2  ;;  %v5326_v36 = vpop.f32.mrf.mxu2  ;;  %v5339_v18 = vpop.f32.mrf.mxu3 }
 0x5dc   :  { %v5340_v26 = vadd.f32 %v5339_v18, %v5326_v36 }
 0x5dd   :  { %v5378_v46 = vadd.f32 %v5376_v23, %v5374_v47 }
 0x5de   :  { %v5369_v32 = vadd.f32 %v5340_v26, %v5077_v58  ;;  %v5354_v57 = vpop.f32.mrf.mxu0  ;;  %v5367_v13 = vpop.f32.mrf.mxu1 }
 0x5df   :  { %v5380_v35 = vadd.f32 %v5378_v46, %v3675_v21 }
 0x5e0   :  { %v5373_v51 = vmul.f32 %v5371_v27, %v5369_v32 }
 0x5e1   :  { %v5382_v54 = vmax.f32 %v5380_v35, 0.0 }
 0x5e2   :  { %v5377_v53 = vadd.f32 %v5375_v10, %v5373_v51 }
 0x5e3   :  { %v5328_v1 = vpop.f32.mrf.mxu2  ;;  %v5341_v31 = vpop.f32.mrf.mxu3 }
 0x5e4   :  { %v5379_v29 = vadd.f32 %v5377_v53, %v11269_v6 }
 0x5e6   :  { %v5381_v33 = vmax.f32 %v5379_v29, 0.0 }
 0x5e8   :  { %v5383_v34 = vmax.f32 %v5381_v33, %v5382_v54 }
 0x5ea   :  { %v5385_v20 = vrot.slane %v5383_v34, 2  ;;  %v5386_v14 = vrot.slane %v5383_v34, 4  ;;  %v5387_v48 = vrot.slane %v5383_v34, 6  ;;  %v5391_v17 = vsel %vm1630_vm7, %v5383_v34, -inf }
 0x5eb   :  { %v5392_v61 = vrot.slane %v5391_v17, 4 }
 0x5ec   :  { %v5398_v44 = vsel %vm1630_vm7, %v5385_v20, -inf  ;;  %v5405_v60 = vsel %vm1630_vm7, %v5386_v14, -inf  ;;  %v5412_v59 = vsel %vm1630_vm7, %v5387_v48, -inf }
 0x5ed   :  { %v5393_v21 = vmax.f32 %v5391_v17, %v5392_v61  ;;  %v5399_v28 = vrot.slane %v5398_v44, 4  ;;  %v5406_v42 = vrot.slane %v5405_v60, 4  ;;  %v5413_v5 = vrot.slane %v5412_v59, 4 }
 0x5ef   :  { %v5394_v6 = vrot.slane %v5393_v21, 2  ;;  %v5400_v9 = vmax.f32 %v5398_v44, %v5399_v28  ;;  %v5407_v62 = vmax.f32 %v5405_v60, %v5406_v42  ;;  %v5414_v55 = vmax.f32 %v5412_v59, %v5413_v5 }
 0x5f1   :  { %v5395_v7 = vmax.f32 %v5393_v21, %v5394_v6  ;;  %v5401_v25 = vrot.slane %v5400_v9, 2  ;;  %v5408_v40 = vrot.slane %v5407_v62, 2  ;;  %v5415_v19 = vrot.slane %v5414_v55, 2 }
 0x5f3   :  { %v5396_v63 = vrot.slane %v5395_v7, 1  ;;  %v5402_v52 = vmax.f32 %v5400_v9, %v5401_v25  ;;  %v5409_v41 = vmax.f32 %v5407_v62, %v5408_v40  ;;  %v5416_v38 = vmax.f32 %v5414_v55, %v5415_v19 }
 0x5f5   :  { %v5403_v56 = vrot.slane %v5402_v52, 1  ;;  %v5410_v22 = vrot.slane %v5409_v41, 1  ;;  %v5417_v49 = vrot.slane %v5416_v38, 1  ;;  %v5397_v24 = vmax.f32 %v5395_v7, %v5396_v63 }
 0x5f7   :  { %v5404_v15 = vmax.f32 %v5402_v52, %v5403_v56  ;;  %v5411_v37 = vmax.f32 %v5409_v41, %v5410_v22  ;;  %v5418_v0 = vmax.f32 %v5416_v38, %v5417_v49 }
 0x5f9   :  { %v5423_v11 = vsel %vm1759_vm8, %v5404_v15, %v5397_v24 }
 0x5fa   :  { %v5424_v4 = vsel %vm1761_vm9, %v5411_v37, %v5423_v11 }
 0x5fb   :  { %v5425_v50 = vsel %vm1763_vm10, %v5418_v0, %v5424_v4 }
 0x5fc   :  { %5427 = vst [vmem:[%s12293_s5] sm:$0xf] %v5425_v50 }

</bundles_post_ra>
